<compile_context>
chip_gen: v7x
topology: tpu7x:2x2x1
jax: 0.10.0
libtpu: 0.0.40
codegen_flags: <defaults>
</compile_context>

<pallas_src>
import functools

import jax
import jax.numpy as jnp
from jax.experimental import pallas as pl
from jax.experimental.pallas import tpu as pltpu

_EPS = 1e-5  # PyTorch InstanceNorm2d default eps


# --------------------------- traced in-kernel helpers -----------------------
def _instance_norm(y):
    """Per-channel norm over spatial dims of (H, W, C); biased variance, single pass."""
    inv_n = 1.0 / float(y.shape[0] * y.shape[1])
    s = jnp.sum(y, axis=(0, 1), keepdims=True)
    ss = jnp.sum(y * y, axis=(0, 1), keepdims=True)
    mu = s * inv_n
    var = jnp.maximum(ss * inv_n - mu * mu, 0.0)
    return (y - mu) * jax.lax.rsqrt(var + _EPS)


def _shift_rows_reflect(x, d, H):
    """y[i] = x[i + d] with reflect-1 boundary; H is the untiled major dim (cheap concat)."""
    if d == 0:
        return x
    if d == -1:                                                    # row -1 -> row 1
        return jnp.concatenate([x[1:2], x[: H - 1]], axis=0)
    return jnp.concatenate([x[1:H], x[H - 2:H - 1]], axis=0)       # row H  -> row H-2


def _depthwise3x3_reflect(x, dw_ref, H, W):
    """3x3 depthwise conv with reflect-1 padding.  x: (H, W, C); dw_ref: (9, 1, C).

    Column (sublane-axis) shifts are XLU rolls plus an iota-mask patch of the single
    reflected border column; row shifts are major-dim concats.  No padded scratch array.
    """
    jidx = jax.lax.broadcasted_iota(jnp.int32, x.shape, 1)
    xm = pltpu.roll(x, shift=1, axis=1)        # col j <- x[:, j-1]  (wraps at j=0)
    xp = pltpu.roll(x, shift=W - 1, axis=1)    # col j <- x[:, j+1]  (wraps at j=W-1)
    xl = jnp.where(jidx == 0, xp, xm)          # col j-1 with reflect (-1 -> 1)
    xr = jnp.where(jidx == W - 1, xm, xp)      # col j+1 with reflect (W -> W-2)

    acc = None
    for kj, xc in ((0, xl), (1, x), (2, xr)):
        for ki in (0, 1, 2):
            tap = ki * 3 + kj
            xs = _shift_rows_reflect(xc, ki - 1, H)
            term = xs * dw_ref[tap:tap + 1]                # (1,1,C) broadcast over (H,W,C)
            acc = term if acc is None else acc + term
    return acc


def _pointwise1x1(h, pw_ref, H, W, C):
    """1x1 conv as an MXU matmul: (H*W, Cin) @ (Cin, Cout)."""
    y = jnp.dot(h.reshape(H * W, C), pw_ref[...], preferred_element_type=jnp.float32)
    return y.reshape(H, W, C)


# ------------------------------------ kernel --------------------------------
def mobile_resnet_block_kernel(x_ref, dw1_ref, pw1_ref, dw2_ref, pw2_ref, o_ref,
                               *, H, W, C):
    x = x_ref[0].astype(jnp.float32)                       # (H, W, C)

    # ReflectPad -> SeparableConv2d(dw + IN + pw) -> InstanceNorm -> ReLU -> Dropout(id)
    h = _depthwise3x3_reflect(x, dw1_ref, H, W)
    h = _instance_norm(h)                                  # norm inside SeparableConv2d
    h = _pointwise1x1(h, pw1_ref, H, W, C)
    h = _instance_norm(h)                                  # outer norm_layer
    h = jnp.maximum(h, 0.0)                                # ReLU(True)
    # TODO(synk): nn.Dropout(dropout_rate) is identity at inference / rate=0.

    # ReflectPad -> SeparableConv2d(dw + IN + pw) -> InstanceNorm
    h = _depthwise3x3_reflect(h, dw2_ref, H, W)
    h = _instance_norm(h)
    h = _pointwise1x1(h, pw2_ref, H, W, C)
    h = _instance_norm(h)

    o_ref[0] = (x + h).astype(o_ref.dtype)                 # residual connection


# ----------------------------------- wrapper --------------------------------
def _bcast_spec(shape):
    n = len(shape)
    return pl.BlockSpec(shape, lambda b, _n=n: (0,) * _n)


@jax.jit
def mobile_resnet_block(x_nchw, pallas_params):
    dw1, pw1, dw2, pw2 = pallas_params
    x = jnp.transpose(x_nchw, (0, 2, 3, 1)).astype(jnp.float32)    # NCHW -> NHWC
    N, H, W, C = x.shape

    img_spec = pl.BlockSpec((1, H, W, C), lambda b: (b, 0, 0, 0))
    out = pl.pallas_call(
        functools.partial(mobile_resnet_block_kernel, H=H, W=W, C=C),
        out_shape=jax.ShapeDtypeStruct((N, H, W, C), jnp.float32),
        grid_spec=pltpu.PrefetchScalarGridSpec(
            num_scalar_prefetch=0,
            grid=(N,),
            in_specs=[img_spec, _bcast_spec(dw1.shape), _bcast_spec(pw1.shape),
                      _bcast_spec(dw2.shape), _bcast_spec(pw2.shape)],
            out_specs=img_spec),
        compiler_params=pltpu.CompilerParams(dimension_semantics=("parallel",)),
        input_output_aliases={0: 0},       # residual input buffer reused for the output
    )(x, dw1, pw1, dw2, pw2)

    return jnp.transpose(out, (0, 3, 1, 2)).astype(x_nchw.dtype)   # NHWC -> NCHW


# ---------------------------- params + pure-JAX reference -------------------
def init_params(key, C):
    ks = jax.random.split(key, 8)
    t = lambda k, shape, s: s * jax.random.normal(k, shape, jnp.float32)
    # PyTorch-layout parameters (deterministic synthetic init).
    dw1 = t(ks[0], (C, 1, 3, 3), 0.2); db1 = t(ks[1], (C,), 0.1)
    pw1 = t(ks[2], (C, C, 1, 1), 0.2); pb1 = t(ks[3], (C,), 0.1)
    dw2 = t(ks[4], (C, 1, 3, 3), 0.2); db2 = t(ks[5], (C,), 0.1)
    pw2 = t(ks[6], (C, C, 1, 1), 0.2); pb2 = t(ks[7], (C,), 0.1)
    torch_params = (dw1, db1, pw1, pb1, dw2, db2, pw2, pb2)

    # Pallas packing.  Conv biases are intentionally not packed: each conv is followed
    # immediately by an InstanceNorm over spatial dims, which cancels any per-channel
    # constant exactly, so the kernel skips those adds (and their weight DMAs).
    dw_pack = lambda w: jnp.transpose(w[:, 0], (1, 2, 0)).reshape(9, 1, C)  # (C,1,3,3)->(9,1,C)
    pw_pack = lambda w: jnp.transpose(w[:, :, 0, 0], (1, 0))                # (O,I,1,1)->(I,O)
    pallas_params = (dw_pack(dw1), pw_pack(pw1), dw_pack(dw2), pw_pack(pw2))
    return torch_params, pallas_params


def reference_forward(x_nchw, torch_params):
    dw1, db1, pw1, pb1, dw2, db2, pw2, pb2 = torch_params

    def inorm(y):
        mu = jnp.mean(y, axis=(2, 3), keepdims=True)
        var = jnp.mean(jnp.square(y - mu), axis=(2, 3), keepdims=True)
        return (y - mu) / jnp.sqrt(var + _EPS)

    def sep(x, dw_w, dw_b, pw_w, pw_b):
        C = x.shape[1]
        xp = jnp.pad(x, ((0, 0), (0, 0), (1, 1), (1, 1)), mode="reflect")
        y = jax.lax.conv_general_dilated(
            xp, dw_w, (1, 1), "VALID", feature_group_count=C,
            dimension_numbers=("NCHW", "OIHW", "NCHW")) + dw_b.reshape(1, -1, 1, 1)
        y = inorm(y)
        y = jax.lax.conv_general_dilated(
            y, pw_w, (1, 1), "VALID",
            dimension_numbers=("NCHW", "OIHW", "NCHW")) + pw_b.reshape(1, -1, 1, 1)
        return y

    h = sep(x_nchw, dw1, db1, pw1, pb1)
    h = jnp.maximum(inorm(h), 0.0)
    h = sep(h, dw2, db2, pw2, pb2)
    return x_nchw + inorm(h)


if __name__ == "__main__":
    key = jax.random.PRNGKey(0)
    kx, kp = jax.random.split(key)
    N, C, H, W = 2, 4, 16, 16                     # batch=2, dim=4, spatial=16
    x = jax.random.normal(kx, (N, C, H, W), jnp.float32)
    torch_params, pallas_params = init_params(kp, C)

    out = jax.block_until_ready(mobile_resnet_block(x, pallas_params))
    ref = jax.block_until_ready(reference_forward(x, torch_params))

    assert out.shape == x.shape and out.dtype == x.dtype
    max_err = float(jnp.max(jnp.abs(out - ref)))
    assert max_err < 2e-4, f"mismatch vs reference: max abs err = {max_err}"
    print("KERNEL_OK")
</pallas_src>

<mosaic_0001>
module attributes {stable_mosaic.version = 11 : i64} {
  func.func @mobile_resnet_block_kernel(%arg0: i32, %arg1: memref<1x16x16x4xf32, #tpu.memory_space<vmem>>, %arg2: memref<9x1x4xf32, #tpu.memory_space<vmem>>, %arg3: memref<4x4xf32, #tpu.memory_space<vmem>>, %arg4: memref<9x1x4xf32, #tpu.memory_space<vmem>>, %arg5: memref<4x4xf32, #tpu.memory_space<vmem>>, %arg6: memref<1x16x16x4xf32, #tpu.memory_space<vmem>>) attributes {dimension_semantics = [#tpu.dimension_semantics<parallel>], iteration_bounds = array<i64: 2>, scalar_prefetch = 0 : i64, scratch_operands = 0 : i64, tpu.core_type = #tpu.core_type<tc>, window_params = [{transform_indices = @transform_0, window_bounds = array<i64: 1, 16, 16, 4>}, {pipeline_mode = #tpu.pipeline_mode<synchronous>, transform_indices = @transform_1, window_bounds = array<i64: 9, 1, 4>}, {pipeline_mode = #tpu.pipeline_mode<synchronous>, transform_indices = @transform_2, window_bounds = array<i64: 4, 4>}, {pipeline_mode = #tpu.pipeline_mode<synchronous>, transform_indices = @transform_3, window_bounds = array<i64: 9, 1, 4>}, {pipeline_mode = #tpu.pipeline_mode<synchronous>, transform_indices = @transform_4, window_bounds = array<i64: 4, 4>}, {transform_indices = @transform_5, window_bounds = array<i64: 1, 16, 16, 4>}]} {
    %c0 = arith.constant 0 : index
    %c0_0 = arith.constant 0 : index
    %c0_1 = arith.constant 0 : index
    %c0_2 = arith.constant 0 : index
    %0 = vector.load %arg1[%c0, %c0_0, %c0_1, %c0_2] : memref<1x16x16x4xf32, #tpu.memory_space<vmem>>, vector<1x16x16x4xf32>
    %1 = vector.shape_cast %0 : vector<1x16x16x4xf32> to vector<16x16x4xf32>
    %2 = tpu.iota {dimensions = array<i32: 1>} : vector<16x16x4xi32>
    %c1_i32 = arith.constant 1 : i32
    %3 = tpu.dynamic_rotate %1 by %c1_i32 dim 1 : vector<16x16x4xf32>, i32 -> vector<16x16x4xf32>
    %c15_i32 = arith.constant 15 : i32
    %4 = tpu.dynamic_rotate %1 by %c15_i32 dim 1 : vector<16x16x4xf32>, i32 -> vector<16x16x4xf32>
    %c0_i32 = arith.constant 0 : i32
    %5 = vector.broadcast %c0_i32 : i32 to vector<16x16x4xi32>
    %6 = arith.cmpi eq, %2, %5 : vector<16x16x4xi32>
    %7 = arith.select %6, %4, %3 : vector<16x16x4xi1>, vector<16x16x4xf32>
    %c15_i32_3 = arith.constant 15 : i32
    %8 = vector.broadcast %c15_i32_3 : i32 to vector<16x16x4xi32>
    %9 = arith.cmpi eq, %2, %8 : vector<16x16x4xi32>
    %10 = arith.select %9, %3, %4 : vector<16x16x4xi1>, vector<16x16x4xf32>
    %11 = vector.extract_strided_slice %7 {offsets = [1, 0, 0], sizes = [1, 16, 4], strides = [1, 1, 1]} : vector<16x16x4xf32> to vector<1x16x4xf32>
    %12 = vector.extract_strided_slice %7 {offsets = [0, 0, 0], sizes = [15, 16, 4], strides = [1, 1, 1]} : vector<16x16x4xf32> to vector<15x16x4xf32>
    %13 = tpu.concatenate %11, %12 in 0 : vector<1x16x4xf32>, vector<15x16x4xf32> -> vector<16x16x4xf32>
    %c0_4 = arith.constant 0 : index
    %c0_5 = arith.constant 0 : index
    %c0_6 = arith.constant 0 : index
    %14 = vector.load %arg2[%c0_4, %c0_5, %c0_6] : memref<9x1x4xf32, #tpu.memory_space<vmem>>, vector<1x1x4xf32>
    %15 = vector.broadcast %14 : vector<1x1x4xf32> to vector<16x16x4xf32>
    %16 = arith.mulf %13, %15 : vector<16x16x4xf32>
    %c3 = arith.constant 3 : index
    %c0_7 = arith.constant 0 : index
    %c0_8 = arith.constant 0 : index
    %17 = vector.load %arg2[%c3, %c0_7, %c0_8] : memref<9x1x4xf32, #tpu.memory_space<vmem>>, vector<1x1x4xf32>
    %18 = vector.broadcast %17 : vector<1x1x4xf32> to vector<16x16x4xf32>
    %19 = arith.mulf %7, %18 : vector<16x16x4xf32>
    %20 = arith.addf %16, %19 : vector<16x16x4xf32>
    %21 = vector.extract_strided_slice %7 {offsets = [1, 0, 0], sizes = [15, 16, 4], strides = [1, 1, 1]} : vector<16x16x4xf32> to vector<15x16x4xf32>
    %22 = vector.extract_strided_slice %7 {offsets = [14, 0, 0], sizes = [1, 16, 4], strides = [1, 1, 1]} : vector<16x16x4xf32> to vector<1x16x4xf32>
    %23 = tpu.concatenate %21, %22 in 0 : vector<15x16x4xf32>, vector<1x16x4xf32> -> vector<16x16x4xf32>
    %c6 = arith.constant 6 : index
    %c0_9 = arith.constant 0 : index
    %c0_10 = arith.constant 0 : index
    %24 = vector.load %arg2[%c6, %c0_9, %c0_10] : memref<9x1x4xf32, #tpu.memory_space<vmem>>, vector<1x1x4xf32>
    %25 = vector.broadcast %24 : vector<1x1x4xf32> to vector<16x16x4xf32>
    %26 = arith.mulf %23, %25 : vector<16x16x4xf32>
    %27 = arith.addf %20, %26 : vector<16x16x4xf32>
    %28 = vector.extract_strided_slice %1 {offsets = [1, 0, 0], sizes = [1, 16, 4], strides = [1, 1, 1]} : vector<16x16x4xf32> to vector<1x16x4xf32>
    %29 = vector.extract_strided_slice %1 {offsets = [0, 0, 0], sizes = [15, 16, 4], strides = [1, 1, 1]} : vector<16x16x4xf32> to vector<15x16x4xf32>
    %30 = tpu.concatenate %28, %29 in 0 : vector<1x16x4xf32>, vector<15x16x4xf32> -> vector<16x16x4xf32>
    %c1 = arith.constant 1 : index
    %c0_11 = arith.constant 0 : index
    %c0_12 = arith.constant 0 : index
    %31 = vector.load %arg2[%c1, %c0_11, %c0_12] : memref<9x1x4xf32, #tpu.memory_space<vmem>>, vector<1x1x4xf32>
    %32 = vector.broadcast %31 : vector<1x1x4xf32> to vector<16x16x4xf32>
    %33 = arith.mulf %30, %32 : vector<16x16x4xf32>
    %34 = arith.addf %27, %33 : vector<16x16x4xf32>
    %c4 = arith.constant 4 : index
    %c0_13 = arith.constant 0 : index
    %c0_14 = arith.constant 0 : index
    %35 = vector.load %arg2[%c4, %c0_13, %c0_14] : memref<9x1x4xf32, #tpu.memory_space<vmem>>, vector<1x1x4xf32>
    %36 = vector.broadcast %35 : vector<1x1x4xf32> to vector<16x16x4xf32>
    %37 = arith.mulf %1, %36 : vector<16x16x4xf32>
    %38 = arith.addf %34, %37 : vector<16x16x4xf32>
    %39 = vector.extract_strided_slice %1 {offsets = [1, 0, 0], sizes = [15, 16, 4], strides = [1, 1, 1]} : vector<16x16x4xf32> to vector<15x16x4xf32>
    %40 = vector.extract_strided_slice %1 {offsets = [14, 0, 0], sizes = [1, 16, 4], strides = [1, 1, 1]} : vector<16x16x4xf32> to vector<1x16x4xf32>
    %41 = tpu.concatenate %39, %40 in 0 : vector<15x16x4xf32>, vector<1x16x4xf32> -> vector<16x16x4xf32>
    %c7 = arith.constant 7 : index
    %c0_15 = arith.constant 0 : index
    %c0_16 = arith.constant 0 : index
    %42 = vector.load %arg2[%c7, %c0_15, %c0_16] : memref<9x1x4xf32, #tpu.memory_space<vmem>>, vector<1x1x4xf32>
    %43 = vector.broadcast %42 : vector<1x1x4xf32> to vector<16x16x4xf32>
    %44 = arith.mulf %41, %43 : vector<16x16x4xf32>
    %45 = arith.addf %38, %44 : vector<16x16x4xf32>
    %46 = vector.extract_strided_slice %10 {offsets = [1, 0, 0], sizes = [1, 16, 4], strides = [1, 1, 1]} : vector<16x16x4xf32> to vector<1x16x4xf32>
    %47 = vector.extract_strided_slice %10 {offsets = [0, 0, 0], sizes = [15, 16, 4], strides = [1, 1, 1]} : vector<16x16x4xf32> to vector<15x16x4xf32>
    %48 = tpu.concatenate %46, %47 in 0 : vector<1x16x4xf32>, vector<15x16x4xf32> -> vector<16x16x4xf32>
    %c2 = arith.constant 2 : index
    %c0_17 = arith.constant 0 : index
    %c0_18 = arith.constant 0 : index
    %49 = vector.load %arg2[%c2, %c0_17, %c0_18] : memref<9x1x4xf32, #tpu.memory_space<vmem>>, vector<1x1x4xf32>
    %50 = vector.broadcast %49 : vector<1x1x4xf32> to vector<16x16x4xf32>
    %51 = arith.mulf %48, %50 : vector<16x16x4xf32>
    %52 = arith.addf %45, %51 : vector<16x16x4xf32>
    %c5 = arith.constant 5 : index
    %c0_19 = arith.constant 0 : index
    %c0_20 = arith.constant 0 : index
    %53 = vector.load %arg2[%c5, %c0_19, %c0_20] : memref<9x1x4xf32, #tpu.memory_space<vmem>>, vector<1x1x4xf32>
    %54 = vector.broadcast %53 : vector<1x1x4xf32> to vector<16x16x4xf32>
    %55 = arith.mulf %10, %54 : vector<16x16x4xf32>
    %56 = arith.addf %52, %55 : vector<16x16x4xf32>
    %57 = vector.extract_strided_slice %10 {offsets = [1, 0, 0], sizes = [15, 16, 4], strides = [1, 1, 1]} : vector<16x16x4xf32> to vector<15x16x4xf32>
    %58 = vector.extract_strided_slice %10 {offsets = [14, 0, 0], sizes = [1, 16, 4], strides = [1, 1, 1]} : vector<16x16x4xf32> to vector<1x16x4xf32>
    %59 = tpu.concatenate %57, %58 in 0 : vector<15x16x4xf32>, vector<1x16x4xf32> -> vector<16x16x4xf32>
    %c8 = arith.constant 8 : index
    %c0_21 = arith.constant 0 : index
    %c0_22 = arith.constant 0 : index
    %60 = vector.load %arg2[%c8, %c0_21, %c0_22] : memref<9x1x4xf32, #tpu.memory_space<vmem>>, vector<1x1x4xf32>
    %61 = vector.broadcast %60 : vector<1x1x4xf32> to vector<16x16x4xf32>
    %62 = arith.mulf %59, %61 : vector<16x16x4xf32>
    %63 = arith.addf %56, %62 : vector<16x16x4xf32>
    %cst = arith.constant dense<0.000000e+00> : vector<4xf32>
    %64 = vector.multi_reduction <add>, %63, %cst [0, 1] : vector<16x16x4xf32> to vector<4xf32>
    %65 = vector.shape_cast %64 : vector<4xf32> to vector<1x1x4xf32>
    %66 = arith.mulf %63, %63 : vector<16x16x4xf32>
    %cst_23 = arith.constant dense<0.000000e+00> : vector<4xf32>
    %67 = vector.multi_reduction <add>, %66, %cst_23 [0, 1] : vector<16x16x4xf32> to vector<4xf32>
    %68 = vector.shape_cast %67 : vector<4xf32> to vector<1x1x4xf32>
    %cst_24 = arith.constant 3.906250e-03 : f32
    %69 = vector.broadcast %cst_24 : f32 to vector<1x1x4xf32>
    %70 = arith.mulf %65, %69 : vector<1x1x4xf32>
    %cst_25 = arith.constant 3.906250e-03 : f32
    %71 = vector.broadcast %cst_25 : f32 to vector<1x1x4xf32>
    %72 = arith.mulf %68, %71 : vector<1x1x4xf32>
    %73 = arith.mulf %70, %70 : vector<1x1x4xf32>
    %74 = arith.subf %72, %73 : vector<1x1x4xf32>
    %cst_26 = arith.constant 0.000000e+00 : f32
    %75 = vector.broadcast %cst_26 : f32 to vector<1x1x4xf32>
    %76 = arith.maximumf %74, %75 : vector<1x1x4xf32>
    %77 = vector.broadcast %70 : vector<1x1x4xf32> to vector<16x16x4xf32>
    %78 = arith.subf %63, %77 : vector<16x16x4xf32>
    %cst_27 = arith.constant 9.99999974E-6 : f32
    %79 = vector.broadcast %cst_27 : f32 to vector<1x1x4xf32>
    %80 = arith.addf %76, %79 : vector<1x1x4xf32>
    %81 = math.rsqrt %80 : vector<1x1x4xf32>
    %82 = vector.broadcast %81 : vector<1x1x4xf32> to vector<16x16x4xf32>
    %83 = arith.mulf %78, %82 : vector<16x16x4xf32>
    %84 = vector.shape_cast %83 : vector<16x16x4xf32> to vector<256x4xf32>
    %c0_28 = arith.constant 0 : index
    %c0_29 = arith.constant 0 : index
    %85 = vector.load %arg3[%c0_28, %c0_29] : memref<4x4xf32, #tpu.memory_space<vmem>>, vector<4x4xf32>
    %cst_30 = arith.constant dense<0.000000e+00> : vector<256x4xf32>
    %86 = tpu.matmul %84, %85, %cst_30 {dimension_numbers = #tpu.dot_dimension_numbers<[1], [0], [0], [1], [0, 0, 1, 1], [], []>} : vector<256x4xf32>, vector<4x4xf32>, vector<256x4xf32> -> vector<256x4xf32>
    %87 = vector.shape_cast %86 : vector<256x4xf32> to vector<16x16x4xf32>
    %cst_31 = arith.constant dense<0.000000e+00> : vector<4xf32>
    %88 = vector.multi_reduction <add>, %87, %cst_31 [0, 1] : vector<16x16x4xf32> to vector<4xf32>
    %89 = vector.shape_cast %88 : vector<4xf32> to vector<1x1x4xf32>
    %90 = arith.mulf %87, %87 : vector<16x16x4xf32>
    %cst_32 = arith.constant dense<0.000000e+00> : vector<4xf32>
    %91 = vector.multi_reduction <add>, %90, %cst_32 [0, 1] : vector<16x16x4xf32> to vector<4xf32>
    %92 = vector.shape_cast %91 : vector<4xf32> to vector<1x1x4xf32>
    %cst_33 = arith.constant 3.906250e-03 : f32
    %93 = vector.broadcast %cst_33 : f32 to vector<1x1x4xf32>
    %94 = arith.mulf %89, %93 : vector<1x1x4xf32>
    %cst_34 = arith.constant 3.906250e-03 : f32
    %95 = vector.broadcast %cst_34 : f32 to vector<1x1x4xf32>
    %96 = arith.mulf %92, %95 : vector<1x1x4xf32>
    %97 = arith.mulf %94, %94 : vector<1x1x4xf32>
    %98 = arith.subf %96, %97 : vector<1x1x4xf32>
    %cst_35 = arith.constant 0.000000e+00 : f32
    %99 = vector.broadcast %cst_35 : f32 to vector<1x1x4xf32>
    %100 = arith.maximumf %98, %99 : vector<1x1x4xf32>
    %101 = vector.broadcast %94 : vector<1x1x4xf32> to vector<16x16x4xf32>
    %102 = arith.subf %87, %101 : vector<16x16x4xf32>
    %cst_36 = arith.constant 9.99999974E-6 : f32
    %103 = vector.broadcast %cst_36 : f32 to vector<1x1x4xf32>
    %104 = arith.addf %100, %103 : vector<1x1x4xf32>
    %105 = math.rsqrt %104 : vector<1x1x4xf32>
    %106 = vector.broadcast %105 : vector<1x1x4xf32> to vector<16x16x4xf32>
    %107 = arith.mulf %102, %106 : vector<16x16x4xf32>
    %cst_37 = arith.constant 0.000000e+00 : f32
    %108 = vector.broadcast %cst_37 : f32 to vector<16x16x4xf32>
    %109 = arith.maximumf %107, %108 : vector<16x16x4xf32>
    %110 = tpu.iota {dimensions = array<i32: 1>} : vector<16x16x4xi32>
    %c1_i32_38 = arith.constant 1 : i32
    %111 = tpu.dynamic_rotate %109 by %c1_i32_38 dim 1 : vector<16x16x4xf32>, i32 -> vector<16x16x4xf32>
    %c15_i32_39 = arith.constant 15 : i32
    %112 = tpu.dynamic_rotate %109 by %c15_i32_39 dim 1 : vector<16x16x4xf32>, i32 -> vector<16x16x4xf32>
    %c0_i32_40 = arith.constant 0 : i32
    %113 = vector.broadcast %c0_i32_40 : i32 to vector<16x16x4xi32>
    %114 = arith.cmpi eq, %110, %113 : vector<16x16x4xi32>
    %115 = arith.select %114, %112, %111 : vector<16x16x4xi1>, vector<16x16x4xf32>
    %c15_i32_41 = arith.constant 15 : i32
    %116 = vector.broadcast %c15_i32_41 : i32 to vector<16x16x4xi32>
    %117 = arith.cmpi eq, %110, %116 : vector<16x16x4xi32>
    %118 = arith.select %117, %111, %112 : vector<16x16x4xi1>, vector<16x16x4xf32>
    %119 = vector.extract_strided_slice %115 {offsets = [1, 0, 0], sizes = [1, 16, 4], strides = [1, 1, 1]} : vector<16x16x4xf32> to vector<1x16x4xf32>
    %120 = vector.extract_strided_slice %115 {offsets = [0, 0, 0], sizes = [15, 16, 4], strides = [1, 1, 1]} : vector<16x16x4xf32> to vector<15x16x4xf32>
    %121 = tpu.concatenate %119, %120 in 0 : vector<1x16x4xf32>, vector<15x16x4xf32> -> vector<16x16x4xf32>
    %c0_42 = arith.constant 0 : index
    %c0_43 = arith.constant 0 : index
    %c0_44 = arith.constant 0 : index
    %122 = vector.load %arg4[%c0_42, %c0_43, %c0_44] : memref<9x1x4xf32, #tpu.memory_space<vmem>>, vector<1x1x4xf32>
    %123 = vector.broadcast %122 : vector<1x1x4xf32> to vector<16x16x4xf32>
    %124 = arith.mulf %121, %123 : vector<16x16x4xf32>
    %c3_45 = arith.constant 3 : index
    %c0_46 = arith.constant 0 : index
    %c0_47 = arith.constant 0 : index
    %125 = vector.load %arg4[%c3_45, %c0_46, %c0_47] : memref<9x1x4xf32, #tpu.memory_space<vmem>>, vector<1x1x4xf32>
    %126 = vector.broadcast %125 : vector<1x1x4xf32> to vector<16x16x4xf32>
    %127 = arith.mulf %115, %126 : vector<16x16x4xf32>
    %128 = arith.addf %124, %127 : vector<16x16x4xf32>
    %129 = vector.extract_strided_slice %115 {offsets = [1, 0, 0], sizes = [15, 16, 4], strides = [1, 1, 1]} : vector<16x16x4xf32> to vector<15x16x4xf32>
    %130 = vector.extract_strided_slice %115 {offsets = [14, 0, 0], sizes = [1, 16, 4], strides = [1, 1, 1]} : vector<16x16x4xf32> to vector<1x16x4xf32>
    %131 = tpu.concatenate %129, %130 in 0 : vector<15x16x4xf32>, vector<1x16x4xf32> -> vector<16x16x4xf32>
    %c6_48 = arith.constant 6 : index
    %c0_49 = arith.constant 0 : index
    %c0_50 = arith.constant 0 : index
    %132 = vector.load %arg4[%c6_48, %c0_49, %c0_50] : memref<9x1x4xf32, #tpu.memory_space<vmem>>, vector<1x1x4xf32>
    %133 = vector.broadcast %132 : vector<1x1x4xf32> to vector<16x16x4xf32>
    %134 = arith.mulf %131, %133 : vector<16x16x4xf32>
    %135 = arith.addf %128, %134 : vector<16x16x4xf32>
    %136 = vector.extract_strided_slice %109 {offsets = [1, 0, 0], sizes = [1, 16, 4], strides = [1, 1, 1]} : vector<16x16x4xf32> to vector<1x16x4xf32>
    %137 = vector.extract_strided_slice %109 {offsets = [0, 0, 0], sizes = [15, 16, 4], strides = [1, 1, 1]} : vector<16x16x4xf32> to vector<15x16x4xf32>
    %138 = tpu.concatenate %136, %137 in 0 : vector<1x16x4xf32>, vector<15x16x4xf32> -> vector<16x16x4xf32>
    %c1_51 = arith.constant 1 : index
    %c0_52 = arith.constant 0 : index
    %c0_53 = arith.constant 0 : index
    %139 = vector.load %arg4[%c1_51, %c0_52, %c0_53] : memref<9x1x4xf32, #tpu.memory_space<vmem>>, vector<1x1x4xf32>
    %140 = vector.broadcast %139 : vector<1x1x4xf32> to vector<16x16x4xf32>
    %141 = arith.mulf %138, %140 : vector<16x16x4xf32>
    %142 = arith.addf %135, %141 : vector<16x16x4xf32>
    %c4_54 = arith.constant 4 : index
    %c0_55 = arith.constant 0 : index
    %c0_56 = arith.constant 0 : index
    %143 = vector.load %arg4[%c4_54, %c0_55, %c0_56] : memref<9x1x4xf32, #tpu.memory_space<vmem>>, vector<1x1x4xf32>
    %144 = vector.broadcast %143 : vector<1x1x4xf32> to vector<16x16x4xf32>
    %145 = arith.mulf %109, %144 : vector<16x16x4xf32>
    %146 = arith.addf %142, %145 : vector<16x16x4xf32>
    %147 = vector.extract_strided_slice %109 {offsets = [1, 0, 0], sizes = [15, 16, 4], strides = [1, 1, 1]} : vector<16x16x4xf32> to vector<15x16x4xf32>
    %148 = vector.extract_strided_slice %109 {offsets = [14, 0, 0], sizes = [1, 16, 4], strides = [1, 1, 1]} : vector<16x16x4xf32> to vector<1x16x4xf32>
    %149 = tpu.concatenate %147, %148 in 0 : vector<15x16x4xf32>, vector<1x16x4xf32> -> vector<16x16x4xf32>
    %c7_57 = arith.constant 7 : index
    %c0_58 = arith.constant 0 : index
    %c0_59 = arith.constant 0 : index
    %150 = vector.load %arg4[%c7_57, %c0_58, %c0_59] : memref<9x1x4xf32, #tpu.memory_space<vmem>>, vector<1x1x4xf32>
    %151 = vector.broadcast %150 : vector<1x1x4xf32> to vector<16x16x4xf32>
    %152 = arith.mulf %149, %151 : vector<16x16x4xf32>
    %153 = arith.addf %146, %152 : vector<16x16x4xf32>
    %154 = vector.extract_strided_slice %118 {offsets = [1, 0, 0], sizes = [1, 16, 4], strides = [1, 1, 1]} : vector<16x16x4xf32> to vector<1x16x4xf32>
    %155 = vector.extract_strided_slice %118 {offsets = [0, 0, 0], sizes = [15, 16, 4], strides = [1, 1, 1]} : vector<16x16x4xf32> to vector<15x16x4xf32>
    %156 = tpu.concatenate %154, %155 in 0 : vector<1x16x4xf32>, vector<15x16x4xf32> -> vector<16x16x4xf32>
    %c2_60 = arith.constant 2 : index
    %c0_61 = arith.constant 0 : index
    %c0_62 = arith.constant 0 : index
    %157 = vector.load %arg4[%c2_60, %c0_61, %c0_62] : memref<9x1x4xf32, #tpu.memory_space<vmem>>, vector<1x1x4xf32>
    %158 = vector.broadcast %157 : vector<1x1x4xf32> to vector<16x16x4xf32>
    %159 = arith.mulf %156, %158 : vector<16x16x4xf32>
    %160 = arith.addf %153, %159 : vector<16x16x4xf32>
    %c5_63 = arith.constant 5 : index
    %c0_64 = arith.constant 0 : index
    %c0_65 = arith.constant 0 : index
    %161 = vector.load %arg4[%c5_63, %c0_64, %c0_65] : memref<9x1x4xf32, #tpu.memory_space<vmem>>, vector<1x1x4xf32>
    %162 = vector.broadcast %161 : vector<1x1x4xf32> to vector<16x16x4xf32>
    %163 = arith.mulf %118, %162 : vector<16x16x4xf32>
    %164 = arith.addf %160, %163 : vector<16x16x4xf32>
    %165 = vector.extract_strided_slice %118 {offsets = [1, 0, 0], sizes = [15, 16, 4], strides = [1, 1, 1]} : vector<16x16x4xf32> to vector<15x16x4xf32>
    %166 = vector.extract_strided_slice %118 {offsets = [14, 0, 0], sizes = [1, 16, 4], strides = [1, 1, 1]} : vector<16x16x4xf32> to vector<1x16x4xf32>
    %167 = tpu.concatenate %165, %166 in 0 : vector<15x16x4xf32>, vector<1x16x4xf32> -> vector<16x16x4xf32>
    %c8_66 = arith.constant 8 : index
    %c0_67 = arith.constant 0 : index
    %c0_68 = arith.constant 0 : index
    %168 = vector.load %arg4[%c8_66, %c0_67, %c0_68] : memref<9x1x4xf32, #tpu.memory_space<vmem>>, vector<1x1x4xf32>
    %169 = vector.broadcast %168 : vector<1x1x4xf32> to vector<16x16x4xf32>
    %170 = arith.mulf %167, %169 : vector<16x16x4xf32>
    %171 = arith.addf %164, %170 : vector<16x16x4xf32>
    %cst_69 = arith.constant dense<0.000000e+00> : vector<4xf32>
    %172 = vector.multi_reduction <add>, %171, %cst_69 [0, 1] : vector<16x16x4xf32> to vector<4xf32>
    %173 = vector.shape_cast %172 : vector<4xf32> to vector<1x1x4xf32>
    %174 = arith.mulf %171, %171 : vector<16x16x4xf32>
    %cst_70 = arith.constant dense<0.000000e+00> : vector<4xf32>
    %175 = vector.multi_reduction <add>, %174, %cst_70 [0, 1] : vector<16x16x4xf32> to vector<4xf32>
    %176 = vector.shape_cast %175 : vector<4xf32> to vector<1x1x4xf32>
    %cst_71 = arith.constant 3.906250e-03 : f32
    %177 = vector.broadcast %cst_71 : f32 to vector<1x1x4xf32>
    %178 = arith.mulf %173, %177 : vector<1x1x4xf32>
    %cst_72 = arith.constant 3.906250e-03 : f32
    %179 = vector.broadcast %cst_72 : f32 to vector<1x1x4xf32>
    %180 = arith.mulf %176, %179 : vector<1x1x4xf32>
    %181 = arith.mulf %178, %178 : vector<1x1x4xf32>
    %182 = arith.subf %180, %181 : vector<1x1x4xf32>
    %cst_73 = arith.constant 0.000000e+00 : f32
    %183 = vector.broadcast %cst_73 : f32 to vector<1x1x4xf32>
    %184 = arith.maximumf %182, %183 : vector<1x1x4xf32>
    %185 = vector.broadcast %178 : vector<1x1x4xf32> to vector<16x16x4xf32>
    %186 = arith.subf %171, %185 : vector<16x16x4xf32>
    %cst_74 = arith.constant 9.99999974E-6 : f32
    %187 = vector.broadcast %cst_74 : f32 to vector<1x1x4xf32>
    %188 = arith.addf %184, %187 : vector<1x1x4xf32>
    %189 = math.rsqrt %188 : vector<1x1x4xf32>
    %190 = vector.broadcast %189 : vector<1x1x4xf32> to vector<16x16x4xf32>
    %191 = arith.mulf %186, %190 : vector<16x16x4xf32>
    %192 = vector.shape_cast %191 : vector<16x16x4xf32> to vector<256x4xf32>
    %c0_75 = arith.constant 0 : index
    %c0_76 = arith.constant 0 : index
    %193 = vector.load %arg5[%c0_75, %c0_76] : memref<4x4xf32, #tpu.memory_space<vmem>>, vector<4x4xf32>
    %cst_77 = arith.constant dense<0.000000e+00> : vector<256x4xf32>
    %194 = tpu.matmul %192, %193, %cst_77 {dimension_numbers = #tpu.dot_dimension_numbers<[1], [0], [0], [1], [0, 0, 1, 1], [], []>} : vector<256x4xf32>, vector<4x4xf32>, vector<256x4xf32> -> vector<256x4xf32>
    %195 = vector.shape_cast %194 : vector<256x4xf32> to vector<16x16x4xf32>
    %cst_78 = arith.constant dense<0.000000e+00> : vector<4xf32>
    %196 = vector.multi_reduction <add>, %195, %cst_78 [0, 1] : vector<16x16x4xf32> to vector<4xf32>
    %197 = vector.shape_cast %196 : vector<4xf32> to vector<1x1x4xf32>
    %198 = arith.mulf %195, %195 : vector<16x16x4xf32>
    %cst_79 = arith.constant dense<0.000000e+00> : vector<4xf32>
    %199 = vector.multi_reduction <add>, %198, %cst_79 [0, 1] : vector<16x16x4xf32> to vector<4xf32>
    %200 = vector.shape_cast %199 : vector<4xf32> to vector<1x1x4xf32>
    %cst_80 = arith.constant 3.906250e-03 : f32
    %201 = vector.broadcast %cst_80 : f32 to vector<1x1x4xf32>
    %202 = arith.mulf %197, %201 : vector<1x1x4xf32>
    %cst_81 = arith.constant 3.906250e-03 : f32
    %203 = vector.broadcast %cst_81 : f32 to vector<1x1x4xf32>
    %204 = arith.mulf %200, %203 : vector<1x1x4xf32>
    %205 = arith.mulf %202, %202 : vector<1x1x4xf32>
    %206 = arith.subf %204, %205 : vector<1x1x4xf32>
    %cst_82 = arith.constant 0.000000e+00 : f32
    %207 = vector.broadcast %cst_82 : f32 to vector<1x1x4xf32>
    %208 = arith.maximumf %206, %207 : vector<1x1x4xf32>
    %209 = vector.broadcast %202 : vector<1x1x4xf32> to vector<16x16x4xf32>
    %210 = arith.subf %195, %209 : vector<16x16x4xf32>
    %cst_83 = arith.constant 9.99999974E-6 : f32
    %211 = vector.broadcast %cst_83 : f32 to vector<1x1x4xf32>
    %212 = arith.addf %208, %211 : vector<1x1x4xf32>
    %213 = math.rsqrt %212 : vector<1x1x4xf32>
    %214 = vector.broadcast %213 : vector<1x1x4xf32> to vector<16x16x4xf32>
    %215 = arith.mulf %210, %214 : vector<16x16x4xf32>
    %216 = arith.addf %1, %215 : vector<16x16x4xf32>
    %c0_84 = arith.constant 0 : index
    %c0_85 = arith.constant 0 : index
    %c0_86 = arith.constant 0 : index
    %c0_87 = arith.constant 0 : index
    %217 = vector.load %arg6[%c0_84, %c0_85, %c0_86, %c0_87] : memref<1x16x16x4xf32, #tpu.memory_space<vmem>>, vector<1x16x16x4xf32>
    %218 = vector.shape_cast %217 : vector<1x16x16x4xf32> to vector<16x16x4xf32>
    %219 = vector.shape_cast %216 : vector<16x16x4xf32> to vector<1x16x16x4xf32>
    tpu.vector_store %arg6[%c0_84, %c0_85, %c0_86, %c0_87], %219 {strides = array<i32>} : memref<1x16x16x4xf32, #tpu.memory_space<vmem>>, vector<1x16x16x4xf32>,
    return
  }
  func.func @transform_0(%arg0: i32) -> (i32, i32, i32, i32) {
    %c0_i32 = arith.constant 0 : i32
    %c0_i32_0 = arith.constant 0 : i32
    %c0_i32_1 = arith.constant 0 : i32
    %c0_i32_2 = arith.constant 0 : i32
    return %arg0, %c0_i32, %c0_i32_0, %c0_i32_1 : i32, i32, i32, i32
  }
  func.func @transform_1(%arg0: i32) -> (i32, i32, i32) {
    %c0_i32 = arith.constant 0 : i32
    %c0_i32_0 = arith.constant 0 : i32
    %c0_i32_1 = arith.constant 0 : i32
    %c0_i32_2 = arith.constant 0 : i32
    return %c0_i32, %c0_i32_0, %c0_i32_1 : i32, i32, i32
  }
  func.func @transform_2(%arg0: i32) -> (i32, i32) {
    %c0_i32 = arith.constant 0 : i32
    %c0_i32_0 = arith.constant 0 : i32
    %c0_i32_1 = arith.constant 0 : i32
    return %c0_i32, %c0_i32_0 : i32, i32
  }
  func.func @transform_3(%arg0: i32) -> (i32, i32, i32) {
    %c0_i32 = arith.constant 0 : i32
    %c0_i32_0 = arith.constant 0 : i32
    %c0_i32_1 = arith.constant 0 : i32
    %c0_i32_2 = arith.constant 0 : i32
    return %c0_i32, %c0_i32_0, %c0_i32_1 : i32, i32, i32
  }
  func.func @transform_4(%arg0: i32) -> (i32, i32) {
    %c0_i32 = arith.constant 0 : i32
    %c0_i32_0 = arith.constant 0 : i32
    %c0_i32_1 = arith.constant 0 : i32
    return %c0_i32, %c0_i32_0 : i32, i32
  }
  func.func @transform_5(%arg0: i32) -> (i32, i32, i32, i32) {
    %c0_i32 = arith.constant 0 : i32
    %c0_i32_0 = arith.constant 0 : i32
    %c0_i32_1 = arith.constant 0 : i32
    %c0_i32_2 = arith.constant 0 : i32
    return %arg0, %c0_i32, %c0_i32_0, %c0_i32_1 : i32, i32, i32, i32
  }
}

</mosaic_0001>

<bundles_post_ra>
// kernel: mobile_resnet_block.1
= control target key start
LH: loop header
LB: loop body
LE: loop exit
PB: predicated region body
PF: predicated region fallthrough
CT: control target
= control target key end

     0   :  { %s3977_s18 = smov 0   ;;  %s8224_s0 = inlined_call_operand.vmem [shape: f32[2,16,16,4], index: 0, kind: input, shape index: {}, may-alias: {0,5}]   ;;  %s8225_s1 = inlined_call_operand.vmem [shape: f32[9,1,4], index: 1, kind: input, shape index: {}]   ;;  %s8226_s2 = inlined_call_operand.vmem [shape: f32[4,4], index: 2, kind: input, shape index: {}]   ;;  %s8227_s3 = inlined_call_operand.vmem [shape: f32[9,1,4], index: 3, kind: input, shape index: {}]   ;;  %s8228_s4 = inlined_call_operand.vmem [shape: f32[4,4], index: 4, kind: input, shape index: {}]   ;;  %s8229_s5 = inlined_call_operand.vmem [shape: f32[2,16,16,4], index: 5, kind: output, shape index: {}, may-alias: {0,5}]  }
   0x1 LB: > { %s3623_s19 = sadd.s32 4294967295, %s3945_s18   ;;  %p3627_p0 = scmp.ge.s32.totalorder %s3945_s18, 1  ;;  %s3945_s18 = sphi %s3977_s18, %s15_s18  }
   0x2   : > { %p187_p1 = scmp.lt.s32.totalorder %s3945_s18, 3 }
   0x4   : > { %p188_p2 = pnand %p3627_p0, %p187_p1 }
   0x6   : > { %191 = sbr.rel (%p188_p2) target bundleno = 1266 (0x4f2), region = 40 }
   0xd   : > { %v1303_v0 = vld [vmem:[%s8226_s2] sm:$0xf]  ;;  %vm1400_vm0 = vcmask 1043456   ;;  %p215_p3 = scmp.lt.s32.totalorder %s3623_s19, 1  ;;  %v257_v1 = vlaneseq  ;;  %vm1061_vm5 = vcmask 31744  }
   0xe   : > { %3802 = vmatprep.subr.msk.mxu0 %vm1400_vm0, %v1303_v0  ;;  %v4023_v9 = vld [vmem:[%s8225_s1 + $0x1] ss:$0 sm:$0xff] }
   0xf   : > { %3803 = vmatpush3.msk.msra.mxu0 %vm1400_vm0, %v1303_v0  ;;  %s9385_s19 = smov (!%p215_p3, %s3623_s19), 1  ;;  %v4006_v4 = vshrl.u32 %v257_v1, 7  ;;  %8565 = vst [vmem:[#allocation9_spill] sm:$0xff] %v4023_v9 }
  0x10   : > { %s3734_s22 = sshll.u32 %s9385_s19, 8 }
  0x11   : > { %s3998_s25 = scalar_lea.vmem %s8224_s0, %s3734_s22  ;;  %8560 = vst [vmem:[#allocation4_spill] sm:$0xff] %v4006_v4  ;;  %vm292_vm1 = vcmp.lt.s32.totalorder %v4006_v4, 1  ;;  %v4058_v23 = vadd.s32 8, %v4006_v4  ;;  %vm357_vm2 = vcmp.lt.s32.totalorder %v4006_v4, 7  ;;  %vm390_vm3 = vcmp.eq.s32.totalorder %v4006_v4, 0  ;;  %s8111_s17 = scalar_lea.vmem %s8229_s5, %s3734_s22 }
  0x12   : > { %v4001_v2 = vld [vmem:[%s3998_s25] sm:$0xff]  ;;  %v4004_v3 = vld [vmem:[%s3998_s25 + $0x8] sm:$0xff]  ;;  %v4009_v5 = vld [vmem:[%s3998_s25 + $0x10] sm:$0xff] }
  0x13   : > { %8558 = vst [vmem:[#allocation2_spill] sm:$0xff] %v4001_v2  ;;  %8559 = vst [vmem:[#allocation3_spill] sm:$0xff] %v4004_v3  ;;  %v4012_v6 = vld [vmem:[%s3998_s25 + $0x18] sm:$0xff]  ;;  %v4015_v7 = vld [vmem:[%s3998_s25 + $0x20] sm:$0xff]  ;;  %v8235_v13 = vrot.slane %v4001_v2, 7  ;;  %v8234_v14 = vrot.slane %v4004_v3, 7  ;;  %v4064_v26 = vmul.f32 %v4023_v9, %v4009_v5 }
  0x14   : > { %8561 = vst [vmem:[#allocation5_spill] sm:$0xff] %v4009_v5  ;;  %8562 = vst [vmem:[#allocation6_spill] sm:$0xff] %v4012_v6  ;;  %v4018_v8 = vld [vmem:[%s3998_s25 + $0x28] sm:$0xff]  ;;  %v4026_v10 = vld [vmem:[%s3998_s25 + $0x30] sm:$0xff]  ;;  %v8233_v18 = vrot.slane %v4009_v5, 7  ;;  %v8232_v19 = vrot.slane %v4012_v6, 7  ;;  %v4080_v33 = vmul.f32 %v4023_v9, %v4012_v6 }
  0x15   : > { %8563 = vst [vmem:[#allocation7_spill] sm:$0xff] %v4015_v7  ;;  %8564 = vst [vmem:[#allocation8_spill] sm:$0xff] %v4018_v8  ;;  %v4029_v11 = vld [vmem:[%s3998_s25 + $0x38] sm:$0xff]  ;;  %v4032_v12 = vld [vmem:[%s3998_s25 + $0x40] sm:$0xff]  ;;  %v8231_v24 = vrot.slane %v4015_v7, 7  ;;  %v8230_v25 = vrot.slane %v4018_v8, 7  ;;  %v4100_v40 = vsel %vm292_vm1, %v8235_v13, %v8234_v14 }
  0x16   : > { %8566 = vst [vmem:[#allocation10_spill] sm:$0xff] %v4026_v10  ;;  %8567 = vst [vmem:[#allocation11_spill] sm:$0xff] %v4029_v11  ;;  %v4037_v15 = vld [vmem:[%s3998_s25 + $0x48] sm:$0xff]  ;;  %v4040_v16 = vld [vmem:[%s3998_s25 + $0x50] sm:$0xff]  ;;  %v263_v30 = vrot.slane %v4026_v10, 7  ;;  %v264_v31 = vrot.slane %v4032_v12, 7  ;;  %v4120_v47 = vsel %vm292_vm1, %v8233_v18, %v8232_v19 }
  0x17   : > { %8568 = vst [vmem:[#allocation12_spill] sm:$0xff] %v4032_v12  ;;  %8569 = vst [vmem:[#allocation13_spill] sm:$0xff] %v4037_v15  ;;  %v4043_v17 = vld [vmem:[%s3998_s25 + $0x58] sm:$0xff]  ;;  %v4049_v20 = vld [vmem:[%s3998_s25 + $0x60] sm:$0xff]  ;;  %v279_v32 = vrot.slane %v4029_v11, 7  ;;  %v265_v37 = vrot.slane %v4040_v16, 7  ;;  %v4140_v54 = vsel %vm292_vm1, %v8231_v24, %v8230_v25 }
  0x18   : > { %8570 = vst [vmem:[#allocation14_spill] sm:$0xff] %v4040_v16  ;;  %8571 = vst [vmem:[#allocation15_spill] sm:$0xff] %v4043_v17  ;;  %v4052_v21 = vld [vmem:[%s3998_s25 + $0x68] sm:$0xff]  ;;  %v4055_v22 = vld [vmem:[%s3998_s25 + $0x70] sm:$0xff]  ;;  %v280_v38 = vrot.slane %v4037_v15, 7  ;;  %v281_v39 = vrot.slane %v4043_v17, 7 }
  0x19   : > { %8572 = vst [vmem:[#allocation16_spill] sm:$0xff] %v4049_v20  ;;  %8573 = vst [vmem:[#allocation17_spill] sm:$0xff] %v4052_v21  ;;  %v4067_v27 = vld [vmem:[%s3998_s25 + $0x78] sm:$0xff]  ;;  %v4070_v28 = vld [vmem:[%s3998_s25 + $0x80] sm:$0xff]  ;;  %v266_v44 = vrot.slane %v4049_v20, 7  ;;  %v267_v45 = vrot.slane %v4055_v22, 7  ;;  %v4156_v61 = vsel %vm292_vm1, %v263_v30, %v279_v32 }
  0x1a   : > { %8574 = vst [vmem:[#allocation18_spill] sm:$0xff] %v4055_v22  ;;  %8575 = vst [vmem:[#allocation19_spill] sm:$0xff] %v4058_v23  ;;  %v4073_v29 = vld [vmem:[%s3998_s25 + $0x88] sm:$0xff]  ;;  %v4083_v34 = vld [vmem:[%s3998_s25 + $0x90] sm:$0xff]  ;;  %v282_v46 = vrot.slane %v4052_v21, 7  ;;  %v268_v51 = vrot.slane %v4070_v28, 7  ;;  %v4169_v24 = vsel %vm292_vm1, %v264_v31, %v280_v38  ;;  %v4176_v13 = vsel %vm292_vm1, %v265_v37, %v281_v39 }
  0x1b   : > { %8576 = vst [vmem:[#allocation20_spill] sm:$0xff] %v4064_v26  ;;  %8577 = vst [vmem:[#allocation21_spill] sm:$0xff] %v4067_v27  ;;  %v4086_v35 = vld [vmem:[%s3998_s25 + $0x98] sm:$0xff]  ;;  %v4089_v36 = vld [vmem:[%s3998_s25 + $0xa0] sm:$0xff]  ;;  %v283_v52 = vrot.slane %v4067_v27, 7  ;;  %v284_v53 = vrot.slane %v4073_v29, 7 }
  0x1c   : > { %8578 = vst [vmem:[#allocation22_spill] sm:$0xff] %v4070_v28  ;;  %8579 = vst [vmem:[#allocation23_spill] sm:$0xff] %v4073_v29  ;;  %v4103_v41 = vld [vmem:[%s3998_s25 + $0xa8] sm:$0xff]  ;;  %v4106_v42 = vld [vmem:[%s3998_s25 + $0xb0] sm:$0xff]  ;;  %v269_v58 = vrot.slane %v4083_v34, 7  ;;  %v270_v59 = vrot.slane %v4089_v36, 7 }
  0x1d   : > { %8580 = vst [vmem:[#allocation24_spill] sm:$0xff] %v4080_v33  ;;  %8581 = vst [vmem:[#allocation25_spill] sm:$0xff] %v4083_v34  ;;  %v4109_v43 = vld [vmem:[%s3998_s25 + $0xb8] sm:$0xff]  ;;  %v4123_v48 = vld [vmem:[%s3998_s25 + $0xc0] sm:$0xff]  ;;  %v285_v60 = vrot.slane %v4086_v35, 7  ;;  %v271_v0 = vrot.slane %v4106_v42, 7 }
  0x1e   : > { %8582 = vst [vmem:[#allocation26_spill] sm:$0xff] %v4086_v35  ;;  %8583 = vst [vmem:[#allocation27_spill] sm:$0xff] %v4089_v36  ;;  %v4126_v49 = vld [vmem:[%s3998_s25 + $0xc8] sm:$0xff]  ;;  %v4129_v50 = vld [vmem:[%s3998_s25 + $0xd0] sm:$0xff]  ;;  %v286_v1 = vrot.slane %v4103_v41, 7  ;;  %v287_v25 = vrot.slane %v4109_v43, 7 }
  0x1f   : > { %8584 = vst [vmem:[#allocation28_spill] sm:$0xff] %v4100_v40  ;;  %8585 = vst [vmem:[#allocation29_spill] sm:$0xff] %v4103_v41  ;;  %v4143_v55 = vld [vmem:[%s3998_s25 + $0xd8] sm:$0xff]  ;;  %v4146_v56 = vld [vmem:[%s3998_s25 + $0xe0] sm:$0xff]  ;;  %v272_v19 = vrot.slane %v4123_v48, 7  ;;  %v273_v18 = vrot.slane %v4129_v50, 7  ;;  %v4197_v40 = vsel %vm292_vm1, %v269_v58, %v285_v60 }
  0x20   : > { %8586 = vst [vmem:[#allocation30_spill] sm:$0xff] %v4106_v42  ;;  %8587 = vst [vmem:[#allocation31_spill] sm:$0xff] %v4109_v43  ;;  %v4149_v57 = vld [vmem:[%s3998_s25 + $0xe8] sm:$0xff]  ;;  %v4159_v62 = vld [vmem:[%s3998_s25 + $0xf0] sm:$0xff]  ;;  %v288_v14 = vrot.slane %v4126_v49, 7  ;;  %v274_v33 = vrot.slane %v4146_v56, 7  ;;  %v4201_v23 = vsel %vm292_vm1, %v270_v59, %v286_v1 }
  0x21   : > { %8588 = vst [vmem:[#allocation32_spill] sm:$0xff] %v4120_v47  ;;  %8589 = vst [vmem:[#allocation33_spill] sm:$0xff] %v4123_v48  ;;  %v4162_v63 = vld [vmem:[%s3998_s25 + $0xf8] sm:$0xff]  ;;  %v289_v26 = vrot.slane %v4143_v55, 7  ;;  %v290_v9 = vrot.slane %v4149_v57, 7  ;;  %v4189_v47 = vsel %vm292_vm1, %v267_v45, %v283_v52 }
  0x22   : > { %8590 = vst [vmem:[#allocation34_spill] sm:$0xff] %v4126_v49  ;;  %8591 = vst [vmem:[#allocation35_spill] sm:$0xff] %v4129_v50 }
  0x23   : > { %8592 = vst [vmem:[#allocation36_spill] sm:$0xff] %v4140_v54  ;;  %8593 = vst [vmem:[#allocation37_spill] sm:$0xff] %v4143_v55  ;;  %v291_v54 = vrot.slane %v4162_v63, 7 }
  0x24   : > { %8594 = vst [vmem:[#allocation38_spill] sm:$0xff] %v4146_v56  ;;  %8595 = vst [vmem:[#allocation39_spill] sm:$0xff] %v4149_v57 }
  0x25   : > { %8596 = vst [vmem:[#allocation40_spill] sm:$0xff] %v4156_v61  ;;  %8597 = vst [vmem:[#allocation41_spill] sm:$0xff] %v4159_v62  ;;  %v4183_v61 = vsel %vm292_vm1, %v266_v44, %v282_v46 }
  0x26   : > { %8598 = vst [vmem:[#allocation42_spill] sm:$0xff] %v4162_v63  ;;  %8599 = vst [vmem:[#allocation43_spill] sm:$0xff] %v4169_v24  ;;  %v275_v24 = vrot.slane %v4159_v62, 7  ;;  %v4209_v63 = vsel %vm292_vm1, %v272_v19, %v288_v14 }
  0x27   : > { %8600 = vst [vmem:[#allocation44_spill] sm:$0xff] %v4176_v13  ;;  %8601 = vst [vmem:[#allocation45_spill] sm:$0xff] %v4183_v61  ;;  %v4193_v13 = vsel %vm292_vm1, %v268_v51, %v284_v53  ;;  %v4205_v61 = vsel %vm292_vm1, %v271_v0, %v287_v25 }
  0x28   : > { %8602 = vst [vmem:[#allocation46_spill] sm:$0xff] %v4189_v47  ;;  %8603 = vst [vmem:[#allocation47_spill] sm:$0xff] %v4193_v13  ;;  %v4213_v47 = vsel %vm292_vm1, %v273_v18, %v289_v26  ;;  %v4217_v13 = vsel %vm292_vm1, %v274_v33, %v290_v9 }
  0x29   : > { %8604 = vst [vmem:[#allocation48_spill] sm:$0xff] %v4197_v40  ;;  %8605 = vst [vmem:[#allocation49_spill] sm:$0xff] %v4201_v23  ;;  %v4221_v40 = vsel %vm292_vm1, %v275_v24, %v291_v54  ;;  %v8611_v23 = vrot.slane %v4001_v2, 7 }
  0x2a   : > { %8606 = vst [vmem:[#allocation50_spill] sm:$0xff] %v4205_v61  ;;  %8607 = vst [vmem:[#allocation51_spill] sm:$0xff] %v4209_v63  ;;  %v8612_v61 = vrot.slane %v4004_v3, 7  ;;  %v8613_v63 = vrot.slane %v4009_v5, 7 }
  0x2b   : > { %8608 = vst [vmem:[#allocation52_spill] sm:$0xff] %v4213_v47  ;;  %8609 = vst [vmem:[#allocation53_spill] sm:$0xff] %v4217_v13  ;;  %v8614_v47 = vrot.slane %v4012_v6, 7  ;;  %v8615_v13 = vrot.slane %v4015_v7, 7 }
  0x2c   : > { %8610 = vst [vmem:[#allocation54_spill] sm:$0xff] %v4221_v40  ;;  %v4229_v57 = vsel %vm292_vm1, %v8612_v61, %v8611_v23  ;;  %v8616_v40 = vrot.slane %v4018_v8, 7  ;;  %v4249_v23 = vsel %vm292_vm1, %v279_v32, %v263_v30  ;;  %v4253_v61 = vsel %vm292_vm1, %v280_v38, %v264_v31 }
  0x2d   : > { %v4237_v55 = vsel %vm292_vm1, %v8614_v47, %v8613_v63  ;;  %v4258_v47 = vsel %vm292_vm1, %v281_v39, %v265_v37  ;;  %v4262_v63 = vsel %vm292_vm1, %v282_v46, %v266_v44  ;;  %v4270_v30 = vsel %vm292_vm1, %v284_v53, %v268_v51 }
  0x2e   : > { %v4245_v49 = vsel %vm292_vm1, %v8616_v40, %v8615_v13  ;;  %v4266_v13 = vsel %vm292_vm1, %v283_v52, %v267_v45  ;;  %v4274_v31 = vsel %vm292_vm1, %v285_v60, %v269_v58  ;;  %v4278_v32 = vsel %vm292_vm1, %v286_v1, %v270_v59 }
  0x2f   : > { %v4282_v37 = vsel %vm292_vm1, %v287_v25, %v271_v0  ;;  %v4286_v38 = vsel %vm292_vm1, %v288_v14, %v272_v19  ;;  %v4290_v39 = vsel %vm292_vm1, %v289_v26, %v273_v18  ;;  %v4294_v40 = vsel %vm292_vm1, %v290_v9, %v274_v33 }
  0x30   : > { %8617 = vst [vmem:[#allocation55_spill] sm:$0xff] %v4286_v38  ;;  %8618 = vst [vmem:[#allocation56_spill] sm:$0xff] %v4290_v39  ;;  %v4298_v44 = vsel %vm292_vm1, %v291_v54, %v275_v24  ;;  %v325_v45 = vrot.slane %v4001_v2, 1  ;;  %v326_v25 = vrot.slane %v4009_v5, 1  ;;  %v327_v46 = vrot.slane %v4015_v7, 1  ;;  %v8682_v4 = vld [vmem:[#allocation48_spill] sm:$0xff] }
  0x31   : > { %8619 = vst [vmem:[#allocation57_spill] sm:$0xff] %v4294_v40  ;;  %8620 = vst [vmem:[#allocation58_spill] sm:$0xff] %v4298_v44  ;;  %v328_v14 = vrot.slane %v4026_v10, 1  ;;  %v329_v19 = vrot.slane %v4032_v12, 1  ;;  %v330_v18 = vrot.slane %v4040_v16, 1  ;;  %v331_v26 = vrot.slane %v4049_v20, 1 }
  0x32   : > { %v332_v9 = vrot.slane %v4055_v22, 1  ;;  %v333_v33 = vrot.slane %v4070_v28, 1  ;;  %v334_v24 = vrot.slane %v4083_v34, 1  ;;  %v335_v51 = vrot.slane %v4089_v36, 1  ;;  %v8621_v28 = vld [vmem:[#allocation34_spill] sm:$0xff]  ;;  %v8622_v20 = vld [vmem:[#allocation37_spill] sm:$0xff] }
  0x33   : > { %v336_v52 = vrot.slane %v4106_v42, 1  ;;  %v337_v53 = vrot.slane %v4123_v48, 1  ;;  %v338_v54 = vrot.slane %v4129_v50, 1  ;;  %v339_v58 = vrot.slane %v4146_v56, 1 }
  0x34   : > { %v340_v59 = vrot.slane %v4159_v62, 1  ;;  %v341_v60 = vrot.slane %v4004_v3, 1  ;;  %v342_v0 = vrot.slane %v4012_v6, 1  ;;  %v343_v1 = vrot.slane %v4018_v8, 1 }
  0x35   : > { %v344_v5 = vrot.slane %v4029_v11, 1  ;;  %v345_v36 = vrot.slane %v4037_v15, 1  ;;  %v346_v48 = vrot.slane %v4043_v17, 1  ;;  %v347_v50 = vrot.slane %v4052_v21, 1  ;;  %v8623_v15 = vld [vmem:[#allocation39_spill] sm:$0xff]  ;;  %v8624_v11 = vld [vmem:[#allocation42_spill] sm:$0xff] }
  0x36   : > { %v348_v56 = vrot.slane %v4067_v27, 1  ;;  %v349_v62 = vrot.slane %v4073_v29, 1  ;;  %v350_v42 = vrot.slane %v4086_v35, 1  ;;  %v351_v6 = vrot.slane %v4103_v41, 1  ;;  %v8634_v27 = vld [vmem:[#allocation19_spill] sm:$0xff] }
  0x37   : > { %v352_v34 = vrot.slane %v4109_v43, 1  ;;  %v353_v22 = vrot.slane %v8621_v28, 1  ;;  %v354_v16 = vrot.slane %v8622_v20, 1  ;;  %v355_v12 = vrot.slane %v8623_v15, 1 }
  0x38   : > { %v356_v17 = vrot.slane %v8624_v11, 1  ;;  %v4335_v21 = vsel %vm357_vm2, %v325_v45, %v341_v60  ;;  %v4339_v29 = vsel %vm357_vm2, %v326_v25, %v342_v0  ;;  %v4343_v41 = vsel %vm357_vm2, %v327_v46, %v343_v1 }
  0x39   : > { %8625 = vst [vmem:[#allocation59_spill] sm:$0xff] %v4335_v21  ;;  %8626 = vst [vmem:[#allocation60_spill] sm:$0xff] %v4339_v29  ;;  %v4347_v28 = vsel %vm357_vm2, %v328_v14, %v344_v5  ;;  %v4351_v15 = vsel %vm357_vm2, %v329_v19, %v345_v36  ;;  %v4355_v11 = vsel %vm357_vm2, %v330_v18, %v346_v48  ;;  %vm425_vm4 = vcmp.eq.s32.totalorder %v8634_v27, 15 }
  0x3a   : > { %8627 = vst [vmem:[#allocation61_spill] sm:$0xff] %v4343_v41  ;;  %8628 = vst [vmem:[#allocation62_spill] sm:$0xff] %v4347_v28  ;;  %v4359_v20 = vsel %vm357_vm2, %v331_v26, %v347_v50  ;;  %v4363_v43 = vsel %vm357_vm2, %v332_v9, %v348_v56  ;;  %v4367_v35 = vsel %vm357_vm2, %v333_v33, %v349_v62 }
  0x3b   : > { %8629 = vst [vmem:[#allocation63_spill] sm:$0xff] %v4351_v15  ;;  %8630 = vst [vmem:[#allocation64_spill] sm:$0xff] %v4355_v11  ;;  %v4372_v10 = vsel %vm357_vm2, %v334_v24, %v350_v42  ;;  %v4376_v8 = vsel %vm357_vm2, %v335_v51, %v351_v6  ;;  %v4380_v7 = vsel %vm357_vm2, %v336_v52, %v352_v34 }
  0x3c   : > { %8631 = vst [vmem:[#allocation65_spill] sm:$0xff] %v4359_v20  ;;  %8632 = vst [vmem:[#allocation66_spill] sm:$0xff] %v4363_v43  ;;  %v4384_v3 = vsel %vm357_vm2, %v337_v53, %v353_v22  ;;  %v4388_v2 = vsel %vm357_vm2, %v338_v54, %v354_v16  ;;  %v4392_v27 = vsel %vm357_vm2, %v339_v58, %v355_v12 }
  0x3d   : > { %8633 = vst [vmem:[#allocation67_spill] sm:$0xff] %v4367_v35  ;;  %8635 = vst [vmem:[#allocation68_spill] sm:$0xff] %v4372_v10  ;;  %v4396_v44 = vsel %vm357_vm2, %v340_v59, %v356_v17  ;;  %v374_v40 = vsel %vm357_vm2, %v341_v60, %v325_v45  ;;  %v375_v39 = vsel %vm357_vm2, %v342_v0, %v326_v25  ;;  %v8672_v0 = vld [vmem:[#allocation43_spill] sm:$0xff] }
  0x3e   : > { %8636 = vst [vmem:[#allocation69_spill] sm:$0xff] %v4376_v8  ;;  %8637 = vst [vmem:[#allocation70_spill] sm:$0xff] %v4380_v7  ;;  %v378_v38 = vsel %vm357_vm2, %v345_v36, %v329_v19  ;;  %v381_v45 = vsel %vm357_vm2, %v348_v56, %v332_v9  ;;  %v382_v25 = vsel %vm357_vm2, %v349_v62, %v333_v33  ;;  %v8663_v33 = vld [vmem:[#allocation28_spill] sm:$0xff] }
  0x3f   : > { %8638 = vst [vmem:[#allocation71_spill] sm:$0xff] %v4384_v3  ;;  %8639 = vst [vmem:[#allocation72_spill] sm:$0xff] %v4388_v2  ;;  %v376_v3 = vsel %vm357_vm2, %v343_v1, %v327_v46  ;;  %v377_v2 = vsel %vm357_vm2, %v344_v5, %v328_v14  ;;  %v383_v46 = vsel %vm357_vm2, %v350_v42, %v334_v24  ;;  %v8674_v1 = vld [vmem:[#allocation44_spill] sm:$0xff] }
  0x40   : > { %8640 = vst [vmem:[#allocation73_spill] sm:$0xff] %v4392_v27  ;;  %8641 = vst [vmem:[#allocation74_spill] sm:$0xff] %v4396_v44  ;;  %v379_v27 = vsel %vm357_vm2, %v346_v48, %v330_v18  ;;  %v380_v44 = vsel %vm357_vm2, %v347_v50, %v331_v26  ;;  %v384_v5 = vsel %vm357_vm2, %v351_v6, %v335_v51 }
  0x41   : > { %v385_v36 = vsel %vm357_vm2, %v352_v34, %v336_v52  ;;  %v386_v48 = vsel %vm357_vm2, %v353_v22, %v337_v53  ;;  %v387_v50 = vsel %vm357_vm2, %v354_v16, %v338_v54  ;;  %v388_v56 = vsel %vm357_vm2, %v355_v12, %v339_v58  ;;  %v8666_v52 = vld [vmem:[#allocation32_spill] sm:$0xff] }
  0x42   : > { %v389_v62 = vsel %vm357_vm2, %v356_v17, %v340_v59  ;;  %v4434_v6 = vsel %vm390_vm3, %v4335_v21, %v4229_v57  ;;  %v4440_v22 = vsel %vm390_vm3, %v4339_v29, %v4237_v55  ;;  %v4446_v12 = vsel %vm390_vm3, %v4343_v41, %v4245_v49  ;;  %v8668_v54 = vld [vmem:[#allocation36_spill] sm:$0xff] }
  0x43   : > { %8642 = vst [vmem:[#allocation75_spill] sm:$0xff] %v4440_v22  ;;  %8643 = vst [vmem:[#allocation76_spill] sm:$0xff] %v4446_v12  ;;  %v4452_v16 = vsel %vm390_vm3, %v4347_v28, %v4249_v23  ;;  %v4458_v17 = vsel %vm390_vm3, %v4351_v15, %v4253_v61  ;;  %v4464_v34 = vsel %vm390_vm3, %v4355_v11, %v4258_v47  ;;  %v8653_v47 = vld [vmem:[#allocation55_spill] sm:$0xff]  ;;  %v8670_v59 = vld [vmem:[#allocation40_spill] sm:$0xff] }
  0x44   : > { %8644 = vst [vmem:[#allocation77_spill] sm:$0xff] %v4452_v16  ;;  %8645 = vst [vmem:[#allocation78_spill] sm:$0xff] %v4458_v17  ;;  %v4470_v42 = vsel %vm390_vm3, %v4359_v20, %v4262_v63  ;;  %v4476_v49 = vsel %vm390_vm3, %v4363_v43, %v4266_v13  ;;  %v4482_v55 = vsel %vm390_vm3, %v4367_v35, %v4270_v30  ;;  %v8655_v30 = vld [vmem:[#allocation56_spill] sm:$0xff] }
  0x45   : > { %8646 = vst [vmem:[#allocation79_spill] sm:$0xff] %v4464_v34  ;;  %8647 = vst [vmem:[#allocation80_spill] sm:$0xff] %v4470_v42  ;;  %v4488_v57 = vsel %vm390_vm3, %v4372_v10, %v4274_v31  ;;  %v4494_v23 = vsel %vm390_vm3, %v4376_v8, %v4278_v32  ;;  %v4500_v61 = vsel %vm390_vm3, %v4380_v7, %v4282_v37  ;;  %v8658_v32 = vld [vmem:[#allocation57_spill] sm:$0xff]  ;;  %v8661_v37 = vld [vmem:[#allocation58_spill] sm:$0xff] }
  0x46   : > { %8648 = vst [vmem:[#allocation81_spill] sm:$0xff] %v4476_v49  ;;  %8649 = vst [vmem:[#allocation82_spill] sm:$0xff] %v4482_v55  ;;  %v8654_v63 = vld [vmem:[#allocation71_spill] sm:$0xff]  ;;  %v8656_v31 = vld [vmem:[#allocation72_spill] sm:$0xff]  ;;  %v4529_v51 = vsel %vm425_vm4, %v8663_v33, %v374_v40  ;;  %v4534_v53 = vsel %vm425_vm4, %v8666_v52, %v375_v39  ;;  %v4539_v58 = vsel %vm425_vm4, %v8668_v54, %v376_v3 }
  0x47   : > { %8650 = vst [vmem:[#allocation83_spill] sm:$0xff] %v4488_v57  ;;  %8651 = vst [vmem:[#allocation84_spill] sm:$0xff] %v4494_v23  ;;  %v4506_v13 = vsel %vm390_vm3, %v8654_v63, %v8653_v47  ;;  %v4512_v14 = vsel %vm390_vm3, %v8656_v31, %v8655_v30  ;;  %v8659_v19 = vld [vmem:[#allocation73_spill] sm:$0xff]  ;;  %v8662_v26 = vld [vmem:[#allocation74_spill] sm:$0xff]  ;;  %v4544_v60 = vsel %vm425_vm4, %v8670_v59, %v377_v2 }
  0x48   : > { %8652 = vst [vmem:[#allocation85_spill] sm:$0xff] %v4500_v61  ;;  %8657 = vst [vmem:[#allocation55_spill] sm:$0xff] %v4512_v14  ;;  %v4518_v18 = vsel %vm390_vm3, %v8659_v19, %v8658_v32  ;;  %v4524_v9 = vsel %vm390_vm3, %v8662_v26, %v8661_v37  ;;  %v4549_v40 = vsel %vm425_vm4, %v8672_v0, %v378_v38  ;;  %v3632_v39 = vld [vmem:[%s8225_s1] ss:$0 sm:$0xff]  ;;  %v8676_v3 = vld [vmem:[#allocation45_spill] sm:$0xff] }
  0x49   : > { %8660 = vst [vmem:[#allocation56_spill] sm:$0xff] %v4518_v18  ;;  %8665 = vst [vmem:[#allocation57_spill] sm:$0xff] %v4529_v51  ;;  %v4557_v47 = vsel %vm425_vm4, %v8674_v1, %v379_v27  ;;  %v4562_v30 = vsel %vm425_vm4, %v8676_v3, %v380_v44  ;;  %v8678_v2 = vld [vmem:[#allocation46_spill] sm:$0xff]  ;;  %v8680_v38 = vld [vmem:[#allocation47_spill] sm:$0xff]  ;;  %v4577_v27 = vsel %vm425_vm4, %v8682_v4, %v383_v46 }
  0x4a   : > { %8667 = vst [vmem:[#allocation58_spill] sm:$0xff] %v4534_v53  ;;  %8669 = vst [vmem:[#allocation28_spill] sm:$0xff] %v4539_v58  ;;  %v4567_v32 = vsel %vm425_vm4, %v8678_v2, %v381_v45  ;;  %v4572_v37 = vsel %vm425_vm4, %v8680_v38, %v382_v25  ;;  %v8684_v26 = vld [vmem:[#allocation49_spill] sm:$0xff]  ;;  %v8686_v19 = vld [vmem:[#allocation50_spill] sm:$0xff]  ;;  %v4631_v24 = vmul.f32 %v3632_v39, %v8670_v59 }
  0x4b   : > { %8671 = vst [vmem:[#allocation86_spill] sm:$0xff] %v4544_v60  ;;  %8673 = vst [vmem:[#allocation87_spill] sm:$0xff] %v4549_v40  ;;  %v4582_v44 = vsel %vm425_vm4, %v8684_v26, %v384_v5  ;;  %v4587_v45 = vsel %vm425_vm4, %v8686_v19, %v385_v36  ;;  %v8688_v31 = vld [vmem:[#allocation51_spill] sm:$0xff]  ;;  %v8690_v63 = vld [vmem:[#allocation52_spill] sm:$0xff]  ;;  %v4640_v8 = vmul.f32 %v3632_v39, %v4464_v34 }
  0x4c   : > { %8675 = vst [vmem:[#allocation88_spill] sm:$0xff] %v4557_v47  ;;  %8677 = vst [vmem:[#allocation89_spill] sm:$0xff] %v4562_v30  ;;  %v4592_v25 = vsel %vm425_vm4, %v8688_v31, %v386_v48  ;;  %v4597_v46 = vsel %vm425_vm4, %v8690_v63, %v387_v50  ;;  %v8692_v7 = vld [vmem:[#allocation53_spill] sm:$0xff]  ;;  %v4613_v48 = vmul.f32 %v3632_v39, %v8666_v52  ;;  %v3634_v40 = vld [vmem:[%s8225_s1 + $0x3] ss:$0 sm:$0xff] }
  0x4d   : > { %8679 = vst [vmem:[#allocation90_spill] sm:$0xff] %v4567_v32  ;;  %8681 = vst [vmem:[#allocation91_spill] sm:$0xff] %v4572_v37  ;;  %v4602_v5 = vsel %vm425_vm4, %v8692_v7, %v388_v56  ;;  %v4619_v50 = vmul.f32 %v3632_v39, %v8663_v33  ;;  %v4622_v56 = vmul.f32 %v3632_v39, %v4446_v12 }
  0x4e   : > { %8683 = vst [vmem:[#allocation92_spill] sm:$0xff] %v4577_v27  ;;  %8685 = vst [vmem:[#allocation93_spill] sm:$0xff] %v4582_v44  ;;  %v8694_v44 = vld [vmem:[#allocation54_spill] sm:$0xff]  ;;  %v4643_v27 = vmul.f32 %v3632_v39, %v8674_v1  ;;  %v4646_v10 = vmul.f32 %v3632_v39, %v4470_v42  ;;  %v4649_v37 = vmul.f32 %v3632_v39, %v8676_v3 }
  0x4f   : > { %8687 = vst [vmem:[#allocation94_spill] sm:$0xff] %v4587_v45  ;;  %8689 = vst [vmem:[#allocation95_spill] sm:$0xff] %v4592_v25  ;;  %v4607_v36 = vsel %vm425_vm4, %v8694_v44, %v389_v62  ;;  %v4610_v45 = vmul.f32 %v3632_v39, %v4440_v22  ;;  %v4616_v25 = vmul.f32 %v3632_v39, %v4434_v6 }
  0x50   : > { %8691 = vst [vmem:[#allocation52_spill] sm:$0xff] %v4597_v46  ;;  %8693 = vst [vmem:[#allocation96_spill] sm:$0xff] %v4602_v5  ;;  %v4625_v5 = vmul.f32 %v3632_v39, %v8668_v54  ;;  %v4628_v62 = vmul.f32 %v3632_v39, %v4452_v16  ;;  %v4637_v46 = vmul.f32 %v3632_v39, %v8672_v0 }
  0x51   : > { %8695 = vst [vmem:[#allocation54_spill] sm:$0xff] %v4607_v36  ;;  %v4634_v36 = vmul.f32 %v3632_v39, %v4458_v17  ;;  %v4652_v35 = vmul.f32 %v3632_v39, %v4476_v49  ;;  %v4655_v32 = vmul.f32 %v3632_v39, %v8678_v2  ;;  %v4658_v43 = vmul.f32 %v3632_v39, %v4482_v55 }
  0x52   : > { %v4661_v30 = vmul.f32 %v3632_v39, %v8680_v38  ;;  %v4664_v20 = vmul.f32 %v3632_v39, %v4488_v57  ;;  %v4667_v47 = vmul.f32 %v3632_v39, %v8682_v4  ;;  %v4670_v11 = vmul.f32 %v3632_v39, %v4494_v23 }
  0x53   : > { %v4676_v15 = vmul.f32 %v3632_v39, %v8684_v26  ;;  %v4679_v60 = vmul.f32 %v3632_v39, %v4500_v61  ;;  %v4682_v28 = vmul.f32 %v3632_v39, %v8686_v19  ;;  %v4685_v58 = vmul.f32 %v3632_v39, %v4506_v13 }
  0x54   : > { %8696 = vst [vmem:[#allocation97_spill] sm:$0xff] %v4670_v11  ;;  %v4688_v41 = vmul.f32 %v3632_v39, %v8688_v31  ;;  %v4691_v51 = vmul.f32 %v3632_v39, %v4512_v14  ;;  %v4694_v21 = vmul.f32 %v3632_v39, %v8690_v63  ;;  %v4697_v53 = vmul.f32 %v3632_v39, %v4518_v18 }
  0x55   : > { %8697 = vst [vmem:[#allocation98_spill] sm:$0xff] %v4676_v15  ;;  %8698 = vst [vmem:[#allocation99_spill] sm:$0xff] %v4679_v60  ;;  %v4700_v29 = vmul.f32 %v3632_v39, %v8692_v7  ;;  %v504_v60 = vmul.f32 %v3634_v40, %v8663_v33  ;;  %v507_v15 = vmul.f32 %v3634_v40, %v4446_v12 }
  0x56   : > { %8699 = vst [vmem:[#allocation100_spill] sm:$0xff] %v4682_v28  ;;  %8700 = vst [vmem:[#allocation101_spill] sm:$0xff] %v4685_v58  ;;  %v503_v28 = vmul.f32 %v3634_v40, %v4434_v6  ;;  %v505_v58 = vmul.f32 %v3634_v40, %v4440_v22  ;;  %v510_v11 = vmul.f32 %v3634_v40, %v8670_v59 }
  0x57   : > { %8701 = vst [vmem:[#allocation102_spill] sm:$0xff] %v4688_v41  ;;  %8702 = vst [vmem:[#allocation103_spill] sm:$0xff] %v4691_v51  ;;  %v506_v41 = vmul.f32 %v3634_v40, %v8666_v52  ;;  %v508_v51 = vmul.f32 %v3634_v40, %v8668_v54  ;;  %v512_v39 = vmul.f32 %v3634_v40, %v8672_v0 }
  0x58   : > { %8703 = vst [vmem:[#allocation104_spill] sm:$0xff] %v4694_v21  ;;  %8704 = vst [vmem:[#allocation105_spill] sm:$0xff] %v4697_v53  ;;  %v509_v21 = vmul.f32 %v3634_v40, %v4452_v16  ;;  %v511_v53 = vmul.f32 %v3634_v40, %v4458_v17  ;;  %v513_v6 = vmul.f32 %v3634_v40, %v4464_v34 }
  0x59   : > { %v514_v33 = vmul.f32 %v3634_v40, %v8674_v1  ;;  %v515_v22 = vmul.f32 %v3634_v40, %v4470_v42  ;;  %v516_v52 = vmul.f32 %v3634_v40, %v8676_v3  ;;  %v517_v12 = vmul.f32 %v3634_v40, %v4476_v49 }
  0x5a   : > { %v518_v54 = vmul.f32 %v3634_v40, %v8678_v2  ;;  %v519_v16 = vmul.f32 %v3634_v40, %v4482_v55  ;;  %v520_v59 = vmul.f32 %v3634_v40, %v8680_v38  ;;  %v521_v17 = vmul.f32 %v3634_v40, %v4488_v57 }
  0x5b   : > { %v522_v0 = vmul.f32 %v3634_v40, %v8682_v4  ;;  %v523_v34 = vmul.f32 %v3634_v40, %v4494_v23  ;;  %v524_v1 = vmul.f32 %v3634_v40, %v8684_v26  ;;  %v525_v42 = vmul.f32 %v3634_v40, %v4500_v61 }
  0x5c   : > { %v526_v3 = vmul.f32 %v3634_v40, %v8686_v19  ;;  %v527_v49 = vmul.f32 %v3634_v40, %v4506_v13  ;;  %v528_v2 = vmul.f32 %v3634_v40, %v8688_v31  ;;  %v529_v55 = vmul.f32 %v3634_v40, %v4512_v14 }
  0x5d   : > { %v530_v38 = vmul.f32 %v3634_v40, %v8690_v63  ;;  %v531_v57 = vmul.f32 %v3634_v40, %v4518_v18  ;;  %v532_v4 = vmul.f32 %v3634_v40, %v8692_v7  ;;  %v533_v23 = vmul.f32 %v3634_v40, %v4524_v9 }
  0x5e   : > { %v534_v26 = vmul.f32 %v3634_v40, %v8694_v44  ;;  %v4735_v61 = vadd.f32 %v503_v28, %v4610_v45  ;;  %v4738_v19 = vadd.f32 %v504_v60, %v4613_v48  ;;  %v4741_v31 = vadd.f32 %v505_v58, %v4616_v25 }
  0x5f   : > { %v4744_v14 = vadd.f32 %v506_v41, %v4619_v50  ;;  %v4747_v18 = vadd.f32 %v507_v15, %v4610_v45  ;;  %v4750_v7 = vadd.f32 %v508_v51, %v4613_v48  ;;  %v4753_v40 = vadd.f32 %v509_v21, %v4622_v56  ;;  %v8724_v50 = vld [vmem:[#allocation32_spill] sm:$0xff] }
  0x60   : > { %v4756_v28 = vadd.f32 %v510_v11, %v4625_v5  ;;  %v4759_v60 = vadd.f32 %v511_v53, %v4628_v62  ;;  %v4762_v58 = vadd.f32 %v512_v39, %v4631_v24  ;;  %v4765_v41 = vadd.f32 %v513_v6, %v4634_v36  ;;  %v8723_v36 = vld [vmem:[#allocation75_spill] sm:$0xff]  ;;  %v8725_v56 = vld [vmem:[#allocation76_spill] sm:$0xff]  ;;  %v8727_v39 = vld [vmem:[#allocation77_spill] sm:$0xff] }
  0x61   : > { %v4768_v15 = vadd.f32 %v514_v33, %v4637_v46  ;;  %v4771_v51 = vadd.f32 %v515_v22, %v4640_v8  ;;  %v4774_v21 = vadd.f32 %v516_v52, %v4643_v27  ;;  %v4777_v11 = vadd.f32 %v517_v12, %v4646_v10  ;;  %v8713_v12 = vld [vmem:[#allocation97_spill] sm:$0xff]  ;;  %v8726_v62 = vld [vmem:[#allocation36_spill] sm:$0xff]  ;;  %v8729_v33 = vld [vmem:[#allocation78_spill] sm:$0xff] }
  0x62   : > { %v4780_v53 = vadd.f32 %v518_v54, %v4649_v37  ;;  %v4783_v24 = vadd.f32 %v519_v16, %v4652_v35  ;;  %v4786_v45 = vadd.f32 %v520_v59, %v4655_v32  ;;  %v4789_v25 = vadd.f32 %v521_v17, %v4658_v43  ;;  %v3636_v35 = vld [vmem:[%s8225_s1 + $0x6] ss:$0 sm:$0xff]  ;;  %v8716_v43 = vld [vmem:[#allocation99_spill] sm:$0xff]  ;;  %v8717_v59 = vld [vmem:[#allocation100_spill] sm:$0xff] }
  0x63   : > { %8705 = vst [vmem:[#allocation106_spill] sm:$0xff] %v4777_v11  ;;  %v4792_v8 = vadd.f32 %v522_v0, %v4661_v30  ;;  %v4795_v22 = vadd.f32 %v523_v34, %v4664_v20  ;;  %v4798_v10 = vadd.f32 %v524_v1, %v4667_v47  ;;  %v4801_v52 = vadd.f32 %v525_v42, %v8713_v12  ;;  %v8715_v16 = vld [vmem:[#allocation98_spill] sm:$0xff]  ;;  %v8718_v30 = vld [vmem:[#allocation101_spill] sm:$0xff]  ;;  %v8720_v37 = vld [vmem:[#allocation103_spill] sm:$0xff] }
  0x64   : > { %8706 = vst [vmem:[#allocation107_spill] sm:$0xff] %v4780_v53  ;;  %8707 = vst [vmem:[#allocation108_spill] sm:$0xff] %v4783_v24  ;;  %v558_v54 = vadd.f32 %v526_v3, %v8715_v16  ;;  %v559_v17 = vadd.f32 %v527_v49, %v8716_v43  ;;  %v560_v0 = vadd.f32 %v528_v2, %v8717_v59  ;;  %v8719_v20 = vld [vmem:[#allocation102_spill] sm:$0xff]  ;;  %v8721_v47 = vld [vmem:[#allocation104_spill] sm:$0xff] }
  0x65   : > { %8708 = vst [vmem:[#allocation109_spill] sm:$0xff] %v4786_v45  ;;  %8709 = vst [vmem:[#allocation110_spill] sm:$0xff] %v4789_v25  ;;  %v561_v32 = vadd.f32 %v529_v55, %v8718_v30  ;;  %v562_v34 = vadd.f32 %v530_v38, %v8719_v20  ;;  %v563_v1 = vadd.f32 %v531_v57, %v8720_v37  ;;  %v8722_v42 = vld [vmem:[#allocation105_spill] sm:$0xff]  ;;  %v8728_v6 = vld [vmem:[#allocation40_spill] sm:$0xff] }
  0x66   : > { %8710 = vst [vmem:[#allocation111_spill] sm:$0xff] %v4792_v8  ;;  %8711 = vst [vmem:[#allocation112_spill] sm:$0xff] %v4795_v22  ;;  %v564_v27 = vadd.f32 %v532_v4, %v8721_v47  ;;  %v565_v46 = vadd.f32 %v533_v23, %v8722_v42  ;;  %v566_v5 = vadd.f32 %v534_v26, %v4700_v29  ;;  %v8730_v12 = vld [vmem:[#allocation43_spill] sm:$0xff]  ;;  %v8732_v43 = vld [vmem:[#allocation44_spill] sm:$0xff] }
  0x67   : > { %8712 = vst [vmem:[#allocation113_spill] sm:$0xff] %v4798_v10  ;;  %8714 = vst [vmem:[#allocation97_spill] sm:$0xff] %v4801_v52  ;;  %v575_v48 = vmul.f32 %v3636_v35, %v8723_v36  ;;  %v576_v3 = vmul.f32 %v3636_v35, %v8724_v50  ;;  %v577_v49 = vmul.f32 %v3636_v35, %v8725_v56  ;;  %v8731_v16 = vld [vmem:[#allocation79_spill] sm:$0xff]  ;;  %v8733_v26 = vld [vmem:[#allocation80_spill] sm:$0xff] }
  0x68   : > { %v578_v2 = vmul.f32 %v3636_v35, %v8726_v62  ;;  %v579_v55 = vmul.f32 %v3636_v35, %v8727_v39  ;;  %v580_v38 = vmul.f32 %v3636_v35, %v8728_v6  ;;  %v581_v57 = vmul.f32 %v3636_v35, %v8729_v33  ;;  %v8734_v30 = vld [vmem:[#allocation45_spill] sm:$0xff]  ;;  %v8736_v42 = vld [vmem:[#allocation46_spill] sm:$0xff]  ;;  %v8738_v62 = vld [vmem:[#allocation47_spill] sm:$0xff] }
  0x69   : > { %v582_v4 = vmul.f32 %v3636_v35, %v8730_v12  ;;  %v583_v23 = vmul.f32 %v3636_v35, %v8731_v16  ;;  %v584_v29 = vmul.f32 %v3636_v35, %v8732_v43  ;;  %v585_v59 = vmul.f32 %v3636_v35, %v8733_v26  ;;  %v8735_v37 = vld [vmem:[#allocation81_spill] sm:$0xff]  ;;  %v8737_v50 = vld [vmem:[#allocation82_spill] sm:$0xff]  ;;  %v8739_v6 = vld [vmem:[#allocation83_spill] sm:$0xff] }
  0x6a   : > { %v586_v20 = vmul.f32 %v3636_v35, %v8734_v30  ;;  %v587_v47 = vmul.f32 %v3636_v35, %v8735_v37  ;;  %v588_v36 = vmul.f32 %v3636_v35, %v8736_v42  ;;  %v589_v56 = vmul.f32 %v3636_v35, %v8737_v50  ;;  %v8740_v52 = vld [vmem:[#allocation48_spill] sm:$0xff]  ;;  %v8742_v22 = vld [vmem:[#allocation49_spill] sm:$0xff]  ;;  %v8744_v25 = vld [vmem:[#allocation50_spill] sm:$0xff] }
  0x6b   : > { %v590_v39 = vmul.f32 %v3636_v35, %v8738_v62  ;;  %v591_v33 = vmul.f32 %v3636_v35, %v8739_v6  ;;  %v592_v12 = vmul.f32 %v3636_v35, %v8740_v52  ;;  %v8741_v10 = vld [vmem:[#allocation84_spill] sm:$0xff]  ;;  %v594_v43 = vmul.f32 %v3636_v35, %v8742_v22  ;;  %v8743_v8 = vld [vmem:[#allocation85_spill] sm:$0xff]  ;;  %v8745_v45 = vld [vmem:[#allocation51_spill] sm:$0xff] }
  0x6c   : > { %v593_v16 = vmul.f32 %v3636_v35, %v8741_v10  ;;  %v595_v26 = vmul.f32 %v3636_v35, %v8743_v8  ;;  %v596_v30 = vmul.f32 %v3636_v35, %v8744_v25  ;;  %v597_v37 = vmul.f32 %v3636_v35, %v4506_v13  ;;  %v8746_v24 = vld [vmem:[#allocation55_spill] sm:$0xff]  ;;  %v8747_v53 = vld [vmem:[#allocation56_spill] sm:$0xff]  ;;  %v8748_v11 = vld [vmem:[#allocation53_spill] sm:$0xff] }
  0x6d   : > { %v598_v42 = vmul.f32 %v3636_v35, %v8745_v45  ;;  %v599_v50 = vmul.f32 %v3636_v35, %v8746_v24  ;;  %v600_v62 = vmul.f32 %v3636_v35, %v8690_v63  ;;  %v601_v6 = vmul.f32 %v3636_v35, %v8747_v53 }
  0x6e   : > { %v602_v52 = vmul.f32 %v3636_v35, %v8748_v11  ;;  %v603_v10 = vmul.f32 %v3636_v35, %v4524_v9  ;;  %v604_v22 = vmul.f32 %v3636_v35, %v8694_v44  ;;  %v605_v8 = vadd.f32 %v575_v48, %v4735_v61  ;;  %v8749_v35 = vld [vmem:[#allocation106_spill] sm:$0xff]  ;;  %v8750_v48 = vld [vmem:[#allocation107_spill] sm:$0xff] }
  0x6f   : > { %v606_v25 = vadd.f32 %v576_v3, %v4738_v19  ;;  %v607_v13 = vadd.f32 %v577_v49, %v4741_v31  ;;  %v608_v45 = vadd.f32 %v578_v2, %v4744_v14  ;;  %v609_v24 = vadd.f32 %v579_v55, %v4747_v18  ;;  %v8751_v3 = vld [vmem:[#allocation108_spill] sm:$0xff]  ;;  %v8752_v49 = vld [vmem:[#allocation109_spill] sm:$0xff]  ;;  %v8753_v2 = vld [vmem:[#allocation110_spill] sm:$0xff] }
  0x70   : > { %v610_v63 = vadd.f32 %v580_v38, %v4750_v7  ;;  %v611_v53 = vadd.f32 %v581_v57, %v4753_v40  ;;  %v612_v11 = vadd.f32 %v582_v4, %v4756_v28  ;;  %v613_v9 = vadd.f32 %v583_v23, %v4759_v60  ;;  %v8754_v55 = vld [vmem:[#allocation111_spill] sm:$0xff]  ;;  %v8755_v38 = vld [vmem:[#allocation112_spill] sm:$0xff]  ;;  %v8756_v57 = vld [vmem:[#allocation113_spill] sm:$0xff] }
  0x71   : > { %v614_v44 = vadd.f32 %v584_v29, %v4762_v58  ;;  %v615_v61 = vadd.f32 %v585_v59, %v4765_v41  ;;  %v616_v19 = vadd.f32 %v586_v20, %v4768_v15  ;;  %v617_v31 = vadd.f32 %v587_v47, %v4771_v51  ;;  %v8757_v4 = vld [vmem:[#allocation97_spill] sm:$0xff] }
  0x72   : > { %v618_v14 = vadd.f32 %v588_v36, %v4774_v21  ;;  %v619_v18 = vadd.f32 %v589_v56, %v8749_v35  ;;  %v620_v7 = vadd.f32 %v590_v39, %v8750_v48  ;;  %v621_v40 = vadd.f32 %v591_v33, %v8751_v3  ;;  %v8758_v33 = vld [vmem:[#allocation2_spill] sm:$0xff]  ;;  %v8760_v35 = vld [vmem:[#allocation3_spill] sm:$0xff]  ;;  %v8762_v48 = vld [vmem:[#allocation8_spill] sm:$0xff] }
  0x73   : > { %v622_v28 = vadd.f32 %v592_v12, %v8752_v49  ;;  %v623_v60 = vadd.f32 %v593_v16, %v8753_v2  ;;  %v624_v58 = vadd.f32 %v594_v43, %v8754_v55  ;;  %v625_v41 = vadd.f32 %v595_v26, %v8755_v38  ;;  %v8759_v12 = vld [vmem:[#allocation9_spill] sm:$0xff]  ;;  %v8761_v26 = vld [vmem:[#allocation7_spill] sm:$0xff]  ;;  %v8771_v3 = vld [vmem:[#allocation18_spill] sm:$0xff] }
  0x74   : > { %v626_v15 = vadd.f32 %v596_v30, %v8756_v57  ;;  %v627_v51 = vadd.f32 %v597_v37, %v8757_v4  ;;  %v628_v23 = vadd.f32 %v598_v42, %v558_v54  ;;  %v629_v21 = vadd.f32 %v599_v50, %v559_v17  ;;  %v8763_v17 = vld [vmem:[#allocation10_spill] sm:$0xff]  ;;  %v8768_v50 = vld [vmem:[#allocation15_spill] sm:$0xff]  ;;  %v8772_v2 = vld [vmem:[#allocation21_spill] sm:$0xff] }
  0x75   : > { %v630_v29 = vadd.f32 %v600_v62, %v560_v0  ;;  %v631_v59 = vadd.f32 %v601_v6, %v561_v32  ;;  %v632_v20 = vadd.f32 %v602_v52, %v562_v34  ;;  %v633_v47 = vadd.f32 %v603_v10, %v563_v1  ;;  %v8764_v32 = vld [vmem:[#allocation11_spill] sm:$0xff]  ;;  %v8765_v1 = vld [vmem:[#allocation12_spill] sm:$0xff]  ;;  %v8767_v37 = vld [vmem:[#allocation14_spill] sm:$0xff] }
  0x76   : > { %v634_v36 = vadd.f32 %v604_v22, %v564_v27  ;;  %v635_v56 = vadd.f32 %v601_v6, %v565_v46  ;;  %v636_v39 = vadd.f32 %v602_v52, %v566_v5  ;;  %v647_v16 = vmul.f32 %v8759_v12, %v8758_v33  ;;  %v8766_v46 = vld [vmem:[#allocation13_spill] sm:$0xff]  ;;  %v8769_v6 = vld [vmem:[#allocation16_spill] sm:$0xff]  ;;  %v8773_v38 = vld [vmem:[#allocation22_spill] sm:$0xff] }
  0x77   : > { %v648_v43 = vmul.f32 %v8759_v12, %v8760_v35  ;;  %v649_v30 = vmul.f32 %v8759_v12, %v8761_v26  ;;  %v650_v54 = vmul.f32 %v8759_v12, %v8762_v48  ;;  %v651_v0 = vmul.f32 %v8759_v12, %v8763_v17  ;;  %v8770_v10 = vld [vmem:[#allocation17_spill] sm:$0xff]  ;;  %v8774_v4 = vld [vmem:[#allocation23_spill] sm:$0xff]  ;;  %v8779_v48 = vld [vmem:[#allocation30_spill] sm:$0xff] }
  0x78   : > { %v652_v34 = vmul.f32 %v8759_v12, %v8764_v32  ;;  %v653_v27 = vmul.f32 %v8759_v12, %v8765_v1  ;;  %v654_v5 = vmul.f32 %v8759_v12, %v8766_v46  ;;  %v655_v42 = vmul.f32 %v8759_v12, %v8767_v37  ;;  %v8775_v46 = vld [vmem:[#allocation25_spill] sm:$0xff]  ;;  %v8776_v1 = vld [vmem:[#allocation26_spill] sm:$0xff]  ;;  %v8777_v32 = vld [vmem:[#allocation27_spill] sm:$0xff] }
  0x79   : > { %v656_v62 = vmul.f32 %v8759_v12, %v8768_v50  ;;  %v657_v52 = vmul.f32 %v8759_v12, %v8769_v6  ;;  %v658_v22 = vmul.f32 %v8759_v12, %v8770_v10  ;;  %v659_v49 = vmul.f32 %v8759_v12, %v8771_v3  ;;  %v8778_v17 = vld [vmem:[#allocation29_spill] sm:$0xff]  ;;  %v8780_v26 = vld [vmem:[#allocation31_spill] sm:$0xff]  ;;  %v8782_v33 = vld [vmem:[#allocation34_spill] sm:$0xff] }
  0x7a   : > { %v660_v55 = vmul.f32 %v8759_v12, %v8772_v2  ;;  %v661_v57 = vmul.f32 %v8759_v12, %v8773_v38  ;;  %v662_v37 = vmul.f32 %v8759_v12, %v8774_v4  ;;  %v663_v50 = vmul.f32 %v8759_v12, %v8775_v46  ;;  %v8781_v35 = vld [vmem:[#allocation33_spill] sm:$0xff] }
  0x7b   : > { %v664_v6 = vmul.f32 %v8759_v12, %v8776_v1  ;;  %v665_v10 = vmul.f32 %v8759_v12, %v8777_v32  ;;  %v666_v3 = vmul.f32 %v8759_v12, %v8778_v17  ;;  %v667_v2 = vmul.f32 %v8759_v12, %v8779_v48  ;;  %v8783_v1 = vld [vmem:[#allocation35_spill] sm:$0xff]  ;;  %v8784_v17 = vld [vmem:[#allocation37_spill] sm:$0xff] }
  0x7c   : > { %v668_v38 = vmul.f32 %v8759_v12, %v8780_v26  ;;  %v669_v4 = vmul.f32 %v8759_v12, %v8781_v35  ;;  %v670_v46 = vmul.f32 %v8759_v12, %v8782_v33  ;;  %v671_v32 = vmul.f32 %v8759_v12, %v8783_v1  ;;  %v8785_v26 = vld [vmem:[#allocation38_spill] sm:$0xff]  ;;  %v8786_v33 = vld [vmem:[#allocation39_spill] sm:$0xff] }
  0x7d   : > { %v672_v48 = vmul.f32 %v8759_v12, %v8784_v17  ;;  %v673_v35 = vmul.f32 %v8759_v12, %v8785_v26  ;;  %v674_v1 = vmul.f32 %v8759_v12, %v8786_v33  ;;  %v8787_v17 = vld [vmem:[#allocation20_spill] sm:$0xff] }
  0x7e   : > { %v4925_v26 = vadd.f32 %v8787_v17, %v605_v8  ;;  %v8789_v12 = vld [vmem:[#allocation24_spill] sm:$0xff]  ;;  %v4930_v8 = vadd.f32 %v647_v16, %v607_v13  ;;  %v4932_v17 = vadd.f32 %v648_v43, %v608_v45  ;;  %v4940_v13 = vadd.f32 %v649_v30, %v611_v53 }
  0x7f   : > { %v4928_v33 = vadd.f32 %v8789_v12, %v606_v25  ;;  %v8795_v25 = vld [vmem:[#allocation24_spill] sm:$0xff]  ;;  %v4942_v16 = vadd.f32 %v650_v54, %v612_v11  ;;  %v4946_v43 = vadd.f32 %v652_v34, %v614_v44  ;;  %v4948_v45 = vadd.f32 %v653_v27, %v615_v61 }
  0x80   : > { %8788 = vst [vmem:[#allocation98_spill] sm:$0xff] %v4925_v26  ;;  %8791 = vst [vmem:[#allocation100_spill] sm:$0xff] %v4930_v8  ;;  %v8793_v26 = vld [vmem:[#allocation20_spill] sm:$0xff]  ;;  %v4944_v8 = vadd.f32 %v651_v0, %v613_v9  ;;  %v4960_v53 = vadd.f32 %v659_v49, %v621_v40  ;;  %v4962_v11 = vadd.f32 %v660_v55, %v622_v28 }
  0x81   : > { %8790 = vst [vmem:[#allocation99_spill] sm:$0xff] %v4928_v33  ;;  %8792 = vst [vmem:[#allocation101_spill] sm:$0xff] %v4932_v17  ;;  %v4935_v12 = vadd.f32 %v8793_v26, %v609_v24  ;;  %v4938_v33 = vadd.f32 %v8795_v25, %v610_v63  ;;  %v4950_v17 = vadd.f32 %v654_v5, %v616_v19  ;;  %v3640_v19 = vld [vmem:[%s8225_s1 + $0x4] ss:$0 sm:$0xff] }
  0x82   : > { %v4952_v24 = vadd.f32 %v655_v42, %v617_v31  ;;  %v4954_v26 = vadd.f32 %v656_v62, %v618_v14  ;;  %v4958_v63 = vadd.f32 %v658_v22, %v620_v7  ;;  %v4964_v9 = vadd.f32 %v661_v57, %v623_v60 }
  0x83   : > { %8794 = vst [vmem:[#allocation102_spill] sm:$0xff] %v4935_v12  ;;  %v4956_v12 = vadd.f32 %v657_v52, %v619_v18  ;;  %v4966_v44 = vadd.f32 %v662_v37, %v624_v58  ;;  %v4968_v61 = vadd.f32 %v663_v50, %v625_v41  ;;  %v4973_v31 = vadd.f32 %v664_v6, %v626_v15  ;;  %v8815_v37 = vld [vmem:[#allocation14_spill] sm:$0xff]  ;;  %v8816_v50 = vld [vmem:[#allocation15_spill] sm:$0xff]  ;;  %v8817_v6 = vld [vmem:[#allocation16_spill] sm:$0xff] }
  0x84   : > { %v4975_v14 = vadd.f32 %v665_v10, %v627_v51  ;;  %v4977_v18 = vadd.f32 %v666_v3, %v628_v23  ;;  %v4979_v7 = vadd.f32 %v667_v2, %v629_v21  ;;  %v4981_v40 = vadd.f32 %v668_v38, %v630_v29  ;;  %v8805_v51 = vld [vmem:[#allocation2_spill] sm:$0xff]  ;;  %v8806_v23 = vld [vmem:[#allocation3_spill] sm:$0xff]  ;;  %v8807_v21 = vld [vmem:[#allocation5_spill] sm:$0xff] }
  0x85   : > { %v4983_v28 = vadd.f32 %v669_v4, %v631_v59  ;;  %v4985_v60 = vadd.f32 %v670_v46, %v632_v20  ;;  %v4987_v58 = vadd.f32 %v671_v32, %v633_v47  ;;  %v4989_v41 = vadd.f32 %v672_v48, %v634_v36  ;;  %v8808_v29 = vld [vmem:[#allocation6_spill] sm:$0xff]  ;;  %v8809_v59 = vld [vmem:[#allocation7_spill] sm:$0xff]  ;;  %v8810_v20 = vld [vmem:[#allocation8_spill] sm:$0xff] }
  0x86   : > { %8796 = vst [vmem:[#allocation103_spill] sm:$0xff] %v4977_v18  ;;  %8797 = vst [vmem:[#allocation104_spill] sm:$0xff] %v4979_v7  ;;  %v4991_v30 = vadd.f32 %v673_v35, %v635_v56  ;;  %v4993_v15 = vadd.f32 %v674_v1, %v636_v39  ;;  %v715_v54 = vmul.f32 %v3640_v19, %v8805_v51  ;;  %v8811_v47 = vld [vmem:[#allocation10_spill] sm:$0xff]  ;;  %v8812_v36 = vld [vmem:[#allocation11_spill] sm:$0xff] }
  0x87   : > { %8798 = vst [vmem:[#allocation105_spill] sm:$0xff] %v4981_v40  ;;  %8799 = vst [vmem:[#allocation75_spill] sm:$0xff] %v4983_v28  ;;  %v716_v0 = vmul.f32 %v3640_v19, %v8806_v23  ;;  %v717_v34 = vmul.f32 %v3640_v19, %v8807_v21  ;;  %v718_v27 = vmul.f32 %v3640_v19, %v8808_v29  ;;  %v8813_v56 = vld [vmem:[#allocation12_spill] sm:$0xff]  ;;  %v8814_v39 = vld [vmem:[#allocation13_spill] sm:$0xff] }
  0x88   : > { %8800 = vst [vmem:[#allocation32_spill] sm:$0xff] %v4985_v60  ;;  %8801 = vst [vmem:[#allocation76_spill] sm:$0xff] %v4987_v58  ;;  %v719_v5 = vmul.f32 %v3640_v19, %v8809_v59  ;;  %v720_v46 = vmul.f32 %v3640_v19, %v8810_v20  ;;  %v721_v32 = vmul.f32 %v3640_v19, %v8811_v47  ;;  %v8818_v10 = vld [vmem:[#allocation17_spill] sm:$0xff]  ;;  %v8819_v3 = vld [vmem:[#allocation18_spill] sm:$0xff] }
  0x89   : > { %8802 = vst [vmem:[#allocation36_spill] sm:$0xff] %v4989_v41  ;;  %8803 = vst [vmem:[#allocation77_spill] sm:$0xff] %v4991_v30  ;;  %v722_v48 = vmul.f32 %v3640_v19, %v8812_v36  ;;  %v723_v35 = vmul.f32 %v3640_v19, %v8813_v56  ;;  %v724_v1 = vmul.f32 %v3640_v19, %v8814_v39  ;;  %v8820_v2 = vld [vmem:[#allocation21_spill] sm:$0xff]  ;;  %v8821_v38 = vld [vmem:[#allocation22_spill] sm:$0xff] }
  0x8a   : > { %8804 = vst [vmem:[#allocation40_spill] sm:$0xff] %v4993_v15  ;;  %v725_v42 = vmul.f32 %v3640_v19, %v8815_v37  ;;  %v726_v62 = vmul.f32 %v3640_v19, %v8816_v50  ;;  %v727_v52 = vmul.f32 %v3640_v19, %v8817_v6  ;;  %v728_v22 = vmul.f32 %v3640_v19, %v8818_v10  ;;  %v8822_v4 = vld [vmem:[#allocation23_spill] sm:$0xff]  ;;  %v8823_v51 = vld [vmem:[#allocation25_spill] sm:$0xff]  ;;  %v8824_v56 = vld [vmem:[#allocation26_spill] sm:$0xff] }
  0x8b   : > { %v729_v49 = vmul.f32 %v3640_v19, %v8819_v3  ;;  %v730_v55 = vmul.f32 %v3640_v19, %v8820_v2  ;;  %v731_v57 = vmul.f32 %v3640_v19, %v8821_v38  ;;  %v732_v25 = vmul.f32 %v3640_v19, %v8822_v4  ;;  %v8825_v36 = vld [vmem:[#allocation27_spill] sm:$0xff]  ;;  %v8826_v47 = vld [vmem:[#allocation29_spill] sm:$0xff]  ;;  %v8827_v20 = vld [vmem:[#allocation30_spill] sm:$0xff] }
  0x8c   : > { %v733_v23 = vmul.f32 %v3640_v19, %v8823_v51  ;;  %v734_v39 = vmul.f32 %v3640_v19, %v8824_v56  ;;  %v735_v37 = vmul.f32 %v3640_v19, %v8825_v36  ;;  %v736_v50 = vmul.f32 %v3640_v19, %v8826_v47  ;;  %v8828_v59 = vld [vmem:[#allocation31_spill] sm:$0xff]  ;;  %v8829_v29 = vld [vmem:[#allocation33_spill] sm:$0xff]  ;;  %v8830_v21 = vld [vmem:[#allocation34_spill] sm:$0xff] }
  0x8d   : > { %v737_v6 = vmul.f32 %v3640_v19, %v8827_v20  ;;  %v738_v10 = vmul.f32 %v3640_v19, %v8828_v59  ;;  %v739_v3 = vmul.f32 %v3640_v19, %v8829_v29  ;;  %v740_v2 = vmul.f32 %v3640_v19, %v8830_v21  ;;  %v8831_v15 = vld [vmem:[#allocation35_spill] sm:$0xff]  ;;  %v8832_v30 = vld [vmem:[#allocation37_spill] sm:$0xff]  ;;  %v8833_v41 = vld [vmem:[#allocation38_spill] sm:$0xff] }
  0x8e   : > { %v741_v38 = vmul.f32 %v3640_v19, %v8831_v15  ;;  %v742_v4 = vmul.f32 %v3640_v19, %v8832_v30  ;;  %v743_v51 = vmul.f32 %v3640_v19, %v8833_v41  ;;  %v8834_v58 = vld [vmem:[#allocation39_spill] sm:$0xff]  ;;  %v8835_v60 = vld [vmem:[#allocation41_spill] sm:$0xff]  ;;  %v8836_v28 = vld [vmem:[#allocation42_spill] sm:$0xff] }
  0x8f   : > { %v744_v56 = vmul.f32 %v3640_v19, %v8834_v58  ;;  %v745_v36 = vmul.f32 %v3640_v19, %v8835_v60  ;;  %v746_v47 = vmul.f32 %v3640_v19, %v8836_v28  ;;  %v8837_v40 = vld [vmem:[#allocation98_spill] sm:$0xff]  ;;  %v8838_v59 = vld [vmem:[#allocation99_spill] sm:$0xff]  ;;  %v8839_v29 = vld [vmem:[#allocation100_spill] sm:$0xff]  ;;  %v5043_v58 = vadd.f32 %v720_v46, %v4938_v33 }
  0x90   : > { %v5028_v20 = vadd.f32 %v715_v54, %v8837_v40  ;;  %v5031_v7 = vadd.f32 %v716_v0, %v8838_v59  ;;  %v5034_v21 = vadd.f32 %v717_v34, %v8839_v29  ;;  %v8840_v15 = vld [vmem:[#allocation101_spill] sm:$0xff]  ;;  %v8841_v30 = vld [vmem:[#allocation102_spill] sm:$0xff]  ;;  %v5046_v19 = vadd.f32 %v721_v32, %v4940_v13  ;;  %v8842_v34 = vld [vmem:[#allocation103_spill] sm:$0xff] }
  0x91   : > { %v5037_v18 = vadd.f32 %v718_v27, %v8840_v15  ;;  %v5040_v41 = vadd.f32 %v719_v5, %v8841_v30  ;;  %v5049_v40 = vadd.f32 %v722_v48, %v4942_v16  ;;  %v5052_v54 = vadd.f32 %v723_v35, %v4944_v8  ;;  %v8844_v29 = vld [vmem:[#allocation104_spill] sm:$0xff]  ;;  %v8846_v27 = vld [vmem:[#allocation105_spill] sm:$0xff]  ;;  %v8848_v59 = vld [vmem:[#allocation75_spill] sm:$0xff] }
  0x92   : > { %v5055_v0 = vadd.f32 %v724_v1, %v4946_v43  ;;  %v5058_v15 = vadd.f32 %v725_v42, %v4948_v45  ;;  %v5061_v30 = vadd.f32 %v726_v62, %v4950_v17  ;;  %v5064_v33 = vadd.f32 %v727_v52, %v4952_v24  ;;  %v8850_v5 = vld [vmem:[#allocation32_spill] sm:$0xff]  ;;  %v8856_v35 = vld [vmem:[#allocation77_spill] sm:$0xff]  ;;  %v8861_v62 = vld [vmem:[#allocation6_spill] sm:$0xff] }
  0x93   : > { %v5067_v13 = vadd.f32 %v728_v22, %v4954_v26  ;;  %v5070_v16 = vadd.f32 %v729_v49, %v4956_v12  ;;  %v5073_v8 = vadd.f32 %v730_v55, %v4958_v63  ;;  %v5076_v43 = vadd.f32 %v731_v57, %v4960_v53  ;;  %v3642_v12 = vld [vmem:[%s8225_s1 + $0x7] ss:$0 sm:$0xff]  ;;  %v8852_v32 = vld [vmem:[#allocation76_spill] sm:$0xff]  ;;  %v8860_v42 = vld [vmem:[#allocation5_spill] sm:$0xff] }
  0x94   : > { %v5079_v45 = vadd.f32 %v732_v25, %v4962_v11  ;;  %v5082_v17 = vadd.f32 %v733_v23, %v4964_v9  ;;  %v5085_v24 = vadd.f32 %v734_v39, %v4966_v44  ;;  %v5088_v26 = vadd.f32 %v735_v37, %v4968_v61  ;;  %v8858_v1 = vld [vmem:[#allocation40_spill] sm:$0xff]  ;;  %v8862_v52 = vld [vmem:[#allocation7_spill] sm:$0xff]  ;;  %v8864_v49 = vld [vmem:[#allocation10_spill] sm:$0xff] }
  0x95   : > { %v768_v63 = vadd.f32 %v736_v50, %v4973_v31  ;;  %v769_v53 = vadd.f32 %v737_v6, %v4975_v14  ;;  %v5096_v11 = vadd.f32 %v738_v10, %v8842_v34  ;;  %v5099_v9 = vadd.f32 %v739_v3, %v8844_v29  ;;  %v8854_v31 = vld [vmem:[#allocation36_spill] sm:$0xff]  ;;  %v8865_v55 = vld [vmem:[#allocation11_spill] sm:$0xff]  ;;  %v8868_v25 = vld [vmem:[#allocation14_spill] sm:$0xff] }
  0x96   : > { %v5102_v44 = vadd.f32 %v740_v2, %v8846_v27  ;;  %v5105_v61 = vadd.f32 %v741_v38, %v8848_v59  ;;  %v5108_v46 = vadd.f32 %v742_v4, %v8850_v5  ;;  %v5111_v48 = vadd.f32 %v743_v51, %v8852_v32  ;;  %v8863_v22 = vld [vmem:[#allocation8_spill] sm:$0xff]  ;;  %v8867_v4 = vld [vmem:[#allocation13_spill] sm:$0xff]  ;;  %v8872_v5 = vld [vmem:[#allocation18_spill] sm:$0xff] }
  0x97   : > { %8843 = vst [vmem:[#allocation78_spill] sm:$0xff] %v5096_v11  ;;  %8845 = vst [vmem:[#allocation43_spill] sm:$0xff] %v5099_v9  ;;  %v5114_v14 = vadd.f32 %v744_v56, %v8854_v31  ;;  %v5117_v39 = vadd.f32 %v745_v36, %v8856_v35  ;;  %v5120_v37 = vadd.f32 %v746_v47, %v8858_v1  ;;  %v8866_v56 = vld [vmem:[#allocation12_spill] sm:$0xff]  ;;  %v8869_v47 = vld [vmem:[#allocation15_spill] sm:$0xff] }
  0x98   : > { %8847 = vst [vmem:[#allocation79_spill] sm:$0xff] %v5102_v44  ;;  %8849 = vst [vmem:[#allocation44_spill] sm:$0xff] %v5105_v61  ;;  %v787_v50 = vmul.f32 %v3642_v12, %v8860_v42  ;;  %v788_v6 = vmul.f32 %v3642_v12, %v8861_v62  ;;  %v789_v10 = vmul.f32 %v3642_v12, %v8862_v52  ;;  %v8870_v34 = vld [vmem:[#allocation16_spill] sm:$0xff]  ;;  %v8871_v27 = vld [vmem:[#allocation17_spill] sm:$0xff] }
  0x99   : > { %8851 = vst [vmem:[#allocation80_spill] sm:$0xff] %v5108_v46  ;;  %8853 = vst [vmem:[#allocation45_spill] sm:$0xff] %v5111_v48  ;;  %v790_v3 = vmul.f32 %v3642_v12, %v8863_v22  ;;  %v791_v2 = vmul.f32 %v3642_v12, %v8864_v49  ;;  %v792_v38 = vmul.f32 %v3642_v12, %v8865_v55  ;;  %v8873_v31 = vld [vmem:[#allocation21_spill] sm:$0xff]  ;;  %v8874_v1 = vld [vmem:[#allocation22_spill] sm:$0xff] }
  0x9a   : > { %8855 = vst [vmem:[#allocation81_spill] sm:$0xff] %v5114_v14  ;;  %8857 = vst [vmem:[#allocation46_spill] sm:$0xff] %v5117_v39  ;;  %v793_v57 = vmul.f32 %v3642_v12, %v8866_v56  ;;  %v794_v36 = vmul.f32 %v3642_v12, %v8867_v4  ;;  %v795_v51 = vmul.f32 %v3642_v12, %v8868_v25  ;;  %v8875_v62 = vld [vmem:[#allocation23_spill] sm:$0xff]  ;;  %v8876_v22 = vld [vmem:[#allocation25_spill] sm:$0xff] }
  0x9b   : > { %8859 = vst [vmem:[#allocation82_spill] sm:$0xff] %v5120_v37  ;;  %v796_v23 = vmul.f32 %v3642_v12, %v8869_v47  ;;  %v797_v29 = vmul.f32 %v3642_v12, %v8870_v34  ;;  %v798_v59 = vmul.f32 %v3642_v12, %v8871_v27  ;;  %v799_v32 = vmul.f32 %v3642_v12, %v8872_v5  ;;  %v8877_v55 = vld [vmem:[#allocation26_spill] sm:$0xff]  ;;  %v8878_v4 = vld [vmem:[#allocation27_spill] sm:$0xff]  ;;  %v8879_v37 = vld [vmem:[#allocation29_spill] sm:$0xff] }
  0x9c   : > { %v800_v35 = vmul.f32 %v3642_v12, %v8873_v31  ;;  %v801_v42 = vmul.f32 %v3642_v12, %v8874_v1  ;;  %v802_v52 = vmul.f32 %v3642_v12, %v8875_v62  ;;  %v803_v49 = vmul.f32 %v3642_v12, %v8876_v22  ;;  %v8880_v39 = vld [vmem:[#allocation30_spill] sm:$0xff]  ;;  %v8881_v14 = vld [vmem:[#allocation31_spill] sm:$0xff]  ;;  %v8882_v48 = vld [vmem:[#allocation33_spill] sm:$0xff] }
  0x9d   : > { %v804_v56 = vmul.f32 %v3642_v12, %v8877_v55  ;;  %v805_v25 = vmul.f32 %v3642_v12, %v8878_v4  ;;  %v806_v47 = vmul.f32 %v3642_v12, %v8879_v37  ;;  %v807_v34 = vmul.f32 %v3642_v12, %v8880_v39  ;;  %v8883_v46 = vld [vmem:[#allocation34_spill] sm:$0xff]  ;;  %v8884_v61 = vld [vmem:[#allocation35_spill] sm:$0xff]  ;;  %v8885_v44 = vld [vmem:[#allocation37_spill] sm:$0xff] }
  0x9e   : > { %v808_v27 = vmul.f32 %v3642_v12, %v8881_v14  ;;  %v809_v5 = vmul.f32 %v3642_v12, %v8882_v48  ;;  %v810_v31 = vmul.f32 %v3642_v12, %v8883_v46  ;;  %v811_v1 = vmul.f32 %v3642_v12, %v8884_v61  ;;  %v8886_v9 = vld [vmem:[#allocation38_spill] sm:$0xff]  ;;  %v8887_v11 = vld [vmem:[#allocation39_spill] sm:$0xff] }
  0x9f   : > { %v812_v62 = vmul.f32 %v3642_v12, %v8885_v44  ;;  %v813_v22 = vmul.f32 %v3642_v12, %v8886_v9  ;;  %v814_v55 = vmul.f32 %v3642_v12, %v8887_v11  ;;  %v815_v4 = vmul.f32 %v3642_v12, %v8835_v60  ;;  %v8923_v60 = vld [vmem:[#allocation66_spill] sm:$0xff] }
  0xa0   : > { %v816_v37 = vmul.f32 %v3642_v12, %v8836_v28  ;;  %v5153_v39 = vadd.f32 %v787_v50, %v5028_v20  ;;  %v5156_v14 = vadd.f32 %v788_v6, %v5031_v7  ;;  %v5159_v46 = vadd.f32 %v789_v10, %v5034_v21  ;;  %v8893_v6 = vld [vmem:[#allocation43_spill] sm:$0xff]  ;;  %v8924_v48 = vld [vmem:[#allocation90_spill] sm:$0xff] }
  0xa1   : > { %v5162_v61 = vadd.f32 %v790_v3, %v5037_v18  ;;  %v5165_v9 = vadd.f32 %v791_v2, %v5040_v41  ;;  %v5168_v11 = vadd.f32 %v792_v38, %v5043_v58  ;;  %v5171_v12 = vadd.f32 %v793_v57, %v5046_v19  ;;  %v8895_v10 = vld [vmem:[#allocation79_spill] sm:$0xff]  ;;  %v8897_v3 = vld [vmem:[#allocation44_spill] sm:$0xff]  ;;  %v8903_v57 = vld [vmem:[#allocation81_spill] sm:$0xff] }
  0xa2   : > { %v5174_v20 = vadd.f32 %v794_v36, %v5049_v40  ;;  %v5177_v7 = vadd.f32 %v795_v51, %v5052_v54  ;;  %v5180_v21 = vadd.f32 %v796_v23, %v5055_v0  ;;  %v5183_v18 = vadd.f32 %v797_v29, %v5058_v15  ;;  %v8905_v51 = vld [vmem:[#allocation46_spill] sm:$0xff] }
  0xa3   : > { %v5186_v41 = vadd.f32 %v798_v59, %v5061_v30  ;;  %v5189_v58 = vadd.f32 %v799_v32, %v5064_v33  ;;  %v5192_v19 = vadd.f32 %v800_v35, %v5067_v13  ;;  %v5195_v40 = vadd.f32 %v801_v42, %v5070_v16 }
  0xa4   : > { %v5198_v54 = vadd.f32 %v802_v52, %v5073_v8  ;;  %v5201_v0 = vadd.f32 %v803_v49, %v5076_v43  ;;  %v5204_v15 = vadd.f32 %v804_v56, %v5079_v45  ;;  %v5207_v30 = vadd.f32 %v805_v25, %v5082_v17  ;;  %v3644_v8 = vld [vmem:[%s8225_s1 + $0x2] ss:$0 sm:$0xff]  ;;  %v8914_v49 = vld [vmem:[#allocation28_spill] sm:$0xff] }
  0xa5   : > { %v5210_v33 = vadd.f32 %v806_v47, %v5085_v24  ;;  %v5213_v13 = vadd.f32 %v807_v34, %v5088_v26  ;;  %v5215_v16 = vadd.f32 %v808_v27, %v768_v63  ;;  %v5217_v50 = vadd.f32 %v809_v5, %v769_v53  ;;  %v8891_v43 = vld [vmem:[#allocation78_spill] sm:$0xff]  ;;  %v8899_v63 = vld [vmem:[#allocation80_spill] sm:$0xff]  ;;  %v8901_v53 = vld [vmem:[#allocation45_spill] sm:$0xff] }
  0xa6   : > { %v5223_v45 = vadd.f32 %v810_v31, %v8891_v43  ;;  %v5226_v17 = vadd.f32 %v811_v1, %v8893_v6  ;;  %v5229_v24 = vadd.f32 %v812_v62, %v8895_v10  ;;  %v5232_v26 = vadd.f32 %v813_v22, %v8897_v3  ;;  %v8907_v34 = vld [vmem:[#allocation82_spill] sm:$0xff]  ;;  %v8909_v27 = vld [vmem:[#allocation60_spill] sm:$0xff]  ;;  %v8911_v31 = vld [vmem:[#allocation59_spill] sm:$0xff] }
  0xa7   : > { %8888 = vst [vmem:[#allocation47_spill] sm:$0xff] %v5213_v13  ;;  %8889 = vst [vmem:[#allocation83_spill] sm:$0xff] %v5215_v16  ;;  %v5235_v2 = vadd.f32 %v814_v55, %v8899_v63  ;;  %v5238_v38 = vadd.f32 %v815_v4, %v8901_v53  ;;  %v5241_v36 = vadd.f32 %v816_v37, %v8903_v57  ;;  %v8910_v5 = vld [vmem:[#allocation58_spill] sm:$0xff]  ;;  %v8912_v1 = vld [vmem:[#allocation57_spill] sm:$0xff] }
  0xa8   : > { %8890 = vst [vmem:[#allocation48_spill] sm:$0xff] %v5217_v50  ;;  %8892 = vst [vmem:[#allocation84_spill] sm:$0xff] %v5223_v45  ;;  %v5244_v23 = vadd.f32 %v813_v22, %v8905_v51  ;;  %v5247_v29 = vadd.f32 %v814_v55, %v8907_v34  ;;  %v857_v59 = vmul.f32 %v3644_v8, %v8909_v27  ;;  %v8913_v62 = vld [vmem:[#allocation61_spill] sm:$0xff]  ;;  %v8915_v37 = vld [vmem:[#allocation62_spill] sm:$0xff] }
  0xa9   : > { %8894 = vst [vmem:[#allocation49_spill] sm:$0xff] %v5226_v17  ;;  %8896 = vst [vmem:[#allocation85_spill] sm:$0xff] %v5229_v24  ;;  %v858_v32 = vmul.f32 %v3644_v8, %v8910_v5  ;;  %v859_v35 = vmul.f32 %v3644_v8, %v8911_v31  ;;  %v860_v42 = vmul.f32 %v3644_v8, %v8912_v1  ;;  %v8916_v25 = vld [vmem:[#allocation86_spill] sm:$0xff]  ;;  %v8917_v47 = vld [vmem:[#allocation63_spill] sm:$0xff] }
  0xaa   : > { %8898 = vst [vmem:[#allocation50_spill] sm:$0xff] %v5232_v26  ;;  %8900 = vst [vmem:[#allocation51_spill] sm:$0xff] %v5235_v2  ;;  %v861_v52 = vmul.f32 %v3644_v8, %v8913_v62  ;;  %v862_v56 = vmul.f32 %v3644_v8, %v8914_v49  ;;  %v863_v4 = vmul.f32 %v3644_v8, %v8915_v37  ;;  %v8918_v55 = vld [vmem:[#allocation87_spill] sm:$0xff]  ;;  %v8919_v10 = vld [vmem:[#allocation64_spill] sm:$0xff] }
  0xab   : > { %8902 = vst [vmem:[#allocation55_spill] sm:$0xff] %v5238_v38  ;;  %8904 = vst [vmem:[#allocation56_spill] sm:$0xff] %v5241_v36  ;;  %v864_v22 = vmul.f32 %v3644_v8, %v8916_v25  ;;  %v865_v43 = vmul.f32 %v3644_v8, %v8917_v47  ;;  %v866_v6 = vmul.f32 %v3644_v8, %v8918_v55  ;;  %v8920_v63 = vld [vmem:[#allocation88_spill] sm:$0xff]  ;;  %v8921_v57 = vld [vmem:[#allocation65_spill] sm:$0xff] }
  0xac   : > { %8906 = vst [vmem:[#allocation53_spill] sm:$0xff] %v5244_v23  ;;  %8908 = vst [vmem:[#allocation106_spill] sm:$0xff] %v5247_v29  ;;  %v867_v3 = vmul.f32 %v3644_v8, %v8919_v10  ;;  %v868_v53 = vmul.f32 %v3644_v8, %v8920_v63  ;;  %v869_v51 = vmul.f32 %v3644_v8, %v8921_v57  ;;  %v8922_v34 = vld [vmem:[#allocation89_spill] sm:$0xff]  ;;  %v8925_v49 = vld [vmem:[#allocation67_spill] sm:$0xff] }
  0xad   : > { %v870_v28 = vmul.f32 %v3644_v8, %v8922_v34  ;;  %v871_v44 = vmul.f32 %v3644_v8, %v8923_v60  ;;  %v872_v29 = vmul.f32 %v3644_v8, %v8924_v48  ;;  %v873_v37 = vmul.f32 %v3644_v8, %v8925_v49  ;;  %v8926_v23 = vld [vmem:[#allocation91_spill] sm:$0xff]  ;;  %v8927_v36 = vld [vmem:[#allocation68_spill] sm:$0xff]  ;;  %v8929_v2 = vld [vmem:[#allocation69_spill] sm:$0xff] }
  0xae   : > { %v874_v25 = vmul.f32 %v3644_v8, %v8926_v23  ;;  %v875_v47 = vmul.f32 %v3644_v8, %v8927_v36  ;;  %v8928_v38 = vld [vmem:[#allocation92_spill] sm:$0xff]  ;;  %v877_v10 = vmul.f32 %v3644_v8, %v8929_v2  ;;  %v8930_v26 = vld [vmem:[#allocation93_spill] sm:$0xff]  ;;  %v8931_v62 = vld [vmem:[#allocation70_spill] sm:$0xff]  ;;  %v887_v2 = vadd.f32 %v857_v59, %v5153_v39 }
  0xaf   : > { %v876_v55 = vmul.f32 %v3644_v8, %v8928_v38  ;;  %v878_v63 = vmul.f32 %v3644_v8, %v8930_v26  ;;  %v879_v57 = vmul.f32 %v3644_v8, %v8931_v62  ;;  %v8932_v24 = vld [vmem:[#allocation94_spill] sm:$0xff]  ;;  %v8933_v5 = vld [vmem:[#allocation71_spill] sm:$0xff]  ;;  %v8935_v45 = vld [vmem:[#allocation72_spill] sm:$0xff]  ;;  %v888_v26 = vadd.f32 %v858_v32, %v5156_v14 }
  0xb0   : > { %v880_v34 = vmul.f32 %v3644_v8, %v8932_v24  ;;  %v881_v60 = vmul.f32 %v3644_v8, %v8933_v5  ;;  %v8934_v17 = vld [vmem:[#allocation95_spill] sm:$0xff]  ;;  %v883_v49 = vmul.f32 %v3644_v8, %v8935_v45  ;;  %v8936_v50 = vld [vmem:[#allocation52_spill] sm:$0xff]  ;;  %v8937_v16 = vld [vmem:[#allocation73_spill] sm:$0xff]  ;;  %v889_v62 = vadd.f32 %v859_v35, %v5159_v46 }
  0xb1   : > { %v882_v48 = vmul.f32 %v3644_v8, %v8934_v17  ;;  %v884_v23 = vmul.f32 %v3644_v8, %v8936_v50  ;;  %v885_v36 = vmul.f32 %v3644_v8, %v8937_v16  ;;  %v8938_v13 = vld [vmem:[#allocation96_spill] sm:$0xff]  ;;  %v890_v24 = vadd.f32 %v860_v42, %v5162_v61  ;;  %v5287_v45 = vld [vmem:[%s8225_s1 + $0x5] ss:$0 sm:$0xff]  ;;  %v8949_v42 = vld [vmem:[#allocation85_spill] sm:$0xff] }
  0xb2   : > { %v886_v38 = vmul.f32 %v3644_v8, %v8938_v13  ;;  %v891_v5 = vadd.f32 %v857_v59, %v5165_v9  ;;  %v892_v50 = vadd.f32 %v858_v32, %v5168_v11  ;;  %v893_v16 = vadd.f32 %v861_v52, %v5171_v12  ;;  %v8939_v59 = vld [vmem:[#allocation47_spill] sm:$0xff]  ;;  %v8948_v35 = vld [vmem:[#allocation58_spill] sm:$0xff] }
  0xb3   : > { %v5292_v8 = vadd.f32 %v862_v56, %v5174_v20  ;;  %v5295_v14 = vadd.f32 %v863_v4, %v5177_v7  ;;  %v5298_v46 = vadd.f32 %v864_v22, %v5180_v21  ;;  %v5301_v9 = vadd.f32 %v865_v43, %v5183_v18  ;;  %v8951_v56 = vld [vmem:[#allocation61_spill] sm:$0xff] }
  0xb4   : > { %v5304_v61 = vadd.f32 %v866_v6, %v5186_v41  ;;  %v5307_v39 = vadd.f32 %v867_v3, %v5189_v58  ;;  %v5310_v11 = vadd.f32 %v868_v53, %v5192_v19  ;;  %v5313_v12 = vadd.f32 %v869_v51, %v5195_v40  ;;  %v8952_v6 = vld [vmem:[#allocation50_spill] sm:$0xff]  ;;  %v8954_v3 = vld [vmem:[#allocation51_spill] sm:$0xff]  ;;  %v8962_v51 = vld [vmem:[#allocation28_spill] sm:$0xff] }
  0xb5   : > { %v927_v20 = vmul.f32 %v5287_v45, %v8911_v31  ;;  %v928_v7 = vmul.f32 %v5287_v45, %v8912_v1  ;;  %v5320_v21 = vadd.f32 %v870_v28, %v5198_v54  ;;  %v5323_v18 = vadd.f32 %v871_v44, %v5201_v0  ;;  %v8940_v28 = vld [vmem:[#allocation83_spill] sm:$0xff]  ;;  %v8942_v0 = vld [vmem:[#allocation48_spill] sm:$0xff]  ;;  %v8946_v31 = vld [vmem:[#allocation49_spill] sm:$0xff] }
  0xb6   : > { %v5326_v41 = vadd.f32 %v872_v29, %v5204_v15  ;;  %v929_v58 = vmul.f32 %v5287_v45, %v8909_v27  ;;  %v5331_v19 = vadd.f32 %v873_v37, %v5207_v30  ;;  %v5334_v40 = vadd.f32 %v874_v25, %v5210_v33  ;;  %v5345_v44 = vld [vmem:[%s8225_s1 + $0x8] ss:$0 sm:$0xff]  ;;  %v8944_v29 = vld [vmem:[#allocation84_spill] sm:$0xff] }
  0xb7   : > { %v5337_v32 = vadd.f32 %v875_v47, %v8939_v59  ;;  %v5340_v54 = vadd.f32 %v876_v55, %v8940_v28  ;;  %v5348_v15 = vadd.f32 %v877_v10, %v8942_v0  ;;  %v5351_v30 = vadd.f32 %v878_v63, %v8944_v29  ;;  %v8956_v53 = vld [vmem:[#allocation55_spill] sm:$0xff]  ;;  %v8966_v59 = vld [vmem:[#allocation86_spill] sm:$0xff] }
  0xb8   : > { %v5354_v33 = vadd.f32 %v879_v57, %v8946_v31  ;;  %v930_v1 = vmul.f32 %v5287_v45, %v8948_v35  ;;  %v5359_v52 = vadd.f32 %v880_v34, %v8949_v42  ;;  %v931_v37 = vmul.f32 %v5287_v45, %v8951_v56  ;;  %v8967_v31 = vld [vmem:[#allocation63_spill] sm:$0xff]  ;;  %v8969_v42 = vld [vmem:[#allocation64_spill] sm:$0xff] }
  0xb9   : > { %8941 = vst [vmem:[#allocation107_spill] sm:$0xff] %v5340_v54  ;;  %8943 = vst [vmem:[#allocation108_spill] sm:$0xff] %v5348_v15  ;;  %v959_v4 = vadd.f32 %v927_v20, %v887_v2  ;;  %v960_v25 = vadd.f32 %v928_v7, %v888_v26  ;;  %v961_v22 = vadd.f32 %v929_v58, %v889_v62  ;;  %v8958_v26 = vld [vmem:[#allocation56_spill] sm:$0xff]  ;;  %v8960_v62 = vld [vmem:[#allocation53_spill] sm:$0xff] }
  0xba   : > { %8945 = vst [vmem:[#allocation109_spill] sm:$0xff] %v5351_v30  ;;  %8947 = vst [vmem:[#allocation110_spill] sm:$0xff] %v5354_v33  ;;  %v999_v47 = vmul.f32 %v5345_v44, %v8909_v27  ;;  %v1000_v43 = vmul.f32 %v5345_v44, %v8948_v35  ;;  %v1001_v55 = vmul.f32 %v5345_v44, %v8951_v56  ;;  %v8963_v7 = vld [vmem:[#allocation106_spill] sm:$0xff]  ;;  %v8968_v35 = vld [vmem:[#allocation87_spill] sm:$0xff] }
  0xbb   : > { %8950 = vst [vmem:[#allocation111_spill] sm:$0xff] %v5359_v52  ;;  %v5370_v10 = vadd.f32 %v881_v60, %v8952_v6  ;;  %v5373_v63 = vadd.f32 %v882_v48, %v8954_v3  ;;  %v5376_v57 = vadd.f32 %v883_v49, %v8956_v53  ;;  %v5379_v2 = vadd.f32 %v884_v23, %v8958_v26  ;;  %v8965_v48 = vld [vmem:[#allocation62_spill] sm:$0xff]  ;;  %v8970_v6 = vld [vmem:[#allocation88_spill] sm:$0xff]  ;;  %v8980_v52 = vld [vmem:[#allocation93_spill] sm:$0xff] }
  0xbc   : > { %v5382_v27 = vadd.f32 %v885_v36, %v8960_v62  ;;  %v932_v34 = vmul.f32 %v5287_v45, %v8962_v51  ;;  %v962_v20 = vadd.f32 %v930_v1, %v890_v24  ;;  %v1002_v60 = vmul.f32 %v5345_v44, %v8962_v51  ;;  %v8982_v30 = vld [vmem:[#allocation70_spill] sm:$0xff] }
  0xbd   : > { %8953 = vst [vmem:[#allocation112_spill] sm:$0xff] %v5370_v10  ;;  %8955 = vst [vmem:[#allocation113_spill] sm:$0xff] %v5373_v63  ;;  %v5389_v58 = vadd.f32 %v886_v38, %v8963_v7  ;;  %v933_v49 = vmul.f32 %v5287_v45, %v8965_v48  ;;  %v934_v23 = vmul.f32 %v5287_v45, %v8966_v59  ;;  %v8975_v7 = vld [vmem:[#allocation67_spill] sm:$0xff]  ;;  %v8978_v63 = vld [vmem:[#allocation92_spill] sm:$0xff] }
  0xbe   : > { %8957 = vst [vmem:[#allocation97_spill] sm:$0xff] %v5376_v57  ;;  %8959 = vst [vmem:[#allocation9_spill] sm:$0xff] %v5379_v2  ;;  %v963_v28 = vadd.f32 %v931_v37, %v891_v5  ;;  %v1003_v36 = vmul.f32 %v5345_v44, %v8965_v48  ;;  %v5397_v0 = vadd.f32 %v999_v47, %v959_v4  ;;  %v8971_v37 = vld [vmem:[#allocation65_spill] sm:$0xff]  ;;  %v8977_v2 = vld [vmem:[#allocation68_spill] sm:$0xff] }
  0xbf   : > { %8961 = vst [vmem:[#allocation20_spill] sm:$0xff] %v5382_v27  ;;  %8964 = vst [vmem:[#allocation24_spill] sm:$0xff] %v5389_v58  ;;  %v5399_v29 = vadd.f32 %v1000_v43, %v960_v25  ;;  %v5401_v24 = vadd.f32 %v1001_v55, %v961_v22  ;;  %v935_v38 = vmul.f32 %v5287_v45, %v8967_v31  ;;  %v8972_v43 = vld [vmem:[#allocation89_spill] sm:$0xff]  ;;  %v8976_v58 = vld [vmem:[#allocation91_spill] sm:$0xff] }
  0xc0   : > { %v936_v1 = vmul.f32 %v5287_v45, %v8968_v35  ;;  %v937_v56 = vmul.f32 %v5287_v45, %v8969_v42  ;;  %v938_v5 = vmul.f32 %v5287_v45, %v8970_v6  ;;  %v939_v4 = vmul.f32 %v5287_v45, %v8971_v37 }
  0xc1   : > { %v964_v47 = vadd.f32 %v932_v34, %v892_v50  ;;  %v1004_v25 = vmul.f32 %v5345_v44, %v8966_v59  ;;  %v5415_v22 = vadd.f32 %v1002_v60, %v962_v20  ;;  %v940_v55 = vmul.f32 %v5287_v45, %v8972_v43  ;;  %v8973_v34 = vld [vmem:[#allocation66_spill] sm:$0xff] }
  0xc2   : > { %v965_v3 = vadd.f32 %v933_v49, %v893_v16  ;;  %v1005_v53 = vmul.f32 %v5345_v44, %v8967_v31  ;;  %v5421_v26 = vadd.f32 %v1003_v36, %v963_v28  ;;  %v1062_v62 = vsel %vm1061_vm5, %v5397_v0, 0.0  ;;  %v8974_v60 = vld [vmem:[#allocation90_spill] sm:$0xff] }
  0xc3   : > { %v1063_v50 = vsel %vm1061_vm5, %v5399_v29, 0.0  ;;  %v1065_v51 = vsel %vm1061_vm5, %v5401_v24, 0.0  ;;  %v941_v20 = vmul.f32 %v5287_v45, %v8973_v34  ;;  %v942_v16 = vmul.f32 %v5287_v45, %v8974_v60 }
  0xc4   : > { %v5435_v48 = vmul.f32 %v5287_v45, %v8975_v7  ;;  %v1064_v49 = vadd.f32 %v1063_v50, %v1062_v62  ;;  %v966_v59 = vadd.f32 %v934_v23, %v5292_v8  ;;  %v1006_v28 = vmul.f32 %v5345_v44, %v8968_v35  ;;  %v8979_v50 = vld [vmem:[#allocation69_spill] sm:$0xff] }
  0xc5   : > { %v5440_v36 = vadd.f32 %v1004_v25, %v964_v47  ;;  %v1067_v31 = vsel %vm1061_vm5, %v5415_v22, 0.0  ;;  %v5446_v27 = vmul.f32 %v5287_v45, %v8976_v58  ;;  %v5450_v57 = vmul.f32 %v5287_v45, %v8977_v2 }
  0xc6   : > { %v5454_v62 = vmul.f32 %v5287_v45, %v8978_v63  ;;  %v1066_v8 = vadd.f32 %v1065_v51, %v1064_v49  ;;  %v967_v23 = vadd.f32 %v935_v38, %v5295_v14  ;;  %v1007_v35 = vmul.f32 %v5345_v44, %v8969_v42  ;;  %v8983_v49 = vld [vmem:[#allocation94_spill] sm:$0xff] }
  0xc7   : > { %v5459_v47 = vadd.f32 %v1005_v53, %v965_v3  ;;  %v1069_v25 = vsel %vm1061_vm5, %v5421_v26, 0.0  ;;  %v5465_v10 = vmul.f32 %v5287_v45, %v8979_v50  ;;  %v5469_v33 = vmul.f32 %v5287_v45, %v8980_v52 }
  0xc8   : > { %v5473_v51 = vmul.f32 %v5287_v45, %v8982_v30  ;;  %v1068_v14 = vadd.f32 %v1067_v31, %v1066_v8  ;;  %v968_v38 = vadd.f32 %v936_v1, %v5298_v46  ;;  %v1008_v42 = vmul.f32 %v5345_v44, %v8970_v6  ;;  %v8988_v8 = vld [vmem:[#allocation72_spill] sm:$0xff] }
  0xc9   : > { %8981 = vst [vmem:[#allocation2_spill] sm:$0xff] %v5469_v33  ;;  %v5478_v3 = vadd.f32 %v1006_v28, %v966_v59  ;;  %v1071_v53 = vsel %vm1061_vm5, %v5440_v36, 0.0  ;;  %v5484_v15 = vmul.f32 %v5287_v45, %v8983_v49  ;;  %v8985_v33 = vld [vmem:[#allocation71_spill] sm:$0xff]  ;;  %v5492_v31 = vmul.f32 %v5287_v45, %v8934_v17 }
  0xca   : > { %v5488_v54 = vmul.f32 %v5287_v45, %v8985_v33  ;;  %v1070_v46 = vadd.f32 %v1069_v25, %v1068_v14  ;;  %v969_v1 = vadd.f32 %v937_v56, %v5301_v9  ;;  %v1009_v6 = vmul.f32 %v5345_v44, %v8971_v37 }
  0xcb   : > { %8984 = vst [vmem:[#allocation3_spill] sm:$0xff] %v5484_v15  ;;  %8987 = vst [vmem:[#allocation99_spill] sm:$0xff] %v5492_v31  ;;  %v5497_v59 = vadd.f32 %v1007_v35, %v967_v23  ;;  %v1073_v28 = vsel %vm1061_vm5, %v5459_v47, 0.0  ;;  %v5503_v15 = vmul.f32 %v5287_v45, %v8988_v8  ;;  %v8992_v31 = vld [vmem:[#allocation73_spill] sm:$0xff]  ;;  %v970_v56 = vadd.f32 %v938_v5, %v5304_v61 }
  0xcc   : > { %8986 = vst [vmem:[#allocation98_spill] sm:$0xff] %v5488_v54  ;;  %v8990_v54 = vld [vmem:[#allocation52_spill] sm:$0xff]  ;;  %v5511_v25 = vmul.f32 %v5287_v45, %v8992_v31  ;;  %v1072_v9 = vadd.f32 %v1071_v53, %v1070_v46  ;;  %v1010_v37 = vmul.f32 %v5345_v44, %v8972_v43  ;;  %v5516_v23 = vadd.f32 %v1008_v42, %v968_v38 }
  0xcd   : > { %8989 = vst [vmem:[#allocation100_spill] sm:$0xff] %v5503_v15  ;;  %v5507_v33 = vmul.f32 %v5287_v45, %v8990_v54  ;;  %v1075_v35 = vsel %vm1061_vm5, %v5478_v3, 0.0  ;;  %v5522_v14 = vmul.f32 %v5287_v45, %v8938_v13  ;;  %v971_v5 = vadd.f32 %v939_v4, %v5307_v39 }
  0xce   : > { %8993 = vst [vmem:[#allocation102_spill] sm:$0xff] %v5511_v25  ;;  %v8997_v25 = vld [vmem:[#allocation54_spill] sm:$0xff]  ;;  %v1074_v61 = vadd.f32 %v1073_v28, %v1072_v9  ;;  %v1011_v43 = vmul.f32 %v5345_v44, %v8973_v34  ;;  %v5535_v38 = vadd.f32 %v1009_v6, %v969_v1  ;;  %v1077_v42 = vsel %vm1061_vm5, %v5497_v59, 0.0 }
  0xcf   : > { %8991 = vst [vmem:[#allocation101_spill] sm:$0xff] %v5507_v33  ;;  %8994 = vst [vmem:[#allocation103_spill] sm:$0xff] %v5522_v14  ;;  %v8995_v33 = vld [vmem:[#allocation74_spill] sm:$0xff]  ;;  %v5530_v53 = vmul.f32 %v5287_v45, %v8997_v25  ;;  %v972_v46 = vadd.f32 %v940_v55, %v5310_v11  ;;  %v1012_v39 = vmul.f32 %v5345_v44, %v8974_v60  ;;  %v1079_v34 = vsel %vm1061_vm5, %v5516_v23, 0.0 }
  0xd0   : > { %v5526_v15 = vmul.f32 %v5287_v45, %v8995_v33  ;;  %v1076_v14 = vadd.f32 %v1075_v35, %v1074_v61  ;;  %v1132_v45 = vmul.f32 %v5399_v29, %v5399_v29  ;;  %v5546_v4 = vadd.f32 %v1010_v37, %v970_v56 }
  0xd1   : > { %v1133_v1 = vmul.f32 %v5401_v24, %v5401_v24  ;;  %v973_v11 = vadd.f32 %v941_v20, %v5313_v12  ;;  %v974_v55 = vadd.f32 %v942_v16, %v5320_v21  ;;  %v1134_v28 = vmul.f32 %v5415_v22, %v5415_v22 }
  0xd2   : > { %8996 = vst [vmem:[#allocation104_spill] sm:$0xff] %v5526_v15  ;;  %v1131_v15 = vmul.f32 %v5397_v0, %v5397_v0  ;;  %v1078_v6 = vadd.f32 %v1077_v42, %v1076_v14  ;;  %v1013_v9 = vmul.f32 %v5345_v44, %v8975_v7  ;;  %v1014_v60 = vmul.f32 %v5345_v44, %v8976_v58 }
  0xd3   : > { %v5560_v56 = vadd.f32 %v1011_v43, %v971_v5  ;;  %v1081_v37 = vsel %vm1061_vm5, %v5535_v38, 0.0  ;;  %v1135_v12 = vmul.f32 %v5421_v26, %v5421_v26  ;;  %v1164_v20 = vsel %vm1061_vm5, %v1132_v45, 0.0 }
  0xd4   : > { %v1080_v35 = vadd.f32 %v1079_v34, %v1078_v6  ;;  %v1163_v21 = vsel %vm1061_vm5, %v1131_v15, 0.0  ;;  %v5568_v16 = vadd.f32 %v1012_v39, %v972_v46  ;;  %v1083_v7 = vsel %vm1061_vm5, %v5546_v4, 0.0 }
  0xd5   : > { %v1165_v14 = vadd.f32 %v1164_v20, %v1163_v21  ;;  %v1166_v58 = vsel %vm1061_vm5, %v1133_v1, 0.0  ;;  %v975_v61 = vadd.f32 %v5435_v48, %v5323_v18  ;;  %v1136_v43 = vmul.f32 %v5440_v36, %v5440_v36 }
  0xd6   : > { %v1082_v5 = vadd.f32 %v1081_v37, %v1080_v35  ;;  %v1168_v42 = vsel %vm1061_vm5, %v1134_v28, 0.0  ;;  %v1015_v15 = vmul.f32 %v5345_v44, %v8977_v2  ;;  %v5580_v46 = vadd.f32 %v1013_v9, %v973_v11 }
  0xd7   : > { %v1085_v45 = vsel %vm1061_vm5, %v5560_v56, 0.0  ;;  %v1167_v39 = vadd.f32 %v1166_v58, %v1165_v14  ;;  %v976_v34 = vadd.f32 %v5446_v27, %v5326_v41  ;;  %v1137_v18 = vmul.f32 %v5459_v47, %v5459_v47 }
  0xd8   : > { %v1084_v1 = vadd.f32 %v1083_v7, %v1082_v5  ;;  %v1170_v48 = vsel %vm1061_vm5, %v1135_v12, 0.0  ;;  %v1016_v6 = vmul.f32 %v5345_v44, %v8978_v63  ;;  %v5591_v28 = vadd.f32 %v1014_v60, %v974_v55 }
  0xd9   : > { %v1087_v2 = vsel %vm1061_vm5, %v5568_v16, 0.0  ;;  %v1169_v11 = vadd.f32 %v1168_v42, %v1167_v39  ;;  %v977_v9 = vadd.f32 %v5450_v57, %v5331_v19  ;;  %v1138_v41 = vmul.f32 %v5478_v3, %v5478_v3 }
  0xda   : > { %v1086_v37 = vadd.f32 %v1085_v45, %v1084_v1  ;;  %v1172_v27 = vsel %vm1061_vm5, %v1136_v43, 0.0  ;;  %v1017_v35 = vmul.f32 %v5345_v44, %v8979_v50  ;;  %v5602_v12 = vadd.f32 %v1015_v15, %v975_v61  ;;  %v8998_v15 = vld [vmem:[#allocation107_spill] sm:$0xff]  ;;  %v8999_v45 = vld [vmem:[#allocation2_spill] sm:$0xff] }
  0xdb   : > { %v1089_v63 = vsel %vm1061_vm5, %v5580_v46, 0.0  ;;  %v1171_v55 = vadd.f32 %v1170_v48, %v1169_v11  ;;  %v978_v60 = vadd.f32 %v5454_v62, %v5334_v40  ;;  %v1139_v19 = vmul.f32 %v5497_v59, %v5497_v59 }
  0xdc   : > { %v1088_v21 = vadd.f32 %v1087_v2, %v1086_v37  ;;  %v1174_v57 = vsel %vm1061_vm5, %v1137_v18, 0.0  ;;  %v1018_v20 = vmul.f32 %v5345_v44, %v8980_v52  ;;  %v5613_v7 = vadd.f32 %v1016_v6, %v976_v34  ;;  %v9000_v6 = vld [vmem:[#allocation108_spill] sm:$0xff] }
  0xdd   : > { %v1091_v50 = vsel %vm1061_vm5, %v5591_v28, 0.0  ;;  %v1173_v14 = vadd.f32 %v1172_v27, %v1171_v55  ;;  %v979_v58 = vadd.f32 %v5465_v10, %v5337_v32  ;;  %v1140_v40 = vmul.f32 %v5516_v23, %v5516_v23  ;;  %v9002_v55 = vld [vmem:[#allocation109_spill] sm:$0xff] }
  0xde   : > { %v1090_v61 = vadd.f32 %v1089_v63, %v1088_v21  ;;  %v1176_v62 = vsel %vm1061_vm5, %v1138_v41, 0.0  ;;  %v1019_v5 = vmul.f32 %v5345_v44, %v8982_v30  ;;  %v5624_v43 = vadd.f32 %v1017_v35, %v977_v9  ;;  %v9001_v41 = vld [vmem:[#allocation71_spill] sm:$0xff] }
  0xdf   : > { %v1093_v52 = vsel %vm1061_vm5, %v5602_v12, 0.0  ;;  %v1175_v42 = vadd.f32 %v1174_v57, %v1173_v14  ;;  %v980_v39 = vadd.f32 %v8999_v45, %v8998_v15  ;;  %v1141_v32 = vmul.f32 %v5535_v38, %v5535_v38 }
  0xe0   : > { %v1092_v34 = vadd.f32 %v1091_v50, %v1090_v61  ;;  %v1178_v10 = vsel %vm1061_vm5, %v1139_v19, 0.0  ;;  %v1020_v1 = vmul.f32 %v5345_v44, %v8983_v49  ;;  %v5635_v18 = vadd.f32 %v1018_v20, %v978_v60  ;;  %v9003_v60 = vld [vmem:[#allocation3_spill] sm:$0xff]  ;;  %v9004_v61 = vld [vmem:[#allocation110_spill] sm:$0xff] }
  0xe1   : > { %v1095_v30 = vsel %vm1061_vm5, %v5613_v7, 0.0  ;;  %v1177_v48 = vadd.f32 %v1176_v62, %v1175_v42  ;;  %v981_v2 = vadd.f32 %v5473_v51, %v9000_v6  ;;  %v1142_v9 = vmul.f32 %v5546_v4, %v5546_v4 }
  0xe2   : > { %v1094_v11 = vadd.f32 %v1093_v52, %v1092_v34  ;;  %v1180_v37 = vsel %vm1061_vm5, %v1140_v40, 0.0  ;;  %v1021_v27 = vmul.f32 %v5345_v44, %v9001_v41  ;;  %v5646_v35 = vadd.f32 %v1019_v5, %v979_v58  ;;  %v9005_v40 = vld [vmem:[#allocation98_spill] sm:$0xff]  ;;  %v9006_v34 = vld [vmem:[#allocation111_spill] sm:$0xff] }
  0xe3   : > { %v1097_v49 = vsel %vm1061_vm5, %v5624_v43, 0.0  ;;  %v1179_v63 = vadd.f32 %v1178_v10, %v1177_v48  ;;  %v982_v21 = vadd.f32 %v9003_v60, %v9002_v55  ;;  %v1143_v51 = vmul.f32 %v5560_v56, %v5560_v56 }
  0xe4   : > { %v1096_v19 = vadd.f32 %v1095_v30, %v1094_v11  ;;  %v1182_v57 = vsel %vm1061_vm5, %v1141_v32, 0.0  ;;  %v1022_v20 = vmul.f32 %v5345_v44, %v8934_v17  ;;  %v5657_v50 = vadd.f32 %v1020_v1, %v980_v39  ;;  %v9007_v32 = vld [vmem:[#allocation99_spill] sm:$0xff] }
  0xe5   : > { %v1099_v14 = vsel %vm1061_vm5, %v5635_v18, 0.0  ;;  %v1181_v58 = vadd.f32 %v1180_v37, %v1179_v63  ;;  %v983_v62 = vadd.f32 %v9005_v40, %v9004_v61  ;;  %v1144_v52 = vmul.f32 %v5568_v16, %v5568_v16  ;;  %v9009_v37 = vld [vmem:[#allocation100_spill] sm:$0xff] }
  0xe6   : > { %v1098_v5 = vadd.f32 %v1097_v49, %v1096_v19  ;;  %v1184_v42 = vsel %vm1061_vm5, %v1142_v9, 0.0  ;;  %v1023_v15 = vmul.f32 %v5345_v44, %v8988_v8  ;;  %v5668_v45 = vadd.f32 %v1021_v27, %v981_v2  ;;  %v9008_v9 = vld [vmem:[#allocation112_spill] sm:$0xff]  ;;  %v9010_v19 = vld [vmem:[#allocation113_spill] sm:$0xff] }
  0xe7   : > { %v1101_v17 = vsel %vm1061_vm5, %v5646_v35, 0.0  ;;  %v1183_v39 = vadd.f32 %v1182_v57, %v1181_v58  ;;  %v984_v10 = vadd.f32 %v9007_v32, %v9006_v34  ;;  %v1145_v30 = vmul.f32 %v5580_v46, %v5580_v46 }
  0xe8   : > { %v1100_v1 = vadd.f32 %v1099_v14, %v1098_v5  ;;  %v1186_v48 = vsel %vm1061_vm5, %v1143_v51, 0.0  ;;  %v1024_v6 = vmul.f32 %v5345_v44, %v8990_v54  ;;  %v5679_v11 = vadd.f32 %v1022_v20, %v982_v21  ;;  %v9011_v51 = vld [vmem:[#allocation101_spill] sm:$0xff] }
  0xe9   : > { %v1103_v8 = vsel %vm1061_vm5, %v5657_v50, 0.0  ;;  %v1185_v2 = vadd.f32 %v1184_v42, %v1183_v39  ;;  %v985_v41 = vadd.f32 %v9009_v37, %v9008_v9  ;;  %v1146_v49 = vmul.f32 %v5591_v28, %v5591_v28  ;;  %v9012_v5 = vld [vmem:[#allocation97_spill] sm:$0xff] }
  0xea   : > { %v1102_v27 = vadd.f32 %v1101_v17, %v1100_v1  ;;  %v1188_v63 = vsel %vm1061_vm5, %v1144_v52, 0.0  ;;  %v1025_v55 = vmul.f32 %v5345_v44, %v8992_v31  ;;  %v5690_v60 = vadd.f32 %v1023_v15, %v983_v62  ;;  %v9013_v52 = vld [vmem:[#allocation102_spill] sm:$0xff]  ;;  %v9014_v1 = vld [vmem:[#allocation9_spill] sm:$0xff] }
  0xeb   : > { %v1105_v54 = vsel %vm1061_vm5, %v5668_v45, 0.0  ;;  %v1187_v21 = vadd.f32 %v1186_v48, %v1185_v2  ;;  %v986_v57 = vadd.f32 %v9011_v51, %v9010_v19  ;;  %v1147_v14 = vmul.f32 %v5602_v12, %v5602_v12 }
  0xec   : > { %v1104_v20 = vadd.f32 %v1103_v8, %v1102_v27  ;;  %v1190_v58 = vsel %vm1061_vm5, %v1145_v30, 0.0  ;;  %v1026_v61 = vmul.f32 %v5345_v44, %v8938_v13  ;;  %v5701_v40 = vadd.f32 %v1024_v6, %v984_v10  ;;  %v9015_v30 = vld [vmem:[#allocation103_spill] sm:$0xff] }
  0xed   : > { %v1107_v31 = vsel %vm1061_vm5, %v5679_v11, 0.0  ;;  %v1189_v62 = vadd.f32 %v1188_v63, %v1187_v21  ;;  %v987_v42 = vadd.f32 %v9013_v52, %v9012_v5  ;;  %v1148_v17 = vmul.f32 %v5613_v7, %v5613_v7  ;;  %v9017_v21 = vld [vmem:[#allocation104_spill] sm:$0xff] }
  0xee   : > { %v1106_v15 = vadd.f32 %v1105_v54, %v1104_v20  ;;  %v1192_v39 = vsel %vm1061_vm5, %v1146_v49, 0.0  ;;  %v1027_v34 = vmul.f32 %v5345_v44, %v8995_v33  ;;  %v5712_v32 = vadd.f32 %v1025_v55, %v985_v41  ;;  %v9016_v54 = vld [vmem:[#allocation20_spill] sm:$0xff] }
  0xef   : > { %v1109_v13 = vsel %vm1061_vm5, %v5690_v60, 0.0  ;;  %v1191_v10 = vadd.f32 %v1190_v58, %v1189_v62  ;;  %v988_v48 = vadd.f32 %v9015_v30, %v9014_v1  ;;  %v1149_v8 = vmul.f32 %v5624_v43, %v5624_v43  ;;  %v9018_v58 = vld [vmem:[#allocation24_spill] sm:$0xff] }
  0xf0   : > { %v1108_v6 = vadd.f32 %v1107_v31, %v1106_v15  ;;  %v1194_v2 = vsel %vm1061_vm5, %v1147_v14, 0.0  ;;  %v1028_v9 = vmul.f32 %v5345_v44, %v8997_v25  ;;  %v5723_v37 = vadd.f32 %v1026_v61, %v986_v57 }
  0xf1   : > { %v1111_v33 = vsel %vm1061_vm5, %v5701_v40, 0.0  ;;  %v1193_v41 = vadd.f32 %v1192_v39, %v1191_v10  ;;  %v1150_v49 = vmul.f32 %v5635_v18, %v5635_v18  ;;  %v1196_v63 = vsel %vm1061_vm5, %v1148_v17, 0.0 }
  0xf2   : > { %v1110_v27 = vadd.f32 %v1109_v13, %v1108_v6  ;;  %v989_v19 = vadd.f32 %v9017_v21, %v9016_v54  ;;  %v5732_v51 = vadd.f32 %v1027_v34, %v987_v42  ;;  %v1113_v44 = vsel %vm1061_vm5, %v5712_v32, 0.0 }
  0xf3   : > { %v1195_v25 = vadd.f32 %v1194_v2, %v1193_v41  ;;  %v1151_v20 = vmul.f32 %v5646_v35, %v5646_v35  ;;  %v1198_v14 = vsel %vm1061_vm5, %v1149_v8, 0.0  ;;  %v990_v31 = vadd.f32 %v5530_v53, %v9018_v58 }
  0xf4   : > { %v1112_v57 = vadd.f32 %v1111_v33, %v1110_v27  ;;  %v5741_v62 = vadd.f32 %v1028_v9, %v988_v48  ;;  %v1115_v5 = vsel %vm1061_vm5, %v5723_v37, 0.0  ;;  %v1152_v15 = vmul.f32 %v5657_v50, %v5657_v50 }
  0xf5   : > { %v1197_v52 = vadd.f32 %v1196_v63, %v1195_v25  ;;  %v1200_v17 = vsel %vm1061_vm5, %v1150_v49, 0.0  ;;  %v5748_v39 = vadd.f32 %v1025_v55, %v989_v19  ;;  %v1117_v34 = vsel %vm1061_vm5, %v5732_v51, 0.0 }
  0xf6   : > { %v1114_v42 = vadd.f32 %v1113_v44, %v1112_v57  ;;  %v1153_v53 = vmul.f32 %v5668_v45, %v5668_v45  ;;  %v1202_v1 = vsel %vm1061_vm5, %v1151_v20, 0.0  ;;  %v5755_v30 = vadd.f32 %v1026_v61, %v990_v31 }
  0xf7   : > { %v1199_v13 = vadd.f32 %v1198_v14, %v1197_v52  ;;  %v1119_v48 = vsel %vm1061_vm5, %v5741_v62, 0.0  ;;  %v1154_v55 = vmul.f32 %v5679_v11, %v5679_v11  ;;  %v1204_v2 = vsel %vm1061_vm5, %v1152_v15, 0.0 }
  0xf8   : > { %v1116_v10 = vadd.f32 %v1115_v5, %v1114_v42  ;;  %v1121_v9 = vsel %vm1061_vm5, %v5748_v39, 0.0  ;;  %v1155_v27 = vmul.f32 %v5690_v60, %v5690_v60  ;;  %v1206_v61 = vsel %vm1061_vm5, %v1153_v53, 0.0 }
  0xf9   : > { %v1201_v6 = vadd.f32 %v1200_v17, %v1199_v13  ;;  %v1123_v49 = vsel %vm1061_vm5, %v5755_v30, 0.0  ;;  %v1156_v21 = vmul.f32 %v5701_v40, %v5701_v40  ;;  %v1208_v19 = vsel %vm1061_vm5, %v1154_v55, 0.0 }
  0xfa   : > { %v1118_v8 = vadd.f32 %v1117_v34, %v1116_v10  ;;  %v1157_v57 = vmul.f32 %v5712_v32, %v5712_v32  ;;  %v1210_v20 = vsel %vm1061_vm5, %v1155_v27, 0.0  ;;  %v1158_v31 = vmul.f32 %v5723_v37, %v5723_v37 }
  0xfb   : > { %v1203_v33 = vadd.f32 %v1202_v1, %v1201_v6  ;;  %v1212_v5 = vsel %vm1061_vm5, %v1156_v21, 0.0  ;;  %v1159_v42 = vmul.f32 %v5732_v51, %v5732_v51  ;;  %v1160_v13 = vmul.f32 %v5741_v62, %v5741_v62 }
  0xfc   : > { %v1120_v41 = vadd.f32 %v1119_v48, %v1118_v8  ;;  %v1214_v15 = vsel %vm1061_vm5, %v1157_v57, 0.0  ;;  %v1216_v10 = vsel %vm1061_vm5, %v1158_v31, 0.0  ;;  %v1161_v1 = vmul.f32 %v5748_v39, %v5748_v39 }
  0xfd   : > { %v1205_v63 = vadd.f32 %v1204_v2, %v1203_v33  ;;  %v1218_v48 = vsel %vm1061_vm5, %v1159_v42, 0.0  ;;  %v1162_v55 = vmul.f32 %v5755_v30, %v5755_v30  ;;  %v1220_v2 = vsel %vm1061_vm5, %v1160_v13, 0.0 }
  0xfe   : > { %v1122_v54 = vadd.f32 %v1121_v9, %v1120_v41  ;;  %v1222_v33 = vsel %vm1061_vm5, %v1161_v1, 0.0 }
  0xff   : > { %v1207_v44 = vadd.f32 %v1206_v61, %v1205_v63  ;;  %v1224_v61 = vsel %vm1061_vm5, %v1162_v55, 0.0 }
 0x100   : > { %v1124_v25 = vadd.f32 %v1123_v49, %v1122_v54 }
 0x101   : > { %v1209_v14 = vadd.f32 %v1208_v19, %v1207_v44 }
 0x102   : > { %v1125_v58 = vrot.slane %v1124_v25, 4 }
 0x103   : > { %v1211_v52 = vadd.f32 %v1210_v20, %v1209_v14 }
 0x104   : > { %v1126_v17 = vadd.f32 %v1125_v58, %v1124_v25 }
 0x105   : > { %v1213_v34 = vadd.f32 %v1212_v5, %v1211_v52 }
 0x106   : > { %v1127_v6 = vrot.slane %v1126_v17, 2 }
 0x107   : > { %v1215_v53 = vadd.f32 %v1214_v15, %v1213_v34 }
 0x108   : > { %v1128_v41 = vadd.f32 %v1127_v6, %v1126_v17 }
 0x109   : > { %v1217_v8 = vadd.f32 %v1216_v10, %v1215_v53 }
 0x10a   : > { %v1129_v63 = vrot.slane %v1128_v41, 1 }
 0x10b   : > { %v1219_v9 = vadd.f32 %v1218_v48, %v1217_v8 }
 0x10c   : > { %v1130_v19 = vadd.f32 %v1129_v63, %v1128_v41 }
 0x10d   : > { %v1221_v27 = vadd.f32 %v1220_v2, %v1219_v9 }
 0x10e   : > { %v5792_v20 = vmul.f32 0.00390625, %v1130_v19 }
 0x10f   : > { %v1223_v49 = vadd.f32 %v1222_v33, %v1221_v27 }
 0x110   : > { %v1234_v31 = vmul.f32 %v5792_v20, %v5792_v20  ;;  %v1237_v17 = vsub.f32 %v5397_v0, %v5792_v20  ;;  %v1238_v34 = vsub.f32 %v5399_v29, %v5792_v20  ;;  %v1239_v13 = vsub.f32 %v5401_v24, %v5792_v20 }
 0x111   : > { %v1225_v54 = vadd.f32 %v1224_v61, %v1223_v49  ;;  %v1240_v53 = vsub.f32 %v5415_v22, %v5792_v20  ;;  %v1241_v0 = vsub.f32 %v5421_v26, %v5792_v20  ;;  %v1242_v29 = vsub.f32 %v5440_v36, %v5792_v20 }
 0x112   : > { %v1265_v24 = vsub.f32 %v5732_v51, %v5792_v20  ;;  %v1266_v8 = vsub.f32 %v5741_v62, %v5792_v20  ;;  %v1267_v55 = vsub.f32 %v5748_v39, %v5792_v20  ;;  %v1268_v26 = vsub.f32 %v5755_v30, %v5792_v20 }
 0x113   : > { %v1226_v21 = vrot.slane %v1225_v54, 4  ;;  %v1243_v51 = vsub.f32 %v5459_v47, %v5792_v20  ;;  %v1244_v9 = vsub.f32 %v5478_v3, %v5792_v20  ;;  %v1245_v3 = vsub.f32 %v5497_v59, %v5792_v20 }
 0x114   : > { %v1246_v27 = vsub.f32 %v5516_v23, %v5792_v20  ;;  %v1247_v49 = vsub.f32 %v5535_v38, %v5792_v20  ;;  %v1248_v59 = vsub.f32 %v5546_v4, %v5792_v20  ;;  %v1249_v23 = vsub.f32 %v5560_v56, %v5792_v20 }
 0x115   : > { %v1227_v44 = vadd.f32 %v1226_v21, %v1225_v54  ;;  %v1250_v38 = vsub.f32 %v5568_v16, %v5792_v20  ;;  %v1251_v4 = vsub.f32 %v5580_v46, %v5792_v20  ;;  %v1252_v56 = vsub.f32 %v5591_v28, %v5792_v20 }
 0x116   : > { %v1253_v16 = vsub.f32 %v5602_v12, %v5792_v20  ;;  %v1254_v46 = vsub.f32 %v5613_v7, %v5792_v20  ;;  %v1255_v28 = vsub.f32 %v5624_v43, %v5792_v20  ;;  %v1256_v12 = vsub.f32 %v5635_v18, %v5792_v20 }
 0x117   : > { %v1228_v25 = vrot.slane %v1227_v44, 2  ;;  %v1257_v7 = vsub.f32 %v5646_v35, %v5792_v20  ;;  %v1258_v43 = vsub.f32 %v5657_v50, %v5792_v20  ;;  %v1259_v18 = vsub.f32 %v5668_v45, %v5792_v20 }
 0x118   : > { %v1260_v35 = vsub.f32 %v5679_v11, %v5792_v20  ;;  %v1261_v50 = vsub.f32 %v5690_v60, %v5792_v20  ;;  %v1262_v45 = vsub.f32 %v5701_v40, %v5792_v20  ;;  %v1263_v11 = vsub.f32 %v5712_v32, %v5792_v20 }
 0x119   : > { %v1229_v57 = vadd.f32 %v1228_v25, %v1227_v44  ;;  %v1264_v60 = vsub.f32 %v5723_v37, %v5792_v20 }
 0x11b   : > { %v1230_v14 = vrot.slane %v1229_v57, 1 }
 0x11d   : > { %v1231_v58 = vadd.f32 %v1230_v14, %v1229_v57 }
 0x11f   : > { %v1233_v5 = vmul.f32 0.00390625, %v1231_v58 }
 0x121   : > { %v1235_v52 = vsub.f32 %v1233_v5, %v1234_v31 }
 0x123   : > { %v1236_v42 = vmax.f32 %v1235_v52, 0.0 }
 0x125   : > { %v1269_v15 = vadd.f32 1e-05, %v1236_v42 }
 0x127   : > { %3910 = vrsqrt.f32 %v1269_v15 }
 0x131   : > { %v5802_v10 = vpop.eup %3910 }
 0x132   : > { %v1271_v1 = vmul.f32 %v5802_v10, %v1237_v17  ;;  %v1272_v48 = vmul.f32 %v5802_v10, %v1238_v34  ;;  %v1273_v6 = vmul.f32 %v5802_v10, %v1239_v13  ;;  %v1274_v22 = vmul.f32 %v5802_v10, %v1240_v53 }
 0x133   : > { %v1275_v36 = vmul.f32 %v5802_v10, %v1241_v0  ;;  %v1276_v2 = vmul.f32 %v5802_v10, %v1242_v29  ;;  %v5833_v62 = vmul.f32 %v5802_v10, %v1265_v24  ;;  %v5836_v39 = vmul.f32 %v5802_v10, %v1266_v8 }
 0x134   : > { %3804 = vmatprep.mubr.msk.f32.mxu0 %vm1061_vm5, %v1271_v1  ;;  %v5839_v30 = vmul.f32 %v5802_v10, %v1267_v55  ;;  %v5842_v33 = vmul.f32 %v5802_v10, %v1268_v26  ;;  %v1277_v47 = vmul.f32 %v5802_v10, %v1243_v51  ;;  %v1278_v41 = vmul.f32 %v5802_v10, %v1244_v9 }
 0x135   : > { %3805 = vmatmul.mubr.msk.f32.vlgmr.msra.gmra.mrb[0].mxu0 %vm1061_vm5, %v1272_v48  ;;  %v1279_v61 = vmul.f32 %v5802_v10, %v1245_v3  ;;  %v1280_v63 = vmul.f32 %v5802_v10, %v1246_v27  ;;  %v1281_v54 = vmul.f32 %v5802_v10, %v1247_v49  ;;  %v1282_v21 = vmul.f32 %v5802_v10, %v1248_v59 }
 0x136   : > { %3807 = vmatprep.mubr.msk.f32.mxu0 %vm1061_vm5, %v1273_v6  ;;  %v1283_v19 = vmul.f32 %v5802_v10, %v1249_v23  ;;  %v1284_v44 = vmul.f32 %v5802_v10, %v1250_v38  ;;  %v1285_v25 = vmul.f32 %v5802_v10, %v1251_v4  ;;  %v1286_v57 = vmul.f32 %v5802_v10, %v1252_v56 }
 0x137   : > { %v1287_v14 = vmul.f32 %v5802_v10, %v1253_v16  ;;  %v1288_v58 = vmul.f32 %v5802_v10, %v1254_v46  ;;  %v1289_v31 = vmul.f32 %v5802_v10, %v1255_v28  ;;  %v1290_v5 = vmul.f32 %v5802_v10, %v1256_v12 }
 0x138   : > { %v1291_v52 = vmul.f32 %v5802_v10, %v1257_v7  ;;  %v1292_v42 = vmul.f32 %v5802_v10, %v1258_v43  ;;  %v1293_v15 = vmul.f32 %v5802_v10, %v1259_v18  ;;  %v1294_v17 = vmul.f32 %v5802_v10, %v1260_v35 }
 0x139   : > { %3808 = vmatmul.mubr.msk.f32.gmra.mrb[2].mxu0 %vm1061_vm5, %v1274_v22  ;;  %v1295_v34 = vmul.f32 %v5802_v10, %v1261_v50  ;;  %v1296_v13 = vmul.f32 %v5802_v10, %v1262_v45  ;;  %v1297_v53 = vmul.f32 %v5802_v10, %v1263_v11  ;;  %v1298_v40 = vmul.f32 %v5802_v10, %v1264_v60 }
 0x13a   : > { %3810 = vmatprep.mubr.msk.f32.mxu0 %vm1061_vm5, %v1275_v36 }
 0x13d   : > { %3811 = vmatmul.mubr.msk.f32.gmra.mrb[4].mxu0 %vm1061_vm5, %v1276_v2 }
 0x13e   : > { %3813 = vmatprep.mubr.msk.f32.mxu0 %vm1061_vm5, %v1277_v47 }
 0x141   : > { %3814 = vmatmul.mubr.msk.f32.gmra.mrb[6].mxu0 %vm1061_vm5, %v1278_v41 }
 0x142   : > { %3816 = vmatprep.mubr.msk.f32.mxu0 %vm1061_vm5, %v1279_v61 }
 0x145   : > { %3817 = vmatmul.mubr.msk.f32.gmra.mrb[8].mxu0 %vm1061_vm5, %v1280_v63 }
 0x146   : > { %3819 = vmatprep.mubr.msk.f32.mxu0 %vm1061_vm5, %v1281_v54 }
 0x149   : > { %3820 = vmatmul.mubr.msk.f32.gmra.mrb[10].mxu0 %vm1061_vm5, %v1282_v21 }
 0x14a   : > { %3822 = vmatprep.mubr.msk.f32.mxu0 %vm1061_vm5, %v1283_v19 }
 0x14d   : > { %3823 = vmatmul.mubr.msk.f32.gmra.mrb[12].mxu0 %vm1061_vm5, %v1284_v44 }
 0x14e   : > { %3825 = vmatprep.mubr.msk.f32.mxu0 %vm1061_vm5, %v1285_v25 }
 0x151   : > { %3826 = vmatmul.mubr.msk.f32.gmra.mrb[14].mxu0 %vm1061_vm5, %v1286_v57 }
 0x152   : > { %3828 = vmatprep.mubr.msk.f32.mxu0 %vm1061_vm5, %v1287_v14 }
 0x155   : > { %3829 = vmatmul.mubr.msk.f32.gmra.mrb[16].mxu0 %vm1061_vm5, %v1288_v58 }
 0x156   : > { %3831 = vmatprep.mubr.msk.f32.mxu0 %vm1061_vm5, %v1289_v31 }
 0x159   : > { %3832 = vmatmul.mubr.msk.f32.gmra.mrb[18].mxu0 %vm1061_vm5, %v1290_v5 }
 0x15a   : > { %3834 = vmatprep.mubr.msk.f32.mxu0 %vm1061_vm5, %v1291_v52 }
 0x15d   : > { %3835 = vmatmul.mubr.msk.f32.gmra.mrb[20].mxu0 %vm1061_vm5, %v1292_v42 }
 0x15e   : > { %3837 = vmatprep.mubr.msk.f32.mxu0 %vm1061_vm5, %v1293_v15 }
 0x161   : > { %3838 = vmatmul.mubr.msk.f32.gmra.mrb[22].mxu0 %vm1061_vm5, %v1294_v17 }
 0x162   : > { %3840 = vmatprep.mubr.msk.f32.mxu0 %vm1061_vm5, %v1295_v34 }
 0x165   : > { %3841 = vmatmul.mubr.msk.f32.gmra.mrb[24].mxu0 %vm1061_vm5, %v1296_v13 }
 0x166   : > { %3843 = vmatprep.mubr.msk.f32.mxu0 %vm1061_vm5, %v1297_v53 }
 0x169   : > { %3844 = vmatmul.mubr.msk.f32.gmra.mrb[26].mxu0 %vm1061_vm5, %v1298_v40 }
 0x16a   : > { %3846 = vmatprep.mubr.msk.f32.mxu0 %vm1061_vm5, %v5833_v62 }
 0x16d   : > { %3847 = vmatmul.mubr.msk.f32.gmra.mrb[28].mxu0 %vm1061_vm5, %v5836_v39 }
 0x16e   : > { %3849 = vmatprep.mubr.msk.f32.mxu0 %vm1061_vm5, %v5839_v30 }
 0x171   : > { %3850 = vmatmul.mubr.msk.f32.gmra.mrb[30].mxu0 %vm1061_vm5, %v5842_v33 }
 0x208   : > { %v5938_v32 = vpop.f32.mrb[0].mxu0 }
 0x209   : > { %v1630_v37 = vsel %vm1061_vm5, %v5938_v32, 0.0  ;;  %v1699_v20 = vmul.f32 %v5938_v32, %v5938_v32  ;;  %v5944_v10 = vpop.f32.mrb[1].mxu0 }
 0x20a   : > { %v1629_v1 = vsel %vm1061_vm5, %v5944_v10, 0.0  ;;  %v1698_v48 = vmul.f32 %v5944_v10, %v5944_v10 }
 0x20b   : > { %v1731_v6 = vsel %vm1061_vm5, %v1699_v20, 0.0  ;;  %v1631_v0 = vadd.f32 %v1630_v37, %v1629_v1 }
 0x20c   : > { %v1730_v29 = vsel %vm1061_vm5, %v1698_v48, 0.0  ;;  %v5952_v24 = vpop.f32.mrb[2].mxu0 }
 0x20d   : > { %v1732_v22 = vadd.f32 %v1731_v6, %v1730_v29  ;;  %v5954_v8 = vpop.f32.mrb[3].mxu0  ;;  %v1701_v55 = vmul.f32 %v5952_v24, %v5952_v24  ;;  %v1634_v2 = vsel %vm1061_vm5, %v5952_v24, 0.0 }
 0x20e   : > { %v1632_v26 = vsel %vm1061_vm5, %v5954_v8, 0.0  ;;  %v1700_v36 = vmul.f32 %v5954_v8, %v5954_v8 }
 0x20f   : > { %v1633_v51 = vadd.f32 %v1632_v26, %v1631_v0  ;;  %v1735_v47 = vsel %vm1061_vm5, %v1701_v55, 0.0 }
 0x210   : > { %v1733_v9 = vsel %vm1061_vm5, %v1700_v36, 0.0  ;;  %v5965_v62 = vpop.f32.mrb[4].mxu0 }
 0x211   : > { %v1734_v39 = vadd.f32 %v1733_v9, %v1732_v22  ;;  %v5967_v30 = vpop.f32.mrb[5].mxu0  ;;  %v1635_v33 = vadd.f32 %v1634_v2, %v1633_v51  ;;  %v1703_v3 = vmul.f32 %v5965_v62, %v5965_v62  ;;  %v1638_v63 = vsel %vm1061_vm5, %v5965_v62, 0.0 }
 0x212   : > { %v1636_v41 = vsel %vm1061_vm5, %v5967_v30, 0.0  ;;  %v1702_v27 = vmul.f32 %v5967_v30, %v5967_v30 }
 0x213   : > { %v1637_v61 = vadd.f32 %v1636_v41, %v1635_v33  ;;  %v1736_v49 = vadd.f32 %v1735_v47, %v1734_v39  ;;  %v1739_v19 = vsel %vm1061_vm5, %v1703_v3, 0.0 }
 0x214   : > { %v1737_v59 = vsel %vm1061_vm5, %v1702_v27, 0.0  ;;  %v5979_v54 = vpop.f32.mrb[6].mxu0 }
 0x215   : > { %v1738_v23 = vadd.f32 %v1737_v59, %v1736_v49  ;;  %v5981_v21 = vpop.f32.mrb[7].mxu0  ;;  %v1639_v38 = vadd.f32 %v1638_v63, %v1637_v61  ;;  %v1705_v4 = vmul.f32 %v5979_v54, %v5979_v54  ;;  %v1642_v57 = vsel %vm1061_vm5, %v5979_v54, 0.0 }
 0x216   : > { %v1640_v44 = vsel %vm1061_vm5, %v5981_v21, 0.0  ;;  %v1704_v56 = vmul.f32 %v5981_v21, %v5981_v21 }
 0x217   : > { %v1641_v25 = vadd.f32 %v1640_v44, %v1639_v38  ;;  %v1740_v16 = vadd.f32 %v1739_v19, %v1738_v23  ;;  %v1743_v31 = vsel %vm1061_vm5, %v1705_v4, 0.0 }
 0x218   : > { %v1741_v46 = vsel %vm1061_vm5, %v1704_v56, 0.0  ;;  %v5993_v14 = vpop.f32.mrb[8].mxu0 }
 0x219   : > { %v1742_v28 = vadd.f32 %v1741_v46, %v1740_v16  ;;  %v5995_v58 = vpop.f32.mrb[9].mxu0  ;;  %v1643_v12 = vadd.f32 %v1642_v57, %v1641_v25  ;;  %v1707_v7 = vmul.f32 %v5993_v14, %v5993_v14  ;;  %v1646_v42 = vsel %vm1061_vm5, %v5993_v14, 0.0 }
 0x21a   : > { %v1644_v5 = vsel %vm1061_vm5, %v5995_v58, 0.0  ;;  %v1706_v43 = vmul.f32 %v5995_v58, %v5995_v58 }
 0x21b   : > { %v1645_v52 = vadd.f32 %v1644_v5, %v1643_v12  ;;  %v1744_v18 = vadd.f32 %v1743_v31, %v1742_v28  ;;  %v1747_v34 = vsel %vm1061_vm5, %v1707_v7, 0.0 }
 0x21c   : > { %v1745_v35 = vsel %vm1061_vm5, %v1706_v43, 0.0  ;;  %v6007_v15 = vpop.f32.mrb[10].mxu0 }
 0x21d   : > { %9019 = vst [vmem:[#allocation105_spill] sm:$0xff] %v6007_v15  ;;  %v1746_v50 = vadd.f32 %v1745_v35, %v1744_v18  ;;  %v6009_v17 = vpop.f32.mrb[11].mxu0  ;;  %v1647_v45 = vadd.f32 %v1646_v42, %v1645_v52  ;;  %v1709_v11 = vmul.f32 %v6007_v15, %v6007_v15  ;;  %v1650_v37 = vsel %vm1061_vm5, %v6007_v15, 0.0 }
 0x21e   : > { %9020 = vst [vmem:[#allocation75_spill] sm:$0xff] %v6009_v17  ;;  %v1648_v13 = vsel %vm1061_vm5, %v6009_v17, 0.0  ;;  %v1708_v60 = vmul.f32 %v6009_v17, %v6009_v17  ;;  %v6395_v17 = vld [vmem:[%s8227_s3 + $0x4] ss:$0 sm:$0xff] }
 0x21f   : > { %v1649_v53 = vadd.f32 %v1648_v13, %v1647_v45  ;;  %v1748_v40 = vadd.f32 %v1747_v34, %v1746_v50  ;;  %v1751_v29 = vsel %vm1061_vm5, %v1709_v11, 0.0  ;;  %9047 = vst [vmem:[#allocation60_spill] sm:$0xff] %v6395_v17 }
 0x220   : > { %v1749_v20 = vsel %vm1061_vm5, %v1708_v60, 0.0  ;;  %v6021_v1 = vpop.f32.mrb[12].mxu0 }
 0x221   : > { %9021 = vst [vmem:[#allocation32_spill] sm:$0xff] %v6021_v1  ;;  %v1750_v48 = vadd.f32 %v1749_v20, %v1748_v40  ;;  %v6023_v6 = vpop.f32.mrb[13].mxu0  ;;  %v1651_v0 = vadd.f32 %v1650_v37, %v1649_v53  ;;  %v1711_v22 = vmul.f32 %v6021_v1, %v6021_v1  ;;  %v1654_v2 = vsel %vm1061_vm5, %v6021_v1, 0.0 }
 0x222   : > { %9022 = vst [vmem:[#allocation76_spill] sm:$0xff] %v6023_v6  ;;  %v1652_v55 = vsel %vm1061_vm5, %v6023_v6, 0.0  ;;  %v1710_v26 = vmul.f32 %v6023_v6, %v6023_v6 }
 0x223   : > { %v1653_v36 = vadd.f32 %v1652_v55, %v1651_v0  ;;  %v1752_v51 = vadd.f32 %v1751_v29, %v1750_v48  ;;  %v1755_v41 = vsel %vm1061_vm5, %v1711_v22, 0.0 }
 0x224   : > { %v1753_v9 = vsel %vm1061_vm5, %v1710_v26, 0.0  ;;  %v6035_v39 = vpop.f32.mrb[14].mxu0 }
 0x225   : > { %9023 = vst [vmem:[#allocation36_spill] sm:$0xff] %v6035_v39  ;;  %v1754_v33 = vadd.f32 %v1753_v9, %v1752_v51  ;;  %v6037_v47 = vpop.f32.mrb[15].mxu0  ;;  %v1655_v3 = vadd.f32 %v1654_v2, %v1653_v36  ;;  %v1713_v27 = vmul.f32 %v6035_v39, %v6035_v39  ;;  %v1658_v23 = vsel %vm1061_vm5, %v6035_v39, 0.0 }
 0x226   : > { %9024 = vst [vmem:[#allocation77_spill] sm:$0xff] %v6037_v47  ;;  %v1656_v61 = vsel %vm1061_vm5, %v6037_v47, 0.0  ;;  %v1712_v49 = vmul.f32 %v6037_v47, %v6037_v47 }
 0x227   : > { %v1657_v63 = vadd.f32 %v1656_v61, %v1655_v3  ;;  %v1756_v59 = vadd.f32 %v1755_v41, %v1754_v33  ;;  %v1759_v25 = vsel %vm1061_vm5, %v1713_v27, 0.0 }
 0x228   : > { %v1757_v38 = vsel %vm1061_vm5, %v1712_v49, 0.0  ;;  %v6049_v19 = vpop.f32.mrb[16].mxu0 }
 0x229   : > { %9025 = vst [vmem:[#allocation40_spill] sm:$0xff] %v6049_v19  ;;  %v1758_v4 = vadd.f32 %v1757_v38, %v1756_v59  ;;  %v6051_v44 = vpop.f32.mrb[17].mxu0  ;;  %v1659_v56 = vadd.f32 %v1658_v23, %v1657_v63  ;;  %v1715_v16 = vmul.f32 %v6049_v19, %v6049_v19  ;;  %v1662_v31 = vsel %vm1061_vm5, %v6049_v19, 0.0 }
 0x22a   : > { %9026 = vst [vmem:[#allocation5_spill] sm:$0xff] %v6051_v44  ;;  %v1660_v57 = vsel %vm1061_vm5, %v6051_v44, 0.0  ;;  %v1714_v46 = vmul.f32 %v6051_v44, %v6051_v44 }
 0x22b   : > { %v1661_v28 = vadd.f32 %v1660_v57, %v1659_v56  ;;  %v1760_v12 = vadd.f32 %v1759_v25, %v1758_v4  ;;  %v1763_v42 = vsel %vm1061_vm5, %v1715_v16, 0.0 }
 0x22c   : > { %v1761_v7 = vsel %vm1061_vm5, %v1714_v46, 0.0  ;;  %v6063_v5 = vpop.f32.mrb[18].mxu0 }
 0x22d   : > { %9027 = vst [vmem:[#allocation6_spill] sm:$0xff] %v6063_v5  ;;  %v1762_v43 = vadd.f32 %v1761_v7, %v1760_v12  ;;  %v6065_v52 = vpop.f32.mrb[19].mxu0  ;;  %v1663_v18 = vadd.f32 %v1662_v31, %v1661_v28  ;;  %v1717_v35 = vmul.f32 %v6063_v5, %v6063_v5  ;;  %v1666_v13 = vsel %vm1061_vm5, %v6063_v5, 0.0 }
 0x22e   : > { %9028 = vst [vmem:[#allocation7_spill] sm:$0xff] %v6065_v52  ;;  %v1664_v50 = vsel %vm1061_vm5, %v6065_v52, 0.0  ;;  %v1716_v45 = vmul.f32 %v6065_v52, %v6065_v52 }
 0x22f   : > { %v1665_v34 = vadd.f32 %v1664_v50, %v1663_v18  ;;  %v1764_v11 = vadd.f32 %v1763_v42, %v1762_v43  ;;  %v1767_v48 = vsel %vm1061_vm5, %v1717_v35, 0.0 }
 0x230   : > { %v1765_v60 = vsel %vm1061_vm5, %v1716_v45, 0.0  ;;  %v6077_v53 = vpop.f32.mrb[20].mxu0 }
 0x231   : > { %9029 = vst [vmem:[#allocation8_spill] sm:$0xff] %v6077_v53  ;;  %v1766_v40 = vadd.f32 %v1765_v60, %v1764_v11  ;;  %v6079_v37 = vpop.f32.mrb[21].mxu0  ;;  %v1667_v20 = vadd.f32 %v1666_v13, %v1665_v34  ;;  %v1719_v0 = vmul.f32 %v6077_v53, %v6077_v53  ;;  %v1670_v36 = vsel %vm1061_vm5, %v6077_v53, 0.0 }
 0x232   : > { %9030 = vst [vmem:[#allocation10_spill] sm:$0xff] %v6079_v37  ;;  %v1668_v29 = vsel %vm1061_vm5, %v6079_v37, 0.0  ;;  %v1718_v22 = vmul.f32 %v6079_v37, %v6079_v37 }
 0x233   : > { %v1669_v55 = vadd.f32 %v1668_v29, %v1667_v20  ;;  %v1768_v26 = vadd.f32 %v1767_v48, %v1766_v40  ;;  %v1771_v41 = vsel %vm1061_vm5, %v1719_v0, 0.0 }
 0x234   : > { %v1769_v51 = vsel %vm1061_vm5, %v1718_v22, 0.0  ;;  %v6091_v2 = vpop.f32.mrb[22].mxu0 }
 0x235   : > { %9031 = vst [vmem:[#allocation11_spill] sm:$0xff] %v6091_v2  ;;  %v1770_v9 = vadd.f32 %v1769_v51, %v1768_v26  ;;  %v6093_v33 = vpop.f32.mrb[23].mxu0  ;;  %v1671_v3 = vadd.f32 %v1670_v36, %v1669_v55  ;;  %v1721_v27 = vmul.f32 %v6091_v2, %v6091_v2  ;;  %v1674_v23 = vsel %vm1061_vm5, %v6091_v2, 0.0 }
 0x236   : > { %9032 = vst [vmem:[#allocation12_spill] sm:$0xff] %v6093_v33  ;;  %v1672_v61 = vsel %vm1061_vm5, %v6093_v33, 0.0  ;;  %v1720_v49 = vmul.f32 %v6093_v33, %v6093_v33 }
 0x237   : > { %v1673_v63 = vadd.f32 %v1672_v61, %v1671_v3  ;;  %v1772_v59 = vadd.f32 %v1771_v41, %v1770_v9  ;;  %v1775_v57 = vsel %vm1061_vm5, %v1721_v27, 0.0 }
 0x238   : > { %v1773_v38 = vsel %vm1061_vm5, %v1720_v49, 0.0  ;;  %v6105_v4 = vpop.f32.mrb[24].mxu0 }
 0x239   : > { %v1774_v56 = vadd.f32 %v1773_v38, %v1772_v59  ;;  %v6107_v25 = vpop.f32.mrb[25].mxu0  ;;  %v1675_v16 = vadd.f32 %v1674_v23, %v1673_v63  ;;  %v1723_v46 = vmul.f32 %v6105_v4, %v6105_v4  ;;  %v1678_v43 = vsel %vm1061_vm5, %v6105_v4, 0.0 }
 0x23a   : > { %v1676_v28 = vsel %vm1061_vm5, %v6107_v25, 0.0  ;;  %v1722_v12 = vmul.f32 %v6107_v25, %v6107_v25 }
 0x23b   : > { %v1677_v31 = vadd.f32 %v1676_v28, %v1675_v16  ;;  %v1776_v7 = vadd.f32 %v1775_v57, %v1774_v56  ;;  %v1779_v34 = vsel %vm1061_vm5, %v1723_v46, 0.0 }
 0x23c   : > { %v1777_v18 = vsel %vm1061_vm5, %v1722_v12, 0.0  ;;  %v6119_v42 = vpop.f32.mrb[26].mxu0 }
 0x23d   : > { %v1778_v35 = vadd.f32 %v1777_v18, %v1776_v7  ;;  %v6121_v50 = vpop.f32.mrb[27].mxu0  ;;  %v1679_v45 = vadd.f32 %v1678_v43, %v1677_v31  ;;  %v1725_v11 = vmul.f32 %v6119_v42, %v6119_v42  ;;  %v1682_v48 = vsel %vm1061_vm5, %v6119_v42, 0.0 }
 0x23e   : > { %v1680_v13 = vsel %vm1061_vm5, %v6121_v50, 0.0  ;;  %v1724_v60 = vmul.f32 %v6121_v50, %v6121_v50 }
 0x23f   : > { %v1681_v40 = vadd.f32 %v1680_v13, %v1679_v45  ;;  %v1780_v20 = vadd.f32 %v1779_v34, %v1778_v35  ;;  %v1783_v36 = vsel %vm1061_vm5, %v1725_v11, 0.0 }
 0x240   : > { %v1781_v0 = vsel %vm1061_vm5, %v1724_v60, 0.0  ;;  %v6133_v29 = vpop.f32.mrb[28].mxu0 }
 0x241   : > { %v1782_v22 = vadd.f32 %v1781_v0, %v1780_v20  ;;  %v6135_v55 = vpop.f32.mrb[29].mxu0  ;;  %v1683_v26 = vadd.f32 %v1682_v48, %v1681_v40  ;;  %v1727_v51 = vmul.f32 %v6133_v29, %v6133_v29  ;;  %v1686_v61 = vsel %vm1061_vm5, %v6133_v29, 0.0 }
 0x242   : > { %v1684_v9 = vsel %vm1061_vm5, %v6135_v55, 0.0  ;;  %v1726_v3 = vmul.f32 %v6135_v55, %v6135_v55 }
 0x243   : > { %v1685_v41 = vadd.f32 %v1684_v9, %v1683_v26  ;;  %v1784_v27 = vadd.f32 %v1783_v36, %v1782_v22  ;;  %v1787_v56 = vsel %vm1061_vm5, %v1727_v51, 0.0 }
 0x244   : > { %v1785_v49 = vsel %vm1061_vm5, %v1726_v3, 0.0  ;;  %v6147_v63 = vpop.f32.mrb[30].mxu0 }
 0x245   : > { %v1786_v59 = vadd.f32 %v1785_v49, %v1784_v27  ;;  %v6149_v23 = vpop.f32.mrb[31].mxu0  ;;  %v1687_v38 = vadd.f32 %v1686_v61, %v1685_v41  ;;  %v1729_v16 = vmul.f32 %v6147_v63, %v6147_v63  ;;  %v1690_v31 = vsel %vm1061_vm5, %v6147_v63, 0.0 }
 0x246   : > { %v1688_v57 = vsel %vm1061_vm5, %v6149_v23, 0.0  ;;  %v1728_v46 = vmul.f32 %v6149_v23, %v6149_v23 }
 0x247   : > { %v1689_v28 = vadd.f32 %v1688_v57, %v1687_v38  ;;  %v1788_v12 = vadd.f32 %v1787_v56, %v1786_v59  ;;  %v1791_v35 = vsel %vm1061_vm5, %v1729_v16, 0.0 }
 0x248   : > { %v1789_v7 = vsel %vm1061_vm5, %v1728_v46, 0.0 }
 0x249   : > { %v1691_v43 = vadd.f32 %v1690_v31, %v1689_v28  ;;  %v1790_v18 = vadd.f32 %v1789_v7, %v1788_v12 }
 0x24b   : > { %v1692_v45 = vrot.slane %v1691_v43, 4  ;;  %v1792_v34 = vadd.f32 %v1791_v35, %v1790_v18 }
 0x24d   : > { %v1693_v11 = vadd.f32 %v1692_v45, %v1691_v43  ;;  %v1793_v13 = vrot.slane %v1792_v34, 4 }
 0x24f   : > { %v1694_v60 = vrot.slane %v1693_v11, 2  ;;  %v1794_v40 = vadd.f32 %v1793_v13, %v1792_v34  ;;  %v6279_v13 = vld [vmem:[%s8227_s3] ss:$0 sm:$0xff] }
 0x250   : > { %9038 = vst [vmem:[#allocation43_spill] sm:$0xff] %v6279_v13 }
 0x251   : > { %v1695_v20 = vadd.f32 %v1694_v60, %v1693_v11  ;;  %v1795_v48 = vrot.slane %v1794_v40, 2  ;;  %v6284_v11 = vld [vmem:[%s8227_s3 + $0x3] ss:$0 sm:$0xff] }
 0x252   : > { %9039 = vst [vmem:[#allocation79_spill] sm:$0xff] %v6284_v11 }
 0x253   : > { %v1696_v0 = vrot.slane %v1695_v20, 1  ;;  %v1796_v22 = vadd.f32 %v1795_v48, %v1794_v40 }
 0x255   : > { %v1697_v26 = vadd.f32 %v1696_v0, %v1695_v20  ;;  %v1797_v36 = vrot.slane %v1796_v22, 1 }
 0x257   : > { %v1798_v51 = vadd.f32 %v1797_v36, %v1796_v22  ;;  %v6162_v9 = vmul.f32 0.00390625, %v1697_v26 }
 0x259   : > { %v1800_v3 = vmul.f32 0.00390625, %v1798_v51  ;;  %v1801_v41 = vmul.f32 %v6162_v9, %v6162_v9  ;;  %v1828_v27 = vsub.f32 %v6107_v25, %v6162_v9  ;;  %v1829_v61 = vsub.f32 %v6105_v4, %v6162_v9 }
 0x25a   : > { %v1830_v49 = vsub.f32 %v6121_v50, %v6162_v9  ;;  %v1831_v59 = vsub.f32 %v6119_v42, %v6162_v9  ;;  %v1832_v38 = vsub.f32 %v6135_v55, %v6162_v9  ;;  %v1833_v56 = vsub.f32 %v6133_v29, %v6162_v9 }
 0x25b   : > { %v1802_v16 = vsub.f32 %v1800_v3, %v1801_v41  ;;  %v1834_v57 = vsub.f32 %v6149_v23, %v6162_v9  ;;  %v1835_v25 = vsub.f32 %v6147_v63, %v6162_v9 }
 0x25d   : > { %v1803_v46 = vmax.f32 %v1802_v16, 0.0 }
 0x25f   : > { %v1836_v18 = vadd.f32 1e-05, %v1803_v46 }
 0x261   : > { %3912 = vrsqrt.f32 %v1836_v18 }
 0x26b   : > { %v6230_v36 = vpop.eup %3912 }
 0x26c   : > { %v1862_v51 = vmul.f32 %v6230_v36, %v1828_v27  ;;  %v1863_v3 = vmul.f32 %v6230_v36, %v1829_v61  ;;  %v1864_v41 = vmul.f32 %v6230_v36, %v1830_v49  ;;  %v1865_v16 = vmul.f32 %v6230_v36, %v1831_v59 }
 0x26d   : > { %v1866_v46 = vmul.f32 %v6230_v36, %v1832_v38  ;;  %v1867_v18 = vmul.f32 %v6230_v36, %v1833_v56  ;;  %v1868_v0 = vmul.f32 %v6230_v36, %v1834_v57  ;;  %v1869_v22 = vmul.f32 %v6230_v36, %v1835_v25 }
 0x26e   : > { %v6240_v48 = vmax.f32 %v1862_v51, 0.0  ;;  %v6242_v26 = vmax.f32 %v1863_v3, 0.0  ;;  %v6244_v20 = vmax.f32 %v1864_v41, 0.0  ;;  %v6246_v27 = vmax.f32 %v1865_v16, 0.0 }
 0x26f   : > { %v6248_v61 = vmax.f32 %v1866_v46, 0.0  ;;  %v6250_v49 = vmax.f32 %v1867_v18, 0.0  ;;  %v6252_v59 = vmax.f32 %v1868_v0, 0.0  ;;  %v6254_v38 = vmax.f32 %v1869_v22, 0.0 }
 0x270   : > { %9033 = vst [vmem:[#allocation13_spill] sm:$0xff] %v6240_v48  ;;  %9034 = vst [vmem:[#allocation14_spill] sm:$0xff] %v6242_v26  ;;  %v1914_v56 = vrot.slane %v6240_v48, 7  ;;  %v1915_v57 = vrot.slane %v6244_v20, 7  ;;  %v1930_v25 = vrot.slane %v6242_v26, 7  ;;  %v1931_v51 = vrot.slane %v6246_v27, 7 }
 0x271   : > { %9035 = vst [vmem:[#allocation15_spill] sm:$0xff] %v6244_v20  ;;  %9036 = vst [vmem:[#allocation78_spill] sm:$0xff] %v6246_v27  ;;  %v1916_v3 = vrot.slane %v6248_v61, 7  ;;  %v1917_v41 = vrot.slane %v6252_v59, 7  ;;  %v1932_v16 = vrot.slane %v6250_v49, 7  ;;  %v1933_v46 = vrot.slane %v6254_v38, 7 }
 0x272   : > { %v6266_v22 = vsel %vm292_vm1, %v1914_v56, %v1930_v25  ;;  %v6270_v18 = vsel %vm292_vm1, %v1915_v57, %v1931_v51  ;;  %v1962_v40 = vsel %vm292_vm1, %v1930_v25, %v1914_v56  ;;  %v1963_v60 = vsel %vm292_vm1, %v1931_v51, %v1915_v57 }
 0x273   : > { %v1948_v34 = vsel %vm292_vm1, %v1916_v3, %v1932_v16  ;;  %v1949_v45 = vsel %vm292_vm1, %v1917_v41, %v1933_v46  ;;  %v1964_v56 = vsel %vm292_vm1, %v1932_v16, %v1916_v3  ;;  %v1965_v57 = vsel %vm292_vm1, %v1933_v46, %v1917_v41 }
 0x274   : > { %v1978_v25 = vrot.slane %v6240_v48, 1  ;;  %v1979_v51 = vrot.slane %v6244_v20, 1  ;;  %v1980_v35 = vrot.slane %v6248_v61, 1  ;;  %v1981_v43 = vrot.slane %v6252_v59, 1 }
 0x275   : > { %v1994_v7 = vrot.slane %v6242_v26, 1  ;;  %v1995_v31 = vrot.slane %v6246_v27, 1  ;;  %v1996_v12 = vrot.slane %v6250_v49, 1  ;;  %v1997_v28 = vrot.slane %v6254_v38, 1 }
 0x276   : > { %v2126_v3 = vmul.f32 %v6279_v13, %v6266_v22  ;;  %v2128_v41 = vmul.f32 %v6279_v13, %v6270_v18  ;;  %v2130_v16 = vmul.f32 %v6279_v13, %v1948_v34  ;;  %v2166_v46 = vmul.f32 %v6284_v11, %v6270_v18 }
 0x277   : > { %v6311_v63 = vsel %vm357_vm2, %v1978_v25, %v1994_v7  ;;  %v6315_v23 = vsel %vm357_vm2, %v1979_v51, %v1995_v31  ;;  %v6319_v29 = vsel %vm357_vm2, %v1980_v35, %v1996_v12  ;;  %v6323_v55 = vsel %vm357_vm2, %v1981_v43, %v1997_v28 }
 0x278   : > { %9040 = vst [vmem:[#allocation44_spill] sm:$0xff] %v6311_v63  ;;  %9041 = vst [vmem:[#allocation80_spill] sm:$0xff] %v6315_v23  ;;  %v2026_v42 = vsel %vm357_vm2, %v1994_v7, %v1978_v25  ;;  %v2027_v50 = vsel %vm357_vm2, %v1995_v31, %v1979_v51  ;;  %v2028_v4 = vsel %vm357_vm2, %v1996_v12, %v1980_v35  ;;  %v6386_v7 = vld [vmem:[%s8227_s3 + $0x1] ss:$0 sm:$0xff] }
 0x279   : > { %v2029_v2 = vsel %vm357_vm2, %v1997_v28, %v1981_v43  ;;  %v6336_v33 = vsel %vm390_vm3, %v6311_v63, %v1962_v40  ;;  %v6341_v53 = vsel %vm390_vm3, %v6315_v23, %v1963_v60  ;;  %v2058_v31 = vsel %vm390_vm3, %v6319_v29, %v1964_v56  ;;  %v6352_v28 = vld [vmem:[%s8227_s3 + $0x6] ss:$0 sm:$0xff]  ;;  %9046 = vst [vmem:[#allocation82_spill] sm:$0xff] %v6386_v7 }
 0x27a   : > { %v2060_v12 = vsel %vm390_vm3, %v6323_v55, %v1965_v57  ;;  %9042 = vst [vmem:[#allocation45_spill] sm:$0xff] %v6352_v28  ;;  %v6357_v43 = vsel %vm425_vm4, %v6266_v22, %v2026_v42  ;;  %v6362_v35 = vsel %vm425_vm4, %v6270_v18, %v2027_v50  ;;  %v6366_v60 = vsel %vm425_vm4, %v1948_v34, %v2028_v4 }
 0x27b   : > { %9044 = vst [vmem:[#allocation81_spill] sm:$0xff] %v6357_v43  ;;  %9045 = vst [vmem:[#allocation46_spill] sm:$0xff] %v6362_v35  ;;  %v6370_v40 = vsel %vm425_vm4, %v1949_v45, %v2029_v2  ;;  %v2125_v56 = vmul.f32 %v6279_v13, %v6336_v33  ;;  %v2127_v42 = vmul.f32 %v6279_v13, %v6341_v53 }
 0x27c   : > { %v2129_v57 = vmul.f32 %v6279_v13, %v2058_v31  ;;  %v2165_v50 = vmul.f32 %v6284_v11, %v6341_v53  ;;  %v2167_v25 = vmul.f32 %v6284_v11, %v2058_v31  ;;  %v2168_v4 = vmul.f32 %v6284_v11, %v1948_v34 }
 0x27d   : > { %v2169_v51 = vmul.f32 %v6284_v11, %v2060_v12  ;;  %v2170_v2 = vmul.f32 %v6284_v11, %v1949_v45  ;;  %v2198_v37 = vadd.f32 %v2166_v46, %v2126_v3  ;;  %v2237_v13 = vmul.f32 %v6352_v28, %v2058_v31 }
 0x27e   : > { %v2197_v0 = vadd.f32 %v2165_v50, %v2125_v56  ;;  %v2238_v5 = vmul.f32 %v6352_v28, %v1948_v34  ;;  %v2199_v52 = vadd.f32 %v2167_v25, %v2127_v42  ;;  %v2200_v19 = vadd.f32 %v2168_v4, %v2128_v41 }
 0x27f   : > { %v2201_v44 = vadd.f32 %v2169_v51, %v2129_v57  ;;  %v2202_v39 = vadd.f32 %v2170_v2, %v2130_v16  ;;  %v2239_v47 = vmul.f32 %v6352_v28, %v2060_v12  ;;  %v2240_v1 = vmul.f32 %v6352_v28, %v1949_v45 }
 0x280   : > { %v2267_v6 = vadd.f32 %v2237_v13, %v2197_v0  ;;  %v2268_v15 = vadd.f32 %v2238_v5, %v2198_v37  ;;  %v2305_v34 = vmul.f32 %v6386_v7, %v6240_v48  ;;  %v2306_v41 = vmul.f32 %v6386_v7, %v6242_v26 }
 0x281   : > { %v2271_v3 = vadd.f32 %v2237_v13, %v2201_v44  ;;  %v2272_v46 = vadd.f32 %v2238_v5, %v2202_v39  ;;  %v2269_v16 = vadd.f32 %v2239_v47, %v2199_v52  ;;  %v2270_v31 = vadd.f32 %v2240_v1, %v2200_v19  ;;  %v6412_v13 = vld [vmem:[%s8227_s3 + $0x7] ss:$0 sm:$0xff] }
 0x282   : > { %v2307_v45 = vmul.f32 %v6386_v7, %v6244_v20  ;;  %v2308_v37 = vmul.f32 %v6386_v7, %v6246_v27  ;;  %v2309_v0 = vmul.f32 %v6386_v7, %v6248_v61  ;;  %v2310_v39 = vmul.f32 %v6386_v7, %v6250_v49  ;;  %9048 = vst [vmem:[#allocation59_spill] sm:$0xff] %v6412_v13 }
 0x283   : > { %v2337_v44 = vadd.f32 %v2305_v34, %v2267_v6  ;;  %v2338_v5 = vadd.f32 %v2306_v41, %v2268_v15  ;;  %v2377_v19 = vmul.f32 %v6395_v17, %v6244_v20  ;;  %v2378_v52 = vmul.f32 %v6395_v17, %v6246_v27  ;;  %v6425_v6 = vld [vmem:[%s8227_s3 + $0x2] ss:$0 sm:$0xff] }
 0x284   : > { %v2339_v1 = vadd.f32 %v2307_v45, %v2269_v16  ;;  %v2340_v47 = vadd.f32 %v2308_v37, %v2270_v31  ;;  %v2341_v12 = vadd.f32 %v2309_v0, %v2271_v3  ;;  %v2342_v56 = vadd.f32 %v2310_v39, %v2272_v46  ;;  %9049 = vst [vmem:[#allocation57_spill] sm:$0xff] %v6425_v6  ;;  %v6442_v45 = vld [vmem:[%s8227_s3 + $0x5] ss:$0 sm:$0xff] }
 0x285   : > { %v2379_v42 = vmul.f32 %v6395_v17, %v6248_v61  ;;  %v2380_v15 = vmul.f32 %v6395_v17, %v6250_v49  ;;  %v2381_v57 = vmul.f32 %v6395_v17, %v6252_v59  ;;  %v2382_v50 = vmul.f32 %v6395_v17, %v6254_v38  ;;  %9050 = vst [vmem:[#allocation95_spill] sm:$0xff] %v6442_v45 }
 0x286   : > { %v2409_v25 = vadd.f32 %v2377_v19, %v2337_v44  ;;  %v2410_v4 = vadd.f32 %v2378_v52, %v2338_v5  ;;  %v2449_v3 = vmul.f32 %v6412_v13, %v6248_v61  ;;  %v2450_v46 = vmul.f32 %v6412_v13, %v6250_v49  ;;  %v6459_v52 = vld [vmem:[%s8227_s3 + $0x8] ss:$0 sm:$0xff] }
 0x287   : > { %v2411_v51 = vadd.f32 %v2379_v42, %v2339_v1  ;;  %v2412_v2 = vadd.f32 %v2380_v15, %v2340_v47  ;;  %v2413_v34 = vadd.f32 %v2381_v57, %v2341_v12  ;;  %v2414_v41 = vadd.f32 %v2382_v50, %v2342_v56  ;;  %9051 = vst [vmem:[#allocation96_spill] sm:$0xff] %v6459_v52 }
 0x288   : > { %v2451_v16 = vmul.f32 %v6412_v13, %v6252_v59  ;;  %v2452_v31 = vmul.f32 %v6412_v13, %v6254_v38  ;;  %v2479_v37 = vadd.f32 %v2449_v3, %v2409_v25  ;;  %v2480_v0 = vadd.f32 %v2450_v46, %v2410_v4 }
 0x289   : > { %v2517_v61 = vmul.f32 %v6425_v6, %v6311_v63  ;;  %v2518_v49 = vmul.f32 %v6425_v6, %v6357_v43  ;;  %v2483_v5 = vadd.f32 %v2449_v3, %v2413_v34  ;;  %v2484_v59 = vadd.f32 %v2450_v46, %v2414_v41 }
 0x28a   : > { %v2481_v39 = vadd.f32 %v2451_v16, %v2411_v51  ;;  %v2482_v44 = vadd.f32 %v2452_v31, %v2412_v2  ;;  %v2519_v38 = vmul.f32 %v6425_v6, %v6315_v23  ;;  %v2520_v1 = vmul.f32 %v6425_v6, %v6362_v35 }
 0x28b   : > { %v2521_v47 = vmul.f32 %v6425_v6, %v6319_v29  ;;  %v2522_v19 = vmul.f32 %v6425_v6, %v6366_v60  ;;  %v2549_v12 = vadd.f32 %v2517_v61, %v2479_v37  ;;  %v2550_v56 = vadd.f32 %v2518_v49, %v2480_v0 }
 0x28c   : > { %v2589_v42 = vmul.f32 %v6442_v45, %v6315_v23  ;;  %v2590_v15 = vmul.f32 %v6442_v45, %v6362_v35  ;;  %v2551_v57 = vadd.f32 %v2519_v38, %v2481_v39  ;;  %v2552_v50 = vadd.f32 %v2520_v1, %v2482_v44 }
 0x28d   : > { %v2553_v25 = vadd.f32 %v2521_v47, %v2483_v5  ;;  %v2554_v4 = vadd.f32 %v2522_v19, %v2484_v59  ;;  %v2591_v51 = vmul.f32 %v6442_v45, %v6319_v29  ;;  %v2592_v2 = vmul.f32 %v6442_v45, %v6366_v60 }
 0x28e   : > { %v2593_v3 = vmul.f32 %v6442_v45, %v6323_v55  ;;  %v2594_v46 = vmul.f32 %v6442_v45, %v6370_v40  ;;  %v2621_v34 = vadd.f32 %v2589_v42, %v2549_v12  ;;  %v2622_v41 = vadd.f32 %v2590_v15, %v2550_v56 }
 0x28f   : > { %v2661_v16 = vmul.f32 %v6459_v52, %v6319_v29  ;;  %v2662_v31 = vmul.f32 %v6459_v52, %v6366_v60  ;;  %v2623_v37 = vadd.f32 %v2591_v51, %v2551_v57  ;;  %v2624_v0 = vadd.f32 %v2592_v2, %v2552_v50 }
 0x290   : > { %v2625_v61 = vadd.f32 %v2593_v3, %v2553_v25  ;;  %v2626_v49 = vadd.f32 %v2594_v46, %v2554_v4  ;;  %v2663_v39 = vmul.f32 %v6459_v52, %v6323_v55  ;;  %v2664_v44 = vmul.f32 %v6459_v52, %v6370_v40 }
 0x291   : > { %v6481_v5 = vadd.f32 %v2661_v16, %v2621_v34  ;;  %v6483_v59 = vadd.f32 %v2662_v31, %v2622_v41  ;;  %v6495_v47 = vmul.f32 %v6284_v11, %v6336_v33  ;;  %v6499_v55 = vmul.f32 %v6284_v11, %v6266_v22  ;;  %v9074_v34 = vld [vmem:[#allocation75_spill] sm:$0xff] }
 0x292   : > { %v6485_v38 = vadd.f32 %v2661_v16, %v2625_v61  ;;  %v6487_v29 = vadd.f32 %v2662_v31, %v2626_v49  ;;  %v6489_v1 = vadd.f32 %v2663_v39, %v2623_v37  ;;  %v6491_v60 = vadd.f32 %v2664_v44, %v2624_v0  ;;  %v9076_v16 = vld [vmem:[#allocation105_spill] sm:$0xff]  ;;  %v9078_v37 = vld [vmem:[#allocation76_spill] sm:$0xff] }
 0x293   : > { %9052 = vst [vmem:[#allocation47_spill] sm:$0xff] %v6481_v5  ;;  %9053 = vst [vmem:[#allocation83_spill] sm:$0xff] %v6483_v59  ;;  %v6503_v40 = vmul.f32 %v6352_v28, %v6336_v33  ;;  %v6507_v19 = vmul.f32 %v6352_v28, %v6266_v22  ;;  %v6511_v12 = vmul.f32 %v6352_v28, %v6341_v53  ;;  %v9080_v61 = vld [vmem:[#allocation32_spill] sm:$0xff]  ;;  %v9082_v39 = vld [vmem:[#allocation77_spill] sm:$0xff] }
 0x294   : > { %9054 = vst [vmem:[#allocation48_spill] sm:$0xff] %v6485_v38  ;;  %9055 = vst [vmem:[#allocation84_spill] sm:$0xff] %v6487_v29  ;;  %v6515_v56 = vmul.f32 %v6352_v28, %v6270_v18  ;;  %v9064_v42 = vsub.f32 %v5944_v10, %v6162_v9  ;;  %v9065_v33 = vsub.f32 %v5938_v32, %v6162_v9 }
 0x295   : > { %9056 = vst [vmem:[#allocation49_spill] sm:$0xff] %v6489_v1  ;;  %9057 = vst [vmem:[#allocation58_spill] sm:$0xff] %v6491_v60  ;;  %v9066_v22 = vsub.f32 %v5954_v8, %v6162_v9  ;;  %v9067_v50 = vsub.f32 %v5952_v24, %v6162_v9  ;;  %v9068_v10 = vsub.f32 %v5967_v30, %v6162_v9 }
 0x296   : > { %9058 = vst [vmem:[#allocation85_spill] sm:$0xff] %v6495_v47  ;;  %9059 = vst [vmem:[#allocation61_spill] sm:$0xff] %v6499_v55  ;;  %v1838_v15 = vmul.f32 %v6230_v36, %v9064_v42  ;;  %v1839_v57 = vmul.f32 %v6230_v36, %v9065_v33  ;;  %v9069_v32 = vsub.f32 %v5965_v62, %v6162_v9  ;;  %v9084_v33 = vld [vmem:[#allocation36_spill] sm:$0xff] }
 0x297   : > { %9060 = vst [vmem:[#allocation50_spill] sm:$0xff] %v6503_v40  ;;  %9061 = vst [vmem:[#allocation51_spill] sm:$0xff] %v6507_v19  ;;  %v1840_v53 = vmul.f32 %v6230_v36, %v9066_v22  ;;  %v1841_v18 = vmul.f32 %v6230_v36, %v9067_v50  ;;  %v1842_v25 = vmul.f32 %v6230_v36, %v9068_v10  ;;  %v9086_v10 = vld [vmem:[#allocation5_spill] sm:$0xff] }
 0x298   : > { %9062 = vst [vmem:[#allocation55_spill] sm:$0xff] %v6511_v12  ;;  %9063 = vst [vmem:[#allocation56_spill] sm:$0xff] %v6515_v56  ;;  %v1843_v4 = vmul.f32 %v6230_v36, %v9069_v32  ;;  %v9070_v8 = vsub.f32 %v5981_v21, %v6162_v9  ;;  %v9071_v24 = vsub.f32 %v5979_v54, %v6162_v9 }
 0x299   : > { %v9072_v30 = vsub.f32 %v5995_v58, %v6162_v9  ;;  %v9073_v62 = vsub.f32 %v5993_v14, %v6162_v9  ;;  %v9075_v21 = vsub.f32 %v9074_v34, %v6162_v9  ;;  %v9077_v54 = vsub.f32 %v9076_v16, %v6162_v9  ;;  %v9090_v34 = vld [vmem:[#allocation7_spill] sm:$0xff] }
 0x29a   : > { %v1844_v51 = vmul.f32 %v6230_v36, %v9070_v8  ;;  %v1845_v2 = vmul.f32 %v6230_v36, %v9071_v24  ;;  %v9079_v58 = vsub.f32 %v9078_v37, %v6162_v9  ;;  %v9081_v14 = vsub.f32 %v9080_v61, %v6162_v9  ;;  %v9088_v24 = vld [vmem:[#allocation40_spill] sm:$0xff]  ;;  %v9094_v61 = vld [vmem:[#allocation10_spill] sm:$0xff] }
 0x29b   : > { %v1846_v3 = vmul.f32 %v6230_v36, %v9072_v30  ;;  %v1847_v46 = vmul.f32 %v6230_v36, %v9073_v62  ;;  %v1848_v41 = vmul.f32 %v6230_v36, %v9075_v21  ;;  %v1849_v31 = vmul.f32 %v6230_v36, %v9077_v54  ;;  %v9092_v54 = vld [vmem:[#allocation6_spill] sm:$0xff] }
 0x29c   : > { %v1850_v0 = vmul.f32 %v6230_v36, %v9079_v58  ;;  %v1851_v49 = vmul.f32 %v6230_v36, %v9081_v14  ;;  %v9083_v44 = vsub.f32 %v9082_v39, %v6162_v9  ;;  %v9085_v22 = vsub.f32 %v9084_v33, %v6162_v9 }
 0x29d   : > { %v9087_v32 = vsub.f32 %v9086_v10, %v6162_v9  ;;  %v9089_v30 = vsub.f32 %v9088_v24, %v6162_v9  ;;  %v9091_v21 = vsub.f32 %v9090_v34, %v6162_v9  ;;  %v9093_v37 = vsub.f32 %v9092_v54, %v6162_v9  ;;  %v9098_v10 = vld [vmem:[#allocation12_spill] sm:$0xff] }
 0x29e   : > { %v1852_v42 = vmul.f32 %v6230_v36, %v9083_v44  ;;  %v1853_v50 = vmul.f32 %v6230_v36, %v9085_v22  ;;  %v9095_v14 = vsub.f32 %v9094_v61, %v6162_v9  ;;  %v9096_v44 = vld [vmem:[#allocation8_spill] sm:$0xff]  ;;  %v6613_v54 = vmax.f32 %v1838_v15, 0.0 }
 0x29f   : > { %v1854_v8 = vmul.f32 %v6230_v36, %v9087_v32  ;;  %v1855_v62 = vmul.f32 %v6230_v36, %v9089_v30  ;;  %v1856_v16 = vmul.f32 %v6230_v36, %v9091_v21  ;;  %v1857_v58 = vmul.f32 %v6230_v36, %v9093_v37  ;;  %v9100_v30 = vld [vmem:[#allocation11_spill] sm:$0xff] }
 0x2a0   : > { %v1858_v39 = vmul.f32 %v6230_v36, %v9095_v14  ;;  %v9097_v33 = vsub.f32 %v9096_v44, %v6162_v9  ;;  %v9099_v32 = vsub.f32 %v9098_v10, %v6162_v9  ;;  %v9101_v34 = vsub.f32 %v9100_v30, %v6162_v9  ;;  %9102 = vst [vmem:[#allocation53_spill] sm:$0xff] %v6613_v54 }
 0x2a1   : > { %v6615_v37 = vmax.f32 %v1839_v57, 0.0  ;;  %v6617_v61 = vmax.f32 %v1840_v53, 0.0  ;;  %v6619_v14 = vmax.f32 %v1841_v18, 0.0  ;;  %v6621_v44 = vmax.f32 %v1842_v25, 0.0 }
 0x2a2   : > { %v1859_v22 = vmul.f32 %v6230_v36, %v9097_v33  ;;  %v1860_v24 = vmul.f32 %v6230_v36, %v9099_v32  ;;  %v1861_v21 = vmul.f32 %v6230_v36, %v9101_v34  ;;  %v6623_v33 = vmax.f32 %v1843_v4, 0.0 }
 0x2a3   : > { %9103 = vst [vmem:[#allocation28_spill] sm:$0xff] %v6615_v37  ;;  %9104 = vst [vmem:[#allocation106_spill] sm:$0xff] %v6617_v61  ;;  %v6625_v10 = vmax.f32 %v1844_v51, 0.0  ;;  %v6627_v32 = vmax.f32 %v1845_v2, 0.0  ;;  %v6629_v29 = vmax.f32 %v1846_v3, 0.0  ;;  %v6631_v9 = vmax.f32 %v1847_v46, 0.0 }
 0x2a4   : > { %9105 = vst [vmem:[#allocation62_spill] sm:$0xff] %v6619_v14  ;;  %9106 = vst [vmem:[#allocation86_spill] sm:$0xff] %v6621_v44  ;;  %v6633_v36 = vmax.f32 %v1848_v41, 0.0  ;;  %v6635_v15 = vmax.f32 %v1849_v31, 0.0  ;;  %v6637_v57 = vmax.f32 %v1850_v0, 0.0  ;;  %v6639_v53 = vmax.f32 %v1851_v49, 0.0 }
 0x2a5   : > { %9107 = vst [vmem:[#allocation63_spill] sm:$0xff] %v6623_v33  ;;  %9108 = vst [vmem:[#allocation87_spill] sm:$0xff] %v6625_v10  ;;  %v6641_v18 = vmax.f32 %v1852_v42, 0.0  ;;  %v6643_v25 = vmax.f32 %v1853_v50, 0.0  ;;  %v6645_v4 = vmax.f32 %v1854_v8, 0.0  ;;  %v6647_v51 = vmax.f32 %v1855_v62, 0.0 }
 0x2a6   : > { %9109 = vst [vmem:[#allocation64_spill] sm:$0xff] %v6627_v32  ;;  %9110 = vst [vmem:[#allocation88_spill] sm:$0xff] %v6629_v29  ;;  %v6649_v2 = vmax.f32 %v1856_v16, 0.0  ;;  %v6651_v3 = vmax.f32 %v1857_v58, 0.0  ;;  %v6653_v46 = vmax.f32 %v1858_v39, 0.0  ;;  %v6655_v41 = vmax.f32 %v1859_v22, 0.0 }
 0x2a7   : > { %9111 = vst [vmem:[#allocation65_spill] sm:$0xff] %v6631_v9  ;;  %9112 = vst [vmem:[#allocation89_spill] sm:$0xff] %v6633_v36  ;;  %v6657_v31 = vmax.f32 %v1860_v24, 0.0  ;;  %v6659_v0 = vmax.f32 %v1861_v21, 0.0  ;;  %v1902_v49 = vrot.slane %v6613_v54, 7  ;;  %v1904_v50 = vrot.slane %v6621_v44, 7 }
 0x2a8   : > { %9113 = vst [vmem:[#allocation66_spill] sm:$0xff] %v6635_v15  ;;  %9114 = vst [vmem:[#allocation90_spill] sm:$0xff] %v6637_v57  ;;  %v1905_v8 = vrot.slane %v6625_v10, 7  ;;  %v1906_v62 = vrot.slane %v6629_v29, 7  ;;  %v1907_v16 = vrot.slane %v6633_v36, 7  ;;  %v1908_v58 = vrot.slane %v6637_v57, 7 }
 0x2a9   : > { %9115 = vst [vmem:[#allocation67_spill] sm:$0xff] %v6639_v53  ;;  %9116 = vst [vmem:[#allocation91_spill] sm:$0xff] %v6641_v18  ;;  %v1909_v39 = vrot.slane %v6641_v18, 7  ;;  %v2938_v22 = vld [vmem:[%s8228_s4] sm:$0xf]  ;;  %v1910_v24 = vrot.slane %v6645_v4, 7 }
 0x2aa   : > { %9117 = vst [vmem:[#allocation68_spill] sm:$0xff] %v6643_v25  ;;  %9118 = vst [vmem:[#allocation92_spill] sm:$0xff] %v6645_v4  ;;  %v1911_v30 = vrot.slane %v6649_v2, 7  ;;  %v1912_v34 = vrot.slane %v6653_v46, 7  ;;  %v1913_v21 = vrot.slane %v6657_v31, 7  ;;  %3852 = vmatprep.subr.msk.mxu1 %vm1400_vm0, %v2938_v22  ;;  %v1918_v42 = vrot.slane %v6615_v37, 7 }
 0x2ab   : > { %9119 = vst [vmem:[#allocation69_spill] sm:$0xff] %v6647_v51  ;;  %9120 = vst [vmem:[#allocation93_spill] sm:$0xff] %v6649_v2  ;;  %v1920_v60 = vrot.slane %v6623_v33, 7  ;;  %v1921_v1 = vrot.slane %v6627_v32, 7  ;;  %3853 = vmatpush3.msk.msra.mxu1 %vm1400_vm0, %v2938_v22  ;;  %v1922_v59 = vrot.slane %v6631_v9, 7  ;;  %v1923_v5 = vrot.slane %v6635_v15, 7 }
 0x2ac   : > { %9121 = vst [vmem:[#allocation70_spill] sm:$0xff] %v6651_v3  ;;  %9122 = vst [vmem:[#allocation94_spill] sm:$0xff] %v6653_v46  ;;  %v1924_v35 = vrot.slane %v6639_v53, 7  ;;  %v1925_v23 = vrot.slane %v6643_v25, 7  ;;  %v1926_v6 = vrot.slane %v6647_v51, 7  ;;  %v1927_v52 = vrot.slane %v6651_v3, 7 }
 0x2ad   : > { %9123 = vst [vmem:[#allocation72_spill] sm:$0xff] %v6655_v41  ;;  %9124 = vst [vmem:[#allocation52_spill] sm:$0xff] %v6657_v31  ;;  %v1928_v38 = vrot.slane %v6655_v41, 7  ;;  %v1929_v43 = vrot.slane %v6659_v0, 7  ;;  %v6692_v63 = vsel %vm292_vm1, %v1902_v49, %v1918_v42  ;;  %v9127_v22 = vrot.slane %v6619_v14, 7 }
 0x2ae   : > { %9125 = vst [vmem:[#allocation73_spill] sm:$0xff] %v6659_v0  ;;  %v9128_v27 = vrot.slane %v6617_v61, 7  ;;  %v6704_v13 = vsel %vm292_vm1, %v1904_v50, %v1920_v60  ;;  %v6708_v26 = vsel %vm292_vm1, %v1905_v8, %v1921_v1  ;;  %v6712_v17 = vsel %vm292_vm1, %v1906_v62, %v1922_v59 }
 0x2af   : > { %9130 = vst [vmem:[#allocation54_spill] sm:$0xff] %v6704_v13  ;;  %9131 = vst [vmem:[#allocation107_spill] sm:$0xff] %v6708_v26  ;;  %v6716_v48 = vsel %vm292_vm1, %v1907_v16, %v1923_v5  ;;  %v6728_v61 = vsel %vm292_vm1, %v1910_v24, %v1926_v6  ;;  %v6732_v7 = vsel %vm292_vm1, %v1911_v30, %v1927_v52 }
 0x2b0   : > { %v6700_v20 = vsel %vm292_vm1, %v9128_v27, %v9127_v22  ;;  %9132 = vst [vmem:[#allocation2_spill] sm:$0xff] %v6712_v17  ;;  %9133 = vst [vmem:[#allocation108_spill] sm:$0xff] %v6716_v48  ;;  %v6720_v27 = vsel %vm292_vm1, %v1908_v58, %v1924_v35  ;;  %v6724_v22 = vsel %vm292_vm1, %v1909_v39, %v1925_v23 }
 0x2b1   : > { %9129 = vst [vmem:[#allocation74_spill] sm:$0xff] %v6700_v20  ;;  %9134 = vst [vmem:[#allocation71_spill] sm:$0xff] %v6720_v27  ;;  %v6736_v14 = vsel %vm292_vm1, %v1912_v34, %v1928_v38  ;;  %v6740_v56 = vsel %vm292_vm1, %v1913_v21, %v1929_v43  ;;  %v6744_v12 = vsel %vm292_vm1, %v1918_v42, %v1902_v49  ;;  %v1968_v42 = vrot.slane %v6621_v44, 1 }
 0x2b2   : > { %9135 = vst [vmem:[#allocation109_spill] sm:$0xff] %v6724_v22  ;;  %9136 = vst [vmem:[#allocation3_spill] sm:$0xff] %v6728_v61  ;;  %v1952_v19 = vsel %vm292_vm1, %v1920_v60, %v1904_v50  ;;  %v1953_v40 = vsel %vm292_vm1, %v1921_v1, %v1905_v8  ;;  %v1954_v28 = vsel %vm292_vm1, %v1922_v59, %v1906_v62  ;;  %v1971_v50 = vrot.slane %v6633_v36, 1 }
 0x2b3   : > { %9137 = vst [vmem:[#allocation110_spill] sm:$0xff] %v6732_v7  ;;  %9138 = vst [vmem:[#allocation98_spill] sm:$0xff] %v6736_v14  ;;  %v1955_v55 = vsel %vm292_vm1, %v1923_v5, %v1907_v16  ;;  %v1956_v47 = vsel %vm292_vm1, %v1924_v35, %v1908_v58  ;;  %v1957_v11 = vsel %vm292_vm1, %v1925_v23, %v1909_v39  ;;  %v1969_v35 = vrot.slane %v6625_v10, 1 }
 0x2b4   : > { %9139 = vst [vmem:[#allocation111_spill] sm:$0xff] %v6744_v12  ;;  %v1958_v49 = vsel %vm292_vm1, %v1926_v6, %v1910_v24  ;;  %v1959_v60 = vsel %vm292_vm1, %v1927_v52, %v1911_v30  ;;  %v1960_v1 = vsel %vm292_vm1, %v1928_v38, %v1912_v34  ;;  %v1961_v59 = vsel %vm292_vm1, %v1929_v43, %v1913_v21 }
 0x2b5   : > { %v1970_v23 = vrot.slane %v6629_v29, 1  ;;  %v1972_v6 = vrot.slane %v6637_v57, 1  ;;  %v1973_v52 = vrot.slane %v6641_v18, 1  ;;  %v1974_v8 = vrot.slane %v6645_v4, 1 }
 0x2b6   : > { %v1975_v38 = vrot.slane %v6649_v2, 1  ;;  %v1976_v43 = vrot.slane %v6653_v46, 1  ;;  %v1977_v62 = vrot.slane %v6657_v31, 1  ;;  %v1984_v58 = vrot.slane %v6623_v33, 1 }
 0x2b7   : > { %v1985_v39 = vrot.slane %v6627_v32, 1  ;;  %v1986_v24 = vrot.slane %v6631_v9, 1  ;;  %v1987_v30 = vrot.slane %v6635_v15, 1  ;;  %v1988_v34 = vrot.slane %v6639_v53, 1 }
 0x2b8   : > { %v1989_v21 = vrot.slane %v6643_v25, 1  ;;  %v1990_v5 = vrot.slane %v6647_v51, 1  ;;  %v1991_v12 = vrot.slane %v6651_v3, 1  ;;  %v1992_v31 = vrot.slane %v6655_v41, 1 }
 0x2b9   : > { %v1993_v16 = vrot.slane %v6659_v0, 1  ;;  %v6790_v46 = vsel %vm357_vm2, %v1968_v42, %v1984_v58  ;;  %v6794_v2 = vsel %vm357_vm2, %v1969_v35, %v1985_v39  ;;  %v6798_v4 = vsel %vm357_vm2, %v1970_v23, %v1986_v24 }
 0x2ba   : > { %9140 = vst [vmem:[#allocation99_spill] sm:$0xff] %v6790_v46  ;;  %9141 = vst [vmem:[#allocation112_spill] sm:$0xff] %v6794_v2  ;;  %v6802_v51 = vsel %vm357_vm2, %v1971_v50, %v1987_v30  ;;  %v6806_v41 = vsel %vm357_vm2, %v1972_v6, %v1988_v34  ;;  %v6810_v0 = vsel %vm357_vm2, %v1973_v52, %v1989_v21  ;;  %v9150_v57 = vrot.slane %v6613_v54, 1 }
 0x2bb   : > { %9142 = vst [vmem:[#allocation100_spill] sm:$0xff] %v6798_v4  ;;  %9143 = vst [vmem:[#allocation113_spill] sm:$0xff] %v6802_v51  ;;  %v6814_v3 = vsel %vm357_vm2, %v1974_v8, %v1990_v5  ;;  %v6818_v25 = vsel %vm357_vm2, %v1975_v38, %v1991_v12  ;;  %v6822_v18 = vsel %vm357_vm2, %v1976_v43, %v1992_v31  ;;  %v9151_v15 = vrot.slane %v6615_v37, 1 }
 0x2bc   : > { %9144 = vst [vmem:[#allocation101_spill] sm:$0xff] %v6806_v41  ;;  %9145 = vst [vmem:[#allocation97_spill] sm:$0xff] %v6810_v0  ;;  %v6826_v53 = vsel %vm357_vm2, %v1977_v62, %v1993_v16  ;;  %v2016_v9 = vsel %vm357_vm2, %v1984_v58, %v1968_v42  ;;  %v2017_v29 = vsel %vm357_vm2, %v1985_v39, %v1969_v35 }
 0x2bd   : > { %9146 = vst [vmem:[#allocation102_spill] sm:$0xff] %v6814_v3  ;;  %9147 = vst [vmem:[#allocation9_spill] sm:$0xff] %v6818_v25  ;;  %v2014_v36 = vsel %vm357_vm2, %v9151_v15, %v9150_v57  ;;  %v2018_v32 = vsel %vm357_vm2, %v1986_v24, %v1970_v23  ;;  %v2019_v10 = vsel %vm357_vm2, %v1987_v30, %v1971_v50 }
 0x2be   : > { %9148 = vst [vmem:[#allocation103_spill] sm:$0xff] %v6822_v18  ;;  %9149 = vst [vmem:[#allocation20_spill] sm:$0xff] %v6826_v53  ;;  %v2020_v54 = vsel %vm357_vm2, %v1988_v34, %v1972_v6  ;;  %v2021_v33 = vsel %vm357_vm2, %v1989_v21, %v1973_v52  ;;  %v2022_v15 = vsel %vm357_vm2, %v1990_v5, %v1974_v8  ;;  %v9174_v6 = vld [vmem:[#allocation43_spill] sm:$0xff] }
 0x2bf   : > { %v2023_v57 = vsel %vm357_vm2, %v1991_v12, %v1975_v38  ;;  %v2024_v42 = vsel %vm357_vm2, %v1992_v31, %v1976_v43  ;;  %v2025_v35 = vsel %vm357_vm2, %v1993_v16, %v1977_v62  ;;  %v6857_v23 = vsel %vm390_vm3, %v6790_v46, %v1952_v19 }
 0x2c0   : > { %9152 = vst [vmem:[#allocation104_spill] sm:$0xff] %v6857_v23  ;;  %v6862_v50 = vsel %vm390_vm3, %v6794_v2, %v1953_v40  ;;  %v6867_v12 = vsel %vm390_vm3, %v6798_v4, %v1954_v28  ;;  %v6872_v31 = vsel %vm390_vm3, %v6802_v51, %v1955_v55  ;;  %v6877_v19 = vsel %vm390_vm3, %v6806_v41, %v1956_v47 }
 0x2c1   : > { %9153 = vst [vmem:[#allocation24_spill] sm:$0xff] %v6862_v50  ;;  %9154 = vst [vmem:[#allocation75_spill] sm:$0xff] %v6867_v12  ;;  %v6882_v40 = vsel %vm390_vm3, %v6810_v0, %v1957_v11  ;;  %v6887_v28 = vsel %vm390_vm3, %v6814_v3, %v1958_v49  ;;  %v6892_v55 = vsel %vm390_vm3, %v6818_v25, %v1959_v60 }
 0x2c2   : > { %9155 = vst [vmem:[#allocation105_spill] sm:$0xff] %v6872_v31  ;;  %9156 = vst [vmem:[#allocation76_spill] sm:$0xff] %v6877_v19  ;;  %v6897_v47 = vsel %vm390_vm3, %v6822_v18, %v1960_v1  ;;  %v6902_v11 = vsel %vm390_vm3, %v6826_v53, %v1961_v59  ;;  %v6907_v49 = vsel %vm425_vm4, %v6692_v63, %v2014_v36 }
 0x2c3   : > { %9157 = vst [vmem:[#allocation32_spill] sm:$0xff] %v6882_v40  ;;  %9158 = vst [vmem:[#allocation77_spill] sm:$0xff] %v6887_v28  ;;  %v6912_v60 = vsel %vm425_vm4, %v6704_v13, %v2016_v9  ;;  %v6917_v1 = vsel %vm425_vm4, %v6708_v26, %v2017_v29  ;;  %v6922_v59 = vsel %vm425_vm4, %v6712_v17, %v2018_v32 }
 0x2c4   : > { %9159 = vst [vmem:[#allocation36_spill] sm:$0xff] %v6892_v55  ;;  %9160 = vst [vmem:[#allocation5_spill] sm:$0xff] %v6897_v47  ;;  %v6927_v36 = vsel %vm425_vm4, %v6716_v48, %v2019_v10  ;;  %v6932_v9 = vsel %vm425_vm4, %v6720_v27, %v2020_v54  ;;  %v6937_v29 = vsel %vm425_vm4, %v6724_v22, %v2021_v33 }
 0x2c5   : > { %9161 = vst [vmem:[#allocation40_spill] sm:$0xff] %v6902_v11  ;;  %9163 = vst [vmem:[#allocation7_spill] sm:$0xff] %v6907_v49  ;;  %v6942_v32 = vsel %vm425_vm4, %v6728_v61, %v2022_v15  ;;  %v6947_v10 = vsel %vm425_vm4, %v6732_v7, %v2023_v57  ;;  %v6952_v54 = vsel %vm425_vm4, %v6736_v14, %v2024_v42 }
 0x2c6   : > { %9164 = vst [vmem:[#allocation6_spill] sm:$0xff] %v6912_v60  ;;  %9165 = vst [vmem:[#allocation10_spill] sm:$0xff] %v6917_v1  ;;  %v6957_v33 = vsel %vm425_vm4, %v6740_v56, %v2025_v35  ;;  %v2102_v52 = vmul.f32 %v9174_v6, %v6700_v20  ;;  %v2104_v8 = vmul.f32 %v9174_v6, %v6692_v63 }
 0x2c7   : > { %9166 = vst [vmem:[#allocation8_spill] sm:$0xff] %v6922_v59  ;;  %9167 = vst [vmem:[#allocation12_spill] sm:$0xff] %v6927_v36  ;;  %v2105_v38 = vmul.f32 %v9174_v6, %v6857_v23  ;;  %v2106_v43 = vmul.f32 %v9174_v6, %v6704_v13  ;;  %v2107_v62 = vmul.f32 %v9174_v6, %v6862_v50 }
 0x2c8   : > { %9168 = vst [vmem:[#allocation11_spill] sm:$0xff] %v6932_v9  ;;  %9169 = vst [vmem:[#allocation114_spill] sm:$0xff] %v6937_v29  ;;  %v2108_v16 = vmul.f32 %v9174_v6, %v6708_v26  ;;  %v2109_v58 = vmul.f32 %v9174_v6, %v6867_v12  ;;  %v2110_v39 = vmul.f32 %v9174_v6, %v6712_v17 }
 0x2c9   : > { %9170 = vst [vmem:[#allocation115_spill] sm:$0xff] %v6942_v32  ;;  %9171 = vst [vmem:[#allocation116_spill] sm:$0xff] %v6947_v10  ;;  %v2111_v24 = vmul.f32 %v9174_v6, %v6872_v31  ;;  %v2112_v30 = vmul.f32 %v9174_v6, %v6716_v48  ;;  %v2113_v34 = vmul.f32 %v9174_v6, %v6877_v19 }
 0x2ca   : > { %9172 = vst [vmem:[#allocation117_spill] sm:$0xff] %v6952_v54  ;;  %9173 = vst [vmem:[#allocation118_spill] sm:$0xff] %v6957_v33  ;;  %v2114_v21 = vmul.f32 %v9174_v6, %v6720_v27  ;;  %v2115_v15 = vmul.f32 %v9174_v6, %v6882_v40  ;;  %v2116_v57 = vmul.f32 %v9174_v6, %v6724_v22  ;;  %v9175_v54 = vld [vmem:[#allocation79_spill] sm:$0xff] }
 0x2cb   : > { %v2117_v42 = vmul.f32 %v9174_v6, %v6887_v28  ;;  %v2118_v35 = vmul.f32 %v9174_v6, %v6728_v61  ;;  %v2119_v5 = vmul.f32 %v9174_v6, %v6892_v55  ;;  %v2120_v23 = vmul.f32 %v9174_v6, %v6732_v7 }
 0x2cc   : > { %v2121_v49 = vmul.f32 %v9174_v6, %v6897_v47  ;;  %v2122_v45 = vmul.f32 %v9174_v6, %v6736_v14  ;;  %v2123_v33 = vmul.f32 %v9174_v6, %v6902_v11  ;;  %v2124_v53 = vmul.f32 %v9174_v6, %v6740_v56 }
 0x2cd   : > { %v2140_v18 = vmul.f32 %v9175_v54, %v6692_v63  ;;  %v2142_v10 = vmul.f32 %v9175_v54, %v6700_v20  ;;  %v2144_v25 = vmul.f32 %v9175_v54, %v6704_v13  ;;  %v2145_v32 = vmul.f32 %v9175_v54, %v6862_v50 }
 0x2ce   : > { %v2146_v3 = vmul.f32 %v9175_v54, %v6708_v26  ;;  %v2147_v29 = vmul.f32 %v9175_v54, %v6867_v12  ;;  %v2148_v6 = vmul.f32 %v9175_v54, %v6712_v17  ;;  %v2149_v63 = vmul.f32 %v9175_v54, %v6872_v31 }
 0x2cf   : > { %v2150_v0 = vmul.f32 %v9175_v54, %v6716_v48  ;;  %v2151_v9 = vmul.f32 %v9175_v54, %v6877_v19  ;;  %v2152_v50 = vmul.f32 %v9175_v54, %v6720_v27  ;;  %v2153_v41 = vmul.f32 %v9175_v54, %v6882_v40 }
 0x2d0   : > { %v2154_v36 = vmul.f32 %v9175_v54, %v6724_v22  ;;  %v2155_v51 = vmul.f32 %v9175_v54, %v6887_v28  ;;  %v2156_v59 = vmul.f32 %v9175_v54, %v6728_v61  ;;  %v2157_v4 = vmul.f32 %v9175_v54, %v6892_v55 }
 0x2d1   : > { %v2158_v1 = vmul.f32 %v9175_v54, %v6732_v7  ;;  %v2159_v2 = vmul.f32 %v9175_v54, %v6897_v47  ;;  %v2160_v60 = vmul.f32 %v9175_v54, %v6736_v14  ;;  %v2161_v46 = vmul.f32 %v9175_v54, %v6902_v11 }
 0x2d2   : > { %v2162_v44 = vmul.f32 %v9175_v54, %v6740_v56  ;;  %v2172_v37 = vadd.f32 %v2140_v18, %v2102_v52  ;;  %v2174_v61 = vadd.f32 %v2142_v10, %v2104_v8  ;;  %v2176_v28 = vadd.f32 %v2144_v25, %v2102_v52  ;;  %v9176_v10 = vld [vmem:[#allocation85_spill] sm:$0xff] }
 0x2d3   : > { %v2177_v22 = vadd.f32 %v2145_v32, %v2105_v38  ;;  %v2178_v55 = vadd.f32 %v2146_v3, %v2106_v43  ;;  %v2179_v40 = vadd.f32 %v2147_v29, %v2107_v62  ;;  %v2180_v27 = vadd.f32 %v2148_v6, %v2108_v16  ;;  %v9177_v32 = vld [vmem:[#allocation61_spill] sm:$0xff]  ;;  %v9178_v29 = vld [vmem:[#allocation74_spill] sm:$0xff]  ;;  %v9191_v16 = vld [vmem:[#allocation3_spill] sm:$0xff] }
 0x2d4   : > { %v2181_v7 = vadd.f32 %v2149_v63, %v2109_v58  ;;  %v2182_v19 = vadd.f32 %v2150_v0, %v2110_v39  ;;  %v2183_v48 = vadd.f32 %v2151_v9, %v2111_v24  ;;  %v2184_v47 = vadd.f32 %v2152_v50, %v2112_v30  ;;  %v9179_v52 = vld [vmem:[#allocation45_spill] sm:$0xff]  ;;  %v9180_v0 = vld [vmem:[#allocation54_spill] sm:$0xff]  ;;  %v9192_v39 = vld [vmem:[#allocation36_spill] sm:$0xff] }
 0x2d5   : > { %v2185_v31 = vadd.f32 %v2153_v41, %v2113_v34  ;;  %v2186_v17 = vadd.f32 %v2154_v36, %v2114_v21  ;;  %v2187_v14 = vadd.f32 %v2155_v51, %v2115_v15  ;;  %v2188_v12 = vadd.f32 %v2156_v59, %v2116_v57  ;;  %v9181_v41 = vld [vmem:[#allocation107_spill] sm:$0xff]  ;;  %v9188_v36 = vld [vmem:[#allocation32_spill] sm:$0xff]  ;;  %v9190_v43 = vld [vmem:[#allocation77_spill] sm:$0xff] }
 0x2d6   : > { %v2189_v26 = vadd.f32 %v2157_v4, %v2117_v42  ;;  %v2190_v11 = vadd.f32 %v2158_v1, %v2118_v35  ;;  %v2191_v13 = vadd.f32 %v2159_v2, %v2119_v5  ;;  %v2192_v20 = vadd.f32 %v2160_v60, %v2120_v23  ;;  %v9182_v59 = vld [vmem:[#allocation75_spill] sm:$0xff]  ;;  %v9183_v2 = vld [vmem:[#allocation2_spill] sm:$0xff]  ;;  %v9185_v23 = vld [vmem:[#allocation108_spill] sm:$0xff] }
 0x2d7   : > { %v2193_v54 = vadd.f32 %v2161_v46, %v2121_v49  ;;  %v2194_v18 = vadd.f32 %v2162_v44, %v2122_v45  ;;  %v2195_v25 = vadd.f32 %v9176_v10, %v2123_v33  ;;  %v2196_v3 = vadd.f32 %v9177_v32, %v2124_v53  ;;  %v9184_v45 = vld [vmem:[#allocation105_spill] sm:$0xff]  ;;  %v9186_v5 = vld [vmem:[#allocation76_spill] sm:$0xff]  ;;  %v9187_v60 = vld [vmem:[#allocation71_spill] sm:$0xff] }
 0x2d8   : > { %v2212_v8 = vmul.f32 %v9179_v52, %v9178_v29  ;;  %v2214_v50 = vmul.f32 %v9179_v52, %v9180_v0  ;;  %v2216_v51 = vmul.f32 %v9179_v52, %v9181_v41  ;;  %v2217_v4 = vmul.f32 %v9179_v52, %v9182_v59  ;;  %v9189_v33 = vld [vmem:[#allocation109_spill] sm:$0xff]  ;;  %v9193_v30 = vld [vmem:[#allocation110_spill] sm:$0xff]  ;;  %v9196_v35 = vld [vmem:[#allocation40_spill] sm:$0xff] }
 0x2d9   : > { %v2218_v46 = vmul.f32 %v9179_v52, %v9183_v2  ;;  %v2219_v44 = vmul.f32 %v9179_v52, %v9184_v45  ;;  %v2220_v53 = vmul.f32 %v9179_v52, %v9185_v23  ;;  %v2221_v49 = vmul.f32 %v9179_v52, %v9186_v5  ;;  %v9194_v21 = vld [vmem:[#allocation5_spill] sm:$0xff]  ;;  %v9195_v57 = vld [vmem:[#allocation98_spill] sm:$0xff] }
 0x2da   : > { %v2222_v1 = vmul.f32 %v9179_v52, %v9187_v60  ;;  %v2223_v9 = vmul.f32 %v9179_v52, %v9188_v36  ;;  %v2224_v38 = vmul.f32 %v9179_v52, %v9189_v33  ;;  %v2225_v62 = vmul.f32 %v9179_v52, %v9190_v43 }
 0x2db   : > { %v2226_v58 = vmul.f32 %v9179_v52, %v9191_v16  ;;  %v2227_v24 = vmul.f32 %v9179_v52, %v9192_v39  ;;  %v2228_v34 = vmul.f32 %v9179_v52, %v9193_v30  ;;  %v2229_v15 = vmul.f32 %v9179_v52, %v9194_v21 }
 0x2dc   : > { %v2230_v42 = vmul.f32 %v9179_v52, %v9195_v57  ;;  %v2231_v6 = vmul.f32 %v9179_v52, %v9196_v35  ;;  %v2232_v63 = vmul.f32 %v9179_v52, %v6740_v56  ;;  %v7085_v10 = vadd.f32 %v2212_v8, %v2172_v37  ;;  %v9198_v37 = vld [vmem:[#allocation50_spill] sm:$0xff]  ;;  %v9220_v35 = vld [vmem:[#allocation93_spill] sm:$0xff] }
 0x2dd   : > { %v2244_v32 = vadd.f32 %v2214_v50, %v2174_v61  ;;  %v2246_v0 = vadd.f32 %v2216_v51, %v2176_v28  ;;  %v2247_v41 = vadd.f32 %v2217_v4, %v2177_v22  ;;  %v2248_v59 = vadd.f32 %v2218_v46, %v2178_v55  ;;  %v9199_v61 = vld [vmem:[#allocation51_spill] sm:$0xff]  ;;  %v9212_v50 = vld [vmem:[#allocation89_spill] sm:$0xff]  ;;  %v9213_v4 = vld [vmem:[#allocation66_spill] sm:$0xff] }
 0x2de   : > { %9197 = vst [vmem:[#allocation43_spill] sm:$0xff] %v7085_v10  ;;  %v2249_v2 = vadd.f32 %v2219_v44, %v2179_v40  ;;  %v2250_v45 = vadd.f32 %v2220_v53, %v2180_v27  ;;  %v2251_v23 = vadd.f32 %v2221_v49, %v2181_v7  ;;  %v2252_v5 = vadd.f32 %v2222_v1, %v2182_v19  ;;  %v9200_v22 = vld [vmem:[#allocation55_spill] sm:$0xff]  ;;  %v9201_v40 = vld [vmem:[#allocation56_spill] sm:$0xff]  ;;  %v9202_v7 = vld [vmem:[#allocation62_spill] sm:$0xff] }
 0x2df   : > { %v2253_v60 = vadd.f32 %v2223_v9, %v2183_v48  ;;  %v2254_v36 = vadd.f32 %v2224_v38, %v2184_v47  ;;  %v2255_v33 = vadd.f32 %v2225_v62, %v2185_v31  ;;  %v2256_v43 = vadd.f32 %v2226_v58, %v2186_v17  ;;  %v9203_v19 = vld [vmem:[#allocation82_spill] sm:$0xff]  ;;  %v9205_v31 = vld [vmem:[#allocation28_spill] sm:$0xff]  ;;  %v9215_v49 = vld [vmem:[#allocation67_spill] sm:$0xff] }
 0x2e0   : > { %v2257_v16 = vadd.f32 %v2227_v24, %v2187_v14  ;;  %v2258_v39 = vadd.f32 %v2228_v34, %v2188_v12  ;;  %v2259_v30 = vadd.f32 %v2229_v15, %v2189_v26  ;;  %v2260_v21 = vadd.f32 %v2230_v42, %v2190_v11  ;;  %v9206_v14 = vld [vmem:[#allocation86_spill] sm:$0xff]  ;;  %v9208_v12 = vld [vmem:[#allocation87_spill] sm:$0xff]  ;;  %v9209_v11 = vld [vmem:[#allocation64_spill] sm:$0xff] }
 0x2e1   : > { %v2261_v57 = vadd.f32 %v2231_v6, %v2191_v13  ;;  %v2262_v56 = vadd.f32 %v2232_v63, %v2192_v20  ;;  %v2263_v52 = vadd.f32 %v9198_v37, %v2193_v54  ;;  %v2264_v28 = vadd.f32 %v9199_v61, %v2194_v18  ;;  %v9207_v13 = vld [vmem:[#allocation63_spill] sm:$0xff]  ;;  %v9210_v18 = vld [vmem:[#allocation88_spill] sm:$0xff]  ;;  %v9214_v44 = vld [vmem:[#allocation90_spill] sm:$0xff] }
 0x2e2   : > { %v2265_v55 = vadd.f32 %v9200_v22, %v2195_v25  ;;  %v2266_v27 = vadd.f32 %v9201_v40, %v2196_v3  ;;  %v7093_v48 = vmul.f32 %v9203_v19, %v9202_v7  ;;  %v2284_v17 = vmul.f32 %v9203_v19, %v9205_v31  ;;  %v9211_v3 = vld [vmem:[#allocation65_spill] sm:$0xff]  ;;  %v9216_v9 = vld [vmem:[#allocation91_spill] sm:$0xff]  ;;  %v9217_v62 = vld [vmem:[#allocation68_spill] sm:$0xff] }
 0x2e3   : > { %v2285_v26 = vmul.f32 %v9203_v19, %v9206_v14  ;;  %v2286_v20 = vmul.f32 %v9203_v19, %v9207_v13  ;;  %v2287_v47 = vmul.f32 %v9203_v19, %v9208_v12  ;;  %v2288_v54 = vmul.f32 %v9203_v19, %v9209_v11  ;;  %v9218_v24 = vld [vmem:[#allocation92_spill] sm:$0xff]  ;;  %v9219_v15 = vld [vmem:[#allocation69_spill] sm:$0xff]  ;;  %v9221_v63 = vld [vmem:[#allocation70_spill] sm:$0xff] }
 0x2e4   : > { %9204 = vst [vmem:[#allocation79_spill] sm:$0xff] %v7093_v48  ;;  %v2289_v25 = vmul.f32 %v9203_v19, %v9210_v18  ;;  %v2290_v8 = vmul.f32 %v9203_v19, %v9211_v3  ;;  %v2291_v51 = vmul.f32 %v9203_v19, %v9212_v50  ;;  %v2292_v46 = vmul.f32 %v9203_v19, %v9213_v4  ;;  %v9222_v61 = vld [vmem:[#allocation94_spill] sm:$0xff]  ;;  %v9223_v40 = vld [vmem:[#allocation72_spill] sm:$0xff]  ;;  %v9225_v14 = vld [vmem:[#allocation73_spill] sm:$0xff] }
 0x2e5   : > { %v2293_v53 = vmul.f32 %v9203_v19, %v9214_v44  ;;  %v2294_v1 = vmul.f32 %v9203_v19, %v9215_v49  ;;  %v2295_v38 = vmul.f32 %v9203_v19, %v9216_v9  ;;  %v2296_v58 = vmul.f32 %v9203_v19, %v9217_v62  ;;  %v9224_v10 = vld [vmem:[#allocation52_spill] sm:$0xff] }
 0x2e6   : > { %v2297_v34 = vmul.f32 %v9203_v19, %v9218_v24  ;;  %v2298_v42 = vmul.f32 %v9203_v19, %v9219_v15  ;;  %v2299_v6 = vmul.f32 %v9203_v19, %v9220_v35  ;;  %v2300_v37 = vmul.f32 %v9203_v19, %v9221_v63 }
 0x2e7   : > { %v2301_v22 = vmul.f32 %v9203_v19, %v9222_v61  ;;  %v2302_v29 = vmul.f32 %v9203_v19, %v9223_v40  ;;  %v2303_v13 = vmul.f32 %v9203_v19, %v9224_v10  ;;  %v2304_v7 = vmul.f32 %v9203_v19, %v9225_v14 }
 0x2e8   : > { %v7137_v31 = vadd.f32 %v2284_v17, %v2244_v32  ;;  %v7140_v15 = vadd.f32 %v7093_v48, %v2246_v0  ;;  %v2317_v35 = vadd.f32 %v2285_v26, %v2247_v41  ;;  %v2318_v24 = vadd.f32 %v2286_v20, %v2248_v59  ;;  %v9228_v41 = vld [vmem:[#allocation13_spill] sm:$0xff]  ;;  %v9229_v59 = vld [vmem:[#allocation60_spill] sm:$0xff] }
 0x2e9   : > { %v2319_v63 = vadd.f32 %v2287_v47, %v2249_v2  ;;  %v2320_v62 = vadd.f32 %v2288_v54, %v2250_v45  ;;  %v2321_v9 = vadd.f32 %v2289_v25, %v2251_v23  ;;  %v2322_v61 = vadd.f32 %v2290_v8, %v2252_v5  ;;  %v9230_v45 = vld [vmem:[#allocation14_spill] sm:$0xff]  ;;  %v9231_v5 = vld [vmem:[#allocation59_spill] sm:$0xff]  ;;  %v9241_v47 = vld [vmem:[#allocation92_spill] sm:$0xff] }
 0x2ea   : > { %9226 = vst [vmem:[#allocation85_spill] sm:$0xff] %v7137_v31  ;;  %9227 = vst [vmem:[#allocation61_spill] sm:$0xff] %v7140_v15  ;;  %v2323_v49 = vadd.f32 %v2291_v51, %v2253_v60  ;;  %v2324_v44 = vadd.f32 %v2292_v46, %v2254_v36  ;;  %v2325_v40 = vadd.f32 %v2293_v53, %v2255_v33  ;;  %v9242_v25 = vld [vmem:[#allocation69_spill] sm:$0xff]  ;;  %v9244_v53 = vld [vmem:[#allocation70_spill] sm:$0xff] }
 0x2eb   : > { %v2326_v4 = vadd.f32 %v2294_v1, %v2256_v43  ;;  %v2327_v50 = vadd.f32 %v2295_v38, %v2257_v16  ;;  %v2328_v10 = vadd.f32 %v2296_v58, %v2258_v39  ;;  %v2329_v3 = vadd.f32 %v2297_v34, %v2259_v30  ;;  %v9233_v43 = vld [vmem:[#allocation88_spill] sm:$0xff]  ;;  %v9234_v16 = vld [vmem:[#allocation65_spill] sm:$0xff]  ;;  %v9245_v38 = vld [vmem:[#allocation94_spill] sm:$0xff] }
 0x2ec   : > { %v2330_v18 = vadd.f32 %v2298_v42, %v2260_v21  ;;  %v2331_v19 = vadd.f32 %v2299_v6, %v2261_v57  ;;  %v2332_v32 = vadd.f32 %v2300_v37, %v2262_v56  ;;  %v2333_v17 = vadd.f32 %v2301_v22, %v2263_v52  ;;  %v9235_v30 = vld [vmem:[#allocation89_spill] sm:$0xff]  ;;  %v9236_v57 = vld [vmem:[#allocation66_spill] sm:$0xff]  ;;  %v9246_v34 = vld [vmem:[#allocation72_spill] sm:$0xff] }
 0x2ed   : > { %v2334_v31 = vadd.f32 %v2302_v29, %v2264_v28  ;;  %v2335_v0 = vadd.f32 %v2303_v13, %v2265_v55  ;;  %v2336_v15 = vadd.f32 %v2304_v7, %v2266_v27  ;;  %v2375_v2 = vmul.f32 %v9229_v59, %v9228_v41  ;;  %v9237_v52 = vld [vmem:[#allocation90_spill] sm:$0xff]  ;;  %v9238_v55 = vld [vmem:[#allocation67_spill] sm:$0xff]  ;;  %v9240_v13 = vld [vmem:[#allocation68_spill] sm:$0xff] }
 0x2ee   : > { %v2376_v23 = vmul.f32 %v9229_v59, %v9230_v45  ;;  %v7148_v60 = vmul.f32 %v9231_v5, %v9228_v41  ;;  %v2357_v36 = vmul.f32 %v9229_v59, %v9208_v12  ;;  %v2358_v33 = vmul.f32 %v9229_v59, %v9209_v11  ;;  %v9239_v7 = vld [vmem:[#allocation91_spill] sm:$0xff]  ;;  %v9243_v51 = vld [vmem:[#allocation93_spill] sm:$0xff]  ;;  %v9247_v6 = vld [vmem:[#allocation52_spill] sm:$0xff] }
 0x2ef   : > { %v2359_v29 = vmul.f32 %v9229_v59, %v9233_v43  ;;  %v2360_v39 = vmul.f32 %v9229_v59, %v9234_v16  ;;  %v2361_v21 = vmul.f32 %v9229_v59, %v9235_v30  ;;  %v2362_v56 = vmul.f32 %v9229_v59, %v9236_v57 }
 0x2f0   : > { %9232 = vst [vmem:[#allocation45_spill] sm:$0xff] %v7148_v60  ;;  %v2363_v28 = vmul.f32 %v9229_v59, %v9237_v52  ;;  %v2364_v27 = vmul.f32 %v9229_v59, %v9238_v55  ;;  %v2365_v26 = vmul.f32 %v9229_v59, %v9239_v7  ;;  %v2366_v20 = vmul.f32 %v9229_v59, %v9240_v13 }
 0x2f1   : > { %v2367_v54 = vmul.f32 %v9229_v59, %v9241_v47  ;;  %v2368_v8 = vmul.f32 %v9229_v59, %v9242_v25  ;;  %v2369_v46 = vmul.f32 %v9229_v59, %v9243_v51  ;;  %v2370_v1 = vmul.f32 %v9229_v59, %v9244_v53 }
 0x2f2   : > { %v2371_v58 = vmul.f32 %v9229_v59, %v9245_v38  ;;  %v2372_v42 = vmul.f32 %v9229_v59, %v9246_v34  ;;  %v2373_v37 = vmul.f32 %v9229_v59, %v9247_v6  ;;  %v2374_v22 = vmul.f32 %v9229_v59, %v9225_v14  ;;  %v9259_v59 = vld [vmem:[#allocation67_spill] sm:$0xff] }
 0x2f3   : > { %v2389_v41 = vadd.f32 %v2357_v36, %v2317_v35  ;;  %v2390_v12 = vadd.f32 %v2358_v33, %v2318_v24  ;;  %v2391_v48 = vadd.f32 %v2359_v29, %v2319_v63  ;;  %v2392_v11 = vadd.f32 %v2360_v39, %v2320_v62  ;;  %v9248_v35 = vld [vmem:[#allocation15_spill] sm:$0xff]  ;;  %v9249_v62 = vld [vmem:[#allocation78_spill] sm:$0xff]  ;;  %v9255_v63 = vld [vmem:[#allocation65_spill] sm:$0xff] }
 0x2f4   : > { %v2393_v60 = vadd.f32 %v2361_v21, %v2321_v9  ;;  %v2394_v51 = vadd.f32 %v2362_v56, %v2322_v61  ;;  %v2395_v25 = vadd.f32 %v2363_v28, %v2323_v49  ;;  %v2396_v53 = vadd.f32 %v2364_v27, %v2324_v44  ;;  %v9261_v36 = vld [vmem:[#allocation68_spill] sm:$0xff]  ;;  %v9263_v39 = vld [vmem:[#allocation69_spill] sm:$0xff]  ;;  %v9265_v27 = vld [vmem:[#allocation70_spill] sm:$0xff] }
 0x2f5   : > { %v2397_v47 = vadd.f32 %v2365_v26, %v2325_v40  ;;  %v2398_v13 = vadd.f32 %v2366_v20, %v2326_v4  ;;  %v2399_v38 = vadd.f32 %v2367_v54, %v2327_v50  ;;  %v2400_v7 = vadd.f32 %v2368_v8, %v2328_v10  ;;  %v9250_v4 = vld [vmem:[#allocation44_spill] sm:$0xff]  ;;  %v9251_v50 = vld [vmem:[#allocation95_spill] sm:$0xff]  ;;  %v9256_v40 = vld [vmem:[#allocation89_spill] sm:$0xff] }
 0x2f6   : > { %v2401_v55 = vadd.f32 %v2369_v46, %v2329_v3  ;;  %v2402_v34 = vadd.f32 %v2370_v1, %v2330_v18  ;;  %v2403_v52 = vadd.f32 %v2371_v58, %v2331_v19  ;;  %v2404_v57 = vadd.f32 %v2372_v42, %v2332_v32  ;;  %v9253_v18 = vld [vmem:[#allocation81_spill] sm:$0xff]  ;;  %v9257_v32 = vld [vmem:[#allocation66_spill] sm:$0xff]  ;;  %v9267_v8 = vld [vmem:[#allocation72_spill] sm:$0xff] }
 0x2f7   : > { %v2405_v6 = vadd.f32 %v2373_v37, %v2333_v17  ;;  %v2406_v30 = vadd.f32 %v2374_v22, %v2334_v31  ;;  %v2407_v16 = vadd.f32 %v2375_v2, %v2335_v0  ;;  %v2446_v24 = vmul.f32 %v9231_v5, %v9230_v45  ;;  %v9258_v17 = vld [vmem:[#allocation90_spill] sm:$0xff]  ;;  %v9260_v45 = vld [vmem:[#allocation91_spill] sm:$0xff]  ;;  %v9264_v56 = vld [vmem:[#allocation93_spill] sm:$0xff] }
 0x2f8   : > { %v2447_v9 = vmul.f32 %v9231_v5, %v9248_v35  ;;  %v2448_v44 = vmul.f32 %v9231_v5, %v9249_v62  ;;  %v2408_v49 = vadd.f32 %v2376_v23, %v2336_v15  ;;  %v7194_v10 = vmul.f32 %v9251_v50, %v9250_v4  ;;  %v9266_v20 = vld [vmem:[#allocation94_spill] sm:$0xff]  ;;  %v9268_v1 = vld [vmem:[#allocation52_spill] sm:$0xff] }
 0x2f9   : > { %v7198_v3 = vmul.f32 %v9251_v50, %v9253_v18  ;;  %v2429_v31 = vmul.f32 %v9231_v5, %v9233_v43  ;;  %v2430_v61 = vmul.f32 %v9231_v5, %v9255_v63  ;;  %v2431_v19 = vmul.f32 %v9231_v5, %v9256_v40  ;;  %v9262_v43 = vld [vmem:[#allocation92_spill] sm:$0xff] }
 0x2fa   : > { %9252 = vst [vmem:[#allocation54_spill] sm:$0xff] %v7194_v10  ;;  %v2432_v15 = vmul.f32 %v9231_v5, %v9257_v32  ;;  %v2433_v0 = vmul.f32 %v9231_v5, %v9258_v17  ;;  %v2434_v2 = vmul.f32 %v9231_v5, %v9259_v59  ;;  %v2435_v23 = vmul.f32 %v9231_v5, %v9260_v45 }
 0x2fb   : > { %9254 = vst [vmem:[#allocation107_spill] sm:$0xff] %v7198_v3  ;;  %v2436_v33 = vmul.f32 %v9231_v5, %v9261_v36  ;;  %v2437_v29 = vmul.f32 %v9231_v5, %v9262_v43  ;;  %v2438_v21 = vmul.f32 %v9231_v5, %v9263_v39  ;;  %v2439_v28 = vmul.f32 %v9231_v5, %v9264_v56 }
 0x2fc   : > { %v2440_v26 = vmul.f32 %v9231_v5, %v9265_v27  ;;  %v2441_v54 = vmul.f32 %v9231_v5, %v9266_v20  ;;  %v2442_v46 = vmul.f32 %v9231_v5, %v9267_v8  ;;  %v2443_v58 = vmul.f32 %v9231_v5, %v9268_v1  ;;  %v9269_v8 = vld [vmem:[#allocation45_spill] sm:$0xff] }
 0x2fd   : > { %v2444_v42 = vmul.f32 %v9231_v5, %v9225_v14  ;;  %v2459_v37 = vadd.f32 %v2429_v31, %v2389_v41  ;;  %v2460_v22 = vadd.f32 %v2430_v61, %v2390_v12  ;;  %v2461_v35 = vadd.f32 %v2431_v19, %v2391_v48  ;;  %v9270_v14 = vld [vmem:[#allocation96_spill] sm:$0xff]  ;;  %v9272_v5 = vld [vmem:[#allocation99_spill] sm:$0xff]  ;;  %v9284_v61 = vld [vmem:[#allocation114_spill] sm:$0xff] }
 0x2fe   : > { %v2462_v62 = vadd.f32 %v2432_v15, %v2392_v11  ;;  %v2463_v63 = vadd.f32 %v2433_v0, %v2393_v60  ;;  %v2464_v40 = vadd.f32 %v2434_v2, %v2394_v51  ;;  %v2465_v32 = vadd.f32 %v2435_v23, %v2395_v25  ;;  %v9273_v60 = vld [vmem:[#allocation57_spill] sm:$0xff]  ;;  %v9277_v51 = vld [vmem:[#allocation100_spill] sm:$0xff]  ;;  %v9285_v15 = vld [vmem:[#allocation102_spill] sm:$0xff] }
 0x2ff   : > { %v2466_v17 = vadd.f32 %v2436_v33, %v2396_v53  ;;  %v2467_v59 = vadd.f32 %v2437_v29, %v2397_v47  ;;  %v2468_v45 = vadd.f32 %v2438_v21, %v2398_v13  ;;  %v2469_v36 = vadd.f32 %v2439_v28, %v2399_v38  ;;  %v9274_v47 = vld [vmem:[#allocation6_spill] sm:$0xff]  ;;  %v9278_v53 = vld [vmem:[#allocation8_spill] sm:$0xff]  ;;  %v9286_v2 = vld [vmem:[#allocation115_spill] sm:$0xff] }
 0x300   : > { %v2470_v43 = vadd.f32 %v2440_v26, %v2400_v7  ;;  %v2471_v39 = vadd.f32 %v2441_v54, %v2401_v55  ;;  %v2472_v56 = vadd.f32 %v2442_v46, %v2402_v34  ;;  %v2473_v27 = vadd.f32 %v2443_v58, %v2403_v52  ;;  %v9275_v7 = vld [vmem:[#allocation112_spill] sm:$0xff]  ;;  %v9276_v52 = vld [vmem:[#allocation10_spill] sm:$0xff]  ;;  %v9287_v33 = vld [vmem:[#allocation9_spill] sm:$0xff] }
 0x301   : > { %v2474_v20 = vadd.f32 %v2444_v42, %v2404_v57  ;;  %v2475_v1 = vadd.f32 %v9269_v8, %v2405_v6  ;;  %v2476_v3 = vadd.f32 %v2446_v24, %v2406_v30  ;;  %v7235_v12 = vmul.f32 %v9270_v14, %v9250_v4  ;;  %v9280_v6 = vld [vmem:[#allocation12_spill] sm:$0xff]  ;;  %v9281_v24 = vld [vmem:[#allocation101_spill] sm:$0xff]  ;;  %v9289_v26 = vld [vmem:[#allocation103_spill] sm:$0xff] }
 0x302   : > { %v2477_v48 = vadd.f32 %v2447_v9, %v2407_v16  ;;  %v2478_v11 = vadd.f32 %v2448_v44, %v2408_v49  ;;  %v2497_v25 = vmul.f32 %v9273_v60, %v9272_v5  ;;  %v2498_v13 = vmul.f32 %v9273_v60, %v9274_v47  ;;  %v9279_v16 = vld [vmem:[#allocation113_spill] sm:$0xff]  ;;  %v9282_v44 = vld [vmem:[#allocation11_spill] sm:$0xff]  ;;  %v9288_v21 = vld [vmem:[#allocation116_spill] sm:$0xff] }
 0x303   : > { %9271 = vst [vmem:[#allocation75_spill] sm:$0xff] %v7235_v12  ;;  %v2499_v55 = vmul.f32 %v9273_v60, %v9275_v7  ;;  %v2500_v57 = vmul.f32 %v9273_v60, %v9276_v52  ;;  %v2501_v30 = vmul.f32 %v9273_v60, %v9277_v51  ;;  %v2502_v38 = vmul.f32 %v9273_v60, %v9278_v53  ;;  %v9283_v4 = vld [vmem:[#allocation97_spill] sm:$0xff]  ;;  %v9291_v42 = vld [vmem:[#allocation20_spill] sm:$0xff]  ;;  %v9292_v5 = vld [vmem:[#allocation118_spill] sm:$0xff] }
 0x304   : > { %v2503_v34 = vmul.f32 %v9273_v60, %v9279_v16  ;;  %v2504_v41 = vmul.f32 %v9273_v60, %v9280_v6  ;;  %v2505_v9 = vmul.f32 %v9273_v60, %v9281_v24  ;;  %v2506_v49 = vmul.f32 %v9273_v60, %v9282_v44  ;;  %v9290_v46 = vld [vmem:[#allocation117_spill] sm:$0xff] }
 0x305   : > { %v2507_v31 = vmul.f32 %v9273_v60, %v9283_v4  ;;  %v2508_v19 = vmul.f32 %v9273_v60, %v9284_v61  ;;  %v2509_v0 = vmul.f32 %v9273_v60, %v9285_v15  ;;  %v2510_v23 = vmul.f32 %v9273_v60, %v9286_v2 }
 0x306   : > { %v2511_v29 = vmul.f32 %v9273_v60, %v9287_v33  ;;  %v2512_v28 = vmul.f32 %v9273_v60, %v9288_v21  ;;  %v2513_v54 = vmul.f32 %v9273_v60, %v9289_v26  ;;  %v2514_v58 = vmul.f32 %v9273_v60, %v9290_v46 }
 0x307   : > { %v2515_v8 = vmul.f32 %v9273_v60, %v9291_v42  ;;  %v2516_v47 = vmul.f32 %v9273_v60, %v9292_v5  ;;  %v2529_v12 = vadd.f32 %v2497_v25, %v2459_v37  ;;  %v2530_v10 = vadd.f32 %v2498_v13, %v2460_v22  ;;  %v9303_v25 = vld [vmem:[#allocation114_spill] sm:$0xff] }
 0x308   : > { %v2531_v2 = vadd.f32 %v2499_v55, %v2461_v35  ;;  %v2532_v15 = vadd.f32 %v2500_v57, %v2462_v62  ;;  %v2533_v33 = vadd.f32 %v2501_v30, %v2463_v63  ;;  %v2534_v61 = vadd.f32 %v2502_v38, %v2464_v40  ;;  %v9294_v62 = vld [vmem:[#allocation80_spill] sm:$0xff]  ;;  %v9304_v13 = vld [vmem:[#allocation102_spill] sm:$0xff]  ;;  %v9305_v57 = vld [vmem:[#allocation115_spill] sm:$0xff] }
 0x309   : > { %v2535_v4 = vadd.f32 %v2503_v34, %v2465_v32  ;;  %v2536_v21 = vadd.f32 %v2504_v41, %v2466_v17  ;;  %v2537_v44 = vadd.f32 %v2505_v9, %v2467_v59  ;;  %v2538_v24 = vadd.f32 %v2506_v49, %v2468_v45  ;;  %v9296_v17 = vld [vmem:[#allocation100_spill] sm:$0xff]  ;;  %v9306_v38 = vld [vmem:[#allocation9_spill] sm:$0xff]  ;;  %v9308_v49 = vld [vmem:[#allocation103_spill] sm:$0xff] }
 0x30a   : > { %v2539_v26 = vadd.f32 %v2507_v31, %v2469_v36  ;;  %v2540_v6 = vadd.f32 %v2508_v19, %v2470_v43  ;;  %v2541_v16 = vadd.f32 %v2509_v0, %v2471_v39  ;;  %v2542_v46 = vadd.f32 %v2510_v23, %v2472_v56  ;;  %v9297_v45 = vld [vmem:[#allocation8_spill] sm:$0xff]  ;;  %v9298_v36 = vld [vmem:[#allocation113_spill] sm:$0xff] }
 0x30b   : > { %v2543_v53 = vadd.f32 %v2511_v29, %v2473_v27  ;;  %v2544_v51 = vadd.f32 %v2512_v28, %v2474_v20  ;;  %v2545_v42 = vadd.f32 %v2513_v54, %v2475_v1  ;;  %v7279_v60 = vmul.f32 %v9270_v14, %v9253_v18  ;;  %v9299_v43 = vld [vmem:[#allocation12_spill] sm:$0xff]  ;;  %v9300_v56 = vld [vmem:[#allocation101_spill] sm:$0xff]  ;;  %v9301_v20 = vld [vmem:[#allocation11_spill] sm:$0xff] }
 0x30c   : > { %v2546_v37 = vadd.f32 %v2514_v58, %v2476_v3  ;;  %v2547_v22 = vadd.f32 %v2515_v8, %v2477_v48  ;;  %v2548_v35 = vadd.f32 %v2516_v47, %v2478_v11  ;;  %v7283_v63 = vmul.f32 %v9270_v14, %v9294_v62  ;;  %v9302_v48 = vld [vmem:[#allocation97_spill] sm:$0xff]  ;;  %v9307_v41 = vld [vmem:[#allocation116_spill] sm:$0xff] }
 0x30d   : > { %9293 = vst [vmem:[#allocation2_spill] sm:$0xff] %v7279_v60  ;;  %v2569_v40 = vmul.f32 %v9251_v50, %v9275_v7  ;;  %v2570_v32 = vmul.f32 %v9251_v50, %v9276_v52  ;;  %v2571_v59 = vmul.f32 %v9251_v50, %v9296_v17  ;;  %v2572_v18 = vmul.f32 %v9251_v50, %v9297_v45  ;;  %v9309_v19 = vld [vmem:[#allocation117_spill] sm:$0xff]  ;;  %v9310_v23 = vld [vmem:[#allocation20_spill] sm:$0xff] }
 0x30e   : > { %9295 = vst [vmem:[#allocation105_spill] sm:$0xff] %v7283_v63  ;;  %v2573_v3 = vmul.f32 %v9251_v50, %v9298_v36  ;;  %v2574_v39 = vmul.f32 %v9251_v50, %v9299_v43  ;;  %v2575_v27 = vmul.f32 %v9251_v50, %v9300_v56  ;;  %v2576_v1 = vmul.f32 %v9251_v50, %v9301_v20  ;;  %v9311_v20 = vld [vmem:[#allocation46_spill] sm:$0xff] }
 0x30f   : > { %v2577_v11 = vmul.f32 %v9251_v50, %v9302_v48  ;;  %v2578_v47 = vmul.f32 %v9251_v50, %v9303_v25  ;;  %v2579_v55 = vmul.f32 %v9251_v50, %v9304_v13  ;;  %v2580_v30 = vmul.f32 %v9251_v50, %v9305_v57 }
 0x310   : > { %v2581_v34 = vmul.f32 %v9251_v50, %v9306_v38  ;;  %v2582_v9 = vmul.f32 %v9251_v50, %v9307_v41  ;;  %v2583_v31 = vmul.f32 %v9251_v50, %v9308_v49  ;;  %v2584_v0 = vmul.f32 %v9251_v50, %v9309_v19 }
 0x311   : > { %v2585_v29 = vmul.f32 %v9251_v50, %v9310_v23  ;;  %v2586_v28 = vmul.f32 %v9251_v50, %v9292_v5  ;;  %v2601_v54 = vadd.f32 %v2569_v40, %v2529_v12  ;;  %v2602_v58 = vadd.f32 %v2570_v32, %v2530_v10  ;;  %v9312_v10 = vld [vmem:[#allocation54_spill] sm:$0xff]  ;;  %v9319_v40 = vld [vmem:[#allocation9_spill] sm:$0xff] }
 0x312   : > { %v2603_v8 = vadd.f32 %v2571_v59, %v2531_v2  ;;  %v2604_v62 = vadd.f32 %v2572_v18, %v2532_v15  ;;  %v2605_v7 = vadd.f32 %v2573_v3, %v2533_v33  ;;  %v2606_v52 = vadd.f32 %v2574_v39, %v2534_v61  ;;  %v9313_v15 = vld [vmem:[#allocation107_spill] sm:$0xff]  ;;  %v9315_v61 = vld [vmem:[#allocation97_spill] sm:$0xff] }
 0x313   : > { %v2607_v63 = vadd.f32 %v2575_v27, %v2535_v4  ;;  %v2608_v60 = vadd.f32 %v2576_v1, %v2536_v21  ;;  %v2609_v41 = vadd.f32 %v2577_v11, %v2537_v44  ;;  %v2610_v38 = vadd.f32 %v2578_v47, %v2538_v24  ;;  %v7328_v44 = vld [vmem:[%s8227_s3 + $0x8] ss:$0 sm:$0xff] }
 0x314   : > { %v2611_v49 = vadd.f32 %v2579_v55, %v2539_v26  ;;  %v2612_v57 = vadd.f32 %v2580_v30, %v2540_v6  ;;  %v2613_v13 = vadd.f32 %v2581_v34, %v2541_v16  ;;  %v2614_v19 = vadd.f32 %v2582_v9, %v2542_v46  ;;  %v9314_v24 = vld [vmem:[#allocation11_spill] sm:$0xff]  ;;  %v9316_v26 = vld [vmem:[#allocation114_spill] sm:$0xff] }
 0x315   : > { %v2615_v25 = vadd.f32 %v2583_v31, %v2543_v53  ;;  %v2616_v48 = vadd.f32 %v2584_v0, %v2544_v51  ;;  %v2617_v23 = vadd.f32 %v2585_v29, %v2545_v42  ;;  %v2660_v50 = vmul.f32 %v9270_v14, %v9311_v20  ;;  %v9317_v42 = vld [vmem:[#allocation102_spill] sm:$0xff] }
 0x316   : > { %v2618_v12 = vadd.f32 %v2586_v28, %v2546_v37  ;;  %v2619_v2 = vadd.f32 %v9312_v10, %v2547_v22  ;;  %v2620_v33 = vadd.f32 %v9313_v15, %v2548_v35  ;;  %v2641_v16 = vmul.f32 %v7328_v44, %v9296_v17  ;;  %v9318_v22 = vld [vmem:[#allocation115_spill] sm:$0xff]  ;;  %v9320_v17 = vld [vmem:[#allocation116_spill] sm:$0xff]  ;;  %v9332_v10 = vld [vmem:[#allocation62_spill] sm:$0xff] }
 0x317   : > { %v2642_v51 = vmul.f32 %v7328_v44, %v9297_v45  ;;  %v2643_v53 = vmul.f32 %v7328_v44, %v9298_v36  ;;  %v2644_v14 = vmul.f32 %v7328_v44, %v9299_v43  ;;  %v2645_v6 = vmul.f32 %v7328_v44, %v9300_v56  ;;  %v9321_v45 = vld [vmem:[#allocation103_spill] sm:$0xff]  ;;  %v9322_v36 = vld [vmem:[#allocation117_spill] sm:$0xff]  ;;  %v9323_v43 = vld [vmem:[#allocation20_spill] sm:$0xff] }
 0x318   : > { %v2646_v4 = vmul.f32 %v7328_v44, %v9314_v24  ;;  %v2647_v21 = vmul.f32 %v7328_v44, %v9315_v61  ;;  %v2648_v46 = vmul.f32 %v7328_v44, %v9316_v26  ;;  %v2649_v37 = vmul.f32 %v7328_v44, %v9317_v42  ;;  %v9333_v15 = vld [vmem:[#allocation86_spill] sm:$0xff] }
 0x319   : > { %v2650_v35 = vmul.f32 %v7328_v44, %v9318_v22  ;;  %v2651_v32 = vmul.f32 %v7328_v44, %v9319_v40  ;;  %v2652_v59 = vmul.f32 %v7328_v44, %v9320_v17  ;;  %v2653_v18 = vmul.f32 %v7328_v44, %v9321_v45  ;;  %v9339_v22 = vld [vmem:[#allocation7_spill] sm:$0xff] }
 0x31a   : > { %v2654_v3 = vmul.f32 %v7328_v44, %v9322_v36  ;;  %v2655_v39 = vmul.f32 %v7328_v44, %v9323_v43  ;;  %v2656_v56 = vmul.f32 %v7328_v44, %v9292_v5  ;;  %v7362_v27 = vadd.f32 %v2641_v16, %v2601_v54  ;;  %v9334_v16 = vld [vmem:[#allocation63_spill] sm:$0xff]  ;;  %v3923_v36 = vld [vmem:[%s8227_s3 + $0x3] ss:$0 sm:$0xff] }
 0x31b   : > { %v7364_v20 = vadd.f32 %v2642_v51, %v2602_v58  ;;  %v7366_v1 = vadd.f32 %v2643_v53, %v2603_v8  ;;  %v7368_v11 = vadd.f32 %v2644_v14, %v2604_v62  ;;  %v7370_v47 = vadd.f32 %v2645_v6, %v2605_v7  ;;  %v9331_v62 = vld [vmem:[#allocation28_spill] sm:$0xff]  ;;  %v3921_v53 = vld [vmem:[%s8227_s3 + $0x7] ss:$0 sm:$0xff]  ;;  %v9342_v45 = vld [vmem:[#allocation111_spill] sm:$0xff] }
 0x31c   : > { %v7372_v55 = vadd.f32 %v2646_v4, %v2606_v52  ;;  %v7374_v30 = vadd.f32 %v2647_v21, %v2607_v63  ;;  %v7376_v34 = vadd.f32 %v2648_v46, %v2608_v60  ;;  %v7378_v9 = vadd.f32 %v2649_v37, %v2609_v41  ;;  %v9324_v63 = vld [vmem:[#allocation75_spill] sm:$0xff]  ;;  %v9325_v60 = vld [vmem:[#allocation2_spill] sm:$0xff]  ;;  %v9338_v46 = vld [vmem:[#allocation64_spill] sm:$0xff] }
 0x31d   : > { %v7380_v31 = vadd.f32 %v2650_v35, %v2610_v38  ;;  %v7382_v5 = vadd.f32 %v2651_v32, %v2611_v49  ;;  %v7384_v0 = vadd.f32 %v2652_v59, %v2612_v57  ;;  %v7386_v29 = vadd.f32 %v2653_v18, %v2613_v13  ;;  %v9326_v38 = vld [vmem:[#allocation105_spill] sm:$0xff]  ;;  %v3919_v13 = vld [vmem:[%s8227_s3 + $0x1] ss:$0 sm:$0xff]  ;;  %v3922_v37 = vld [vmem:[%s8227_s3 + $0x2] ss:$0 sm:$0xff] }
 0x31e   : > { %v7388_v28 = vadd.f32 %v2654_v3, %v2614_v19  ;;  %v7390_v7 = vadd.f32 %v2655_v39, %v2615_v25  ;;  %v7392_v52 = vadd.f32 %v2656_v56, %v2616_v48  ;;  %v7395_v54 = vadd.f32 %v9324_v63, %v2617_v23  ;;  %v9329_v57 = vld [vmem:[#allocation106_spill] sm:$0xff]  ;;  %v9330_v19 = vld [vmem:[#allocation53_spill] sm:$0xff]  ;;  %v9343_v3 = vld [vmem:[#allocation104_spill] sm:$0xff] }
 0x31f   : > { %v7398_v41 = vadd.f32 %v9325_v60, %v2618_v12  ;;  %v7401_v58 = vadd.f32 %v9326_v38, %v2619_v2  ;;  %v7403_v49 = vadd.f32 %v2660_v50, %v2620_v33  ;;  %v2281_v25 = vmul.f32 %v3919_v13, %v9329_v57  ;;  %v3920_v23 = vld [vmem:[%s8227_s3 + $0x4] ss:$0 sm:$0xff]  ;;  %v9344_v39 = vld [vmem:[#allocation43_spill] sm:$0xff]  ;;  %v9346_v60 = vld [vmem:[#allocation85_spill] sm:$0xff] }
 0x320   : > { %v2283_v48 = vmul.f32 %v3919_v13, %v9330_v19  ;;  %v7414_v8 = vmul.f32 %v3920_v23, %v9330_v19  ;;  %v2352_v12 = vmul.f32 %v3920_v23, %v9331_v62  ;;  %v7418_v50 = vmul.f32 %v3920_v23, %v9329_v57  ;;  %v9345_v56 = vld [vmem:[#allocation79_spill] sm:$0xff] }
 0x321   : > { %9327 = vst [vmem:[#allocation108_spill] sm:$0xff] %v7401_v58  ;;  %9328 = vst [vmem:[#allocation76_spill] sm:$0xff] %v7403_v49  ;;  %v2354_v2 = vmul.f32 %v3920_v23, %v9332_v10  ;;  %v2355_v33 = vmul.f32 %v3920_v23, %v9333_v15  ;;  %v2356_v51 = vmul.f32 %v3920_v23, %v9334_v16  ;;  %v9335_v24 = vrot.slane %v9329_v57, 7  ;;  %v3924_v23 = vld [vmem:[%s8227_s3] ss:$0 sm:$0xff] }
 0x322   : > { %v2424_v14 = vmul.f32 %v3921_v53, %v9332_v10  ;;  %v2426_v6 = vmul.f32 %v3921_v53, %v9334_v16  ;;  %v9336_v4 = vrot.slane %v9332_v10, 7  ;;  %v1967_v26 = vrot.slane %v9329_v57, 1 }
 0x323   : > { %v2428_v42 = vmul.f32 %v3921_v53, %v9338_v46  ;;  %v2496_v35 = vmul.f32 %v3922_v37, %v9339_v22  ;;  %v1983_v40 = vrot.slane %v9332_v10, 1  ;;  %v9340_v32 = vrot.slane %v9331_v62, 1 }
 0x324   : > { %v1951_v21 = vsel %vm292_vm1, %v9336_v4, %v9335_v24  ;;  %v9341_v17 = vrot.slane %v9330_v19, 1  ;;  %v2143_v43 = vmul.f32 %v3923_v36, %v9343_v3  ;;  %v2312_v63 = vadd.f32 %v9345_v56, %v9344_v39  ;;  %v9347_v24 = vld [vmem:[#allocation74_spill] sm:$0xff]  ;;  %v9350_v56 = vld [vmem:[#allocation24_spill] sm:$0xff] }
 0x325   : > { %v2386_v38 = vadd.f32 %v2354_v2, %v9346_v60  ;;  %v1999_v13 = vsel %vm357_vm2, %v1967_v26, %v1983_v40  ;;  %v2015_v19 = vsel %vm357_vm2, %v1983_v40, %v1967_v26  ;;  %v3925_v26 = vld [vmem:[%s8227_s3 + $0x6] ss:$0 sm:$0xff] }
 0x326   : > { %v1998_v59 = vsel %vm357_vm2, %v9341_v17, %v9340_v32  ;;  %v2032_v16 = vsel %vm390_vm3, %v1999_v13, %v1951_v21  ;;  %v2065_v46 = vsel %vm425_vm4, %v9347_v24, %v2015_v19  ;;  %v2384_v2 = vadd.f32 %v2352_v12, %v2312_v63  ;;  %v9349_v32 = vld [vmem:[#allocation61_spill] sm:$0xff]  ;;  %v9351_v63 = vld [vmem:[#allocation87_spill] sm:$0xff] }
 0x327   : > { %v2030_v18 = vsel %vm390_vm3, %v1998_v59, %v9342_v45  ;;  %v2388_v17 = vadd.f32 %v2356_v51, %v9349_v32  ;;  %v2101_v45 = vmul.f32 %v3924_v23, %v2032_v16  ;;  %v2141_v39 = vmul.f32 %v3923_v36, %v2032_v16 }
 0x328   : > { %v2103_v62 = vmul.f32 %v3924_v23, %v2030_v18  ;;  %v2139_v10 = vmul.f32 %v3923_v36, %v2030_v18  ;;  %v2213_v40 = vmul.f32 %v3925_v26, %v9343_v3  ;;  %v2215_v18 = vmul.f32 %v3925_v26, %v9350_v56  ;;  %v3926_v23 = vld [vmem:[%s8227_s3 + $0x5] ss:$0 sm:$0xff] }
 0x329   : > { %v2211_v60 = vmul.f32 %v3925_v26, %v2032_v16  ;;  %v2454_v61 = vadd.f32 %v2424_v14, %v2384_v2  ;;  %v2456_v21 = vadd.f32 %v2426_v6, %v2386_v38  ;;  %v2458_v49 = vadd.f32 %v2428_v42, %v2388_v17  ;;  %v9352_v42 = vld [vmem:[#allocation6_spill] sm:$0xff] }
 0x32a   : > { %v2171_v58 = vadd.f32 %v2139_v10, %v2101_v45  ;;  %v2173_v4 = vadd.f32 %v2141_v39, %v2103_v62  ;;  %v2175_v19 = vadd.f32 %v2143_v43, %v2101_v45  ;;  %v2494_v12 = vmul.f32 %v3922_v37, %v2065_v46  ;;  %v9353_v62 = vld [vmem:[#allocation10_spill] sm:$0xff] }
 0x32b   : > { %v2425_v51 = vmul.f32 %v3921_v53, %v9333_v15  ;;  %v2427_v36 = vmul.f32 %v3921_v53, %v9351_v63  ;;  %v2564_v3 = vmul.f32 %v3926_v23, %v9339_v22  ;;  %v2526_v24 = vadd.f32 %v2496_v35, %v2456_v21 }
 0x32c   : > { %v2241_v32 = vadd.f32 %v2211_v60, %v2171_v58  ;;  %v2243_v16 = vadd.f32 %v2213_v40, %v2173_v4  ;;  %v2245_v14 = vadd.f32 %v2215_v18, %v2175_v19  ;;  %v2524_v6 = vadd.f32 %v2494_v12, %v2454_v61 }
 0x32d   : > { %v2568_v38 = vmul.f32 %v3926_v23, %v9352_v42  ;;  %v2640_v43 = vmul.f32 %v7328_v44, %v9353_v62  ;;  %v2528_v10 = vadd.f32 %v2494_v12, %v2458_v49  ;;  %v2566_v15 = vmul.f32 %v3926_v23, %v2065_v46 }
 0x32e   : > { %v2311_v2 = vadd.f32 %v2281_v25, %v2241_v32  ;;  %v2313_v17 = vadd.f32 %v2283_v48, %v2243_v16  ;;  %v2315_v45 = vadd.f32 %v2281_v25, %v2245_v14  ;;  %v2596_v39 = vadd.f32 %v2564_v3, %v2524_v6 }
 0x32f   : > { %v2423_v26 = vmul.f32 %v3921_v53, %v9329_v57  ;;  %v2598_v56 = vadd.f32 %v2566_v15, %v2526_v24  ;;  %v2600_v22 = vadd.f32 %v2568_v38, %v2528_v10  ;;  %v2636_v58 = vmul.f32 %v7328_v44, %v2065_v46  ;;  %v9355_v24 = vld [vmem:[#allocation112_spill] sm:$0xff] }
 0x330   : > { %v2383_v35 = vadd.f32 %v7414_v8, %v2311_v2  ;;  %v2385_v40 = vadd.f32 %v7418_v50, %v2313_v17  ;;  %v2387_v18 = vadd.f32 %v2355_v33, %v2315_v45  ;;  %v2638_v60 = vmul.f32 %v7328_v44, %v9352_v42  ;;  %v9354_v33 = vld [vmem:[#allocation99_spill] sm:$0xff] }
 0x331   : > { %v2493_v49 = vmul.f32 %v3922_v37, %v1999_v13  ;;  %v2495_v61 = vmul.f32 %v3922_v37, %v1998_v59  ;;  %v7490_v21 = vadd.f32 %v2636_v58, %v2596_v39  ;;  %v7492_v25 = vadd.f32 %v2640_v43, %v2600_v22 }
 0x332   : > { %v2453_v48 = vadd.f32 %v2423_v26, %v2383_v35  ;;  %v2455_v57 = vadd.f32 %v2425_v51, %v2385_v40  ;;  %v2457_v53 = vadd.f32 %v2427_v36, %v2387_v18  ;;  %v7494_v4 = vadd.f32 %v2638_v60, %v2598_v56 }
 0x333   : > { %v2563_v46 = vmul.f32 %v3926_v23, %v1998_v59  ;;  %v2565_v19 = vmul.f32 %v3926_v23, %v1999_v13  ;;  %v2567_v63 = vmul.f32 %v3926_v23, %v9354_v33  ;;  %v2635_v3 = vmul.f32 %v7328_v44, %v1999_v13 }
 0x334   : > { %v2523_v8 = vadd.f32 %v2493_v49, %v2453_v48  ;;  %v2525_v12 = vadd.f32 %v2495_v61, %v2455_v57  ;;  %v2527_v50 = vadd.f32 %v2493_v49, %v2457_v53  ;;  %v2637_v37 = vmul.f32 %v7328_v44, %v9354_v33 }
 0x335   : > { %v2639_v32 = vmul.f32 %v7328_v44, %v9355_v24  ;;  %v2767_v59 = vmul.f32 %v7490_v21, %v7490_v21  ;;  %v2698_v13 = vsel %vm1061_vm5, %v7490_v21, 0.0  ;;  %v2769_v15 = vmul.f32 %v7494_v4, %v7494_v4 }
 0x336   : > { %v2595_v16 = vadd.f32 %v2563_v46, %v2523_v8  ;;  %v2597_v51 = vadd.f32 %v2565_v19, %v2525_v12  ;;  %v2599_v36 = vadd.f32 %v2567_v63, %v2527_v50  ;;  %v2702_v39 = vsel %vm1061_vm5, %v7494_v4, 0.0 }
 0x337   : > { %v2799_v38 = vsel %vm1061_vm5, %v2767_v59, 0.0  ;;  %v2771_v40 = vmul.f32 %v7492_v25, %v7492_v25  ;;  %v2803_v18 = vsel %vm1061_vm5, %v2769_v15, 0.0  ;;  %v2706_v61 = vsel %vm1061_vm5, %v7492_v25, 0.0 }
 0x338   : > { %v7504_v14 = vadd.f32 %v2635_v3, %v2595_v16  ;;  %v7506_v6 = vadd.f32 %v2637_v37, %v2597_v51  ;;  %v7508_v42 = vadd.f32 %v2639_v32, %v2599_v36  ;;  %v2772_v48 = vmul.f32 %v7362_v27, %v7362_v27 }
 0x339   : > { %v2708_v19 = vsel %vm1061_vm5, %v7362_v27, 0.0  ;;  %v2773_v8 = vmul.f32 %v7364_v20, %v7364_v20  ;;  %v2807_v12 = vsel %vm1061_vm5, %v2771_v40, 0.0  ;;  %v2774_v63 = vmul.f32 %v7366_v1, %v7366_v1 }
 0x33a   : > { %v2697_v23 = vsel %vm1061_vm5, %v7504_v14, 0.0  ;;  %v2766_v44 = vmul.f32 %v7504_v14, %v7504_v14  ;;  %v2768_v43 = vmul.f32 %v7506_v6, %v7506_v6  ;;  %v2700_v10 = vsel %vm1061_vm5, %v7506_v6, 0.0 }
 0x33b   : > { %v2699_v62 = vadd.f32 %v2698_v13, %v2697_v23  ;;  %v2770_v26 = vmul.f32 %v7508_v42, %v7508_v42  ;;  %v2704_v35 = vsel %vm1061_vm5, %v7508_v42, 0.0  ;;  %v2710_v3 = vsel %vm1061_vm5, %v7364_v20, 0.0 }
 0x33c   : > { %v2798_v2 = vsel %vm1061_vm5, %v2766_v44, 0.0  ;;  %v2801_v56 = vsel %vm1061_vm5, %v2768_v43, 0.0  ;;  %v2809_v37 = vsel %vm1061_vm5, %v2772_v48, 0.0  ;;  %v2775_v16 = vmul.f32 %v7368_v11, %v7368_v11 }
 0x33d   : > { %v2701_v17 = vadd.f32 %v2700_v10, %v2699_v62  ;;  %v2800_v45 = vadd.f32 %v2799_v38, %v2798_v2  ;;  %v2805_v57 = vsel %vm1061_vm5, %v2770_v26, 0.0  ;;  %v2712_v51 = vsel %vm1061_vm5, %v7366_v1, 0.0 }
 0x33e   : > { %v2811_v36 = vsel %vm1061_vm5, %v2773_v8, 0.0  ;;  %v2776_v23 = vmul.f32 %v7370_v47, %v7370_v47  ;;  %v2714_v44 = vsel %vm1061_vm5, %v7368_v11, 0.0  ;;  %v2813_v38 = vsel %vm1061_vm5, %v2774_v63, 0.0 }
 0x33f   : > { %v2703_v22 = vadd.f32 %v2702_v39, %v2701_v17  ;;  %v2802_v58 = vadd.f32 %v2801_v56, %v2800_v45  ;;  %v2716_v10 = vsel %vm1061_vm5, %v7370_v47, 0.0  ;;  %v2777_v15 = vmul.f32 %v7372_v55, %v7372_v55 }
 0x340   : > { %v2815_v2 = vsel %vm1061_vm5, %v2775_v16, 0.0  ;;  %v2718_v39 = vsel %vm1061_vm5, %v7372_v55, 0.0  ;;  %v2778_v26 = vmul.f32 %v7374_v30, %v7374_v30  ;;  %v2817_v56 = vsel %vm1061_vm5, %v2776_v23, 0.0 }
 0x341   : > { %v2705_v60 = vadd.f32 %v2704_v35, %v2703_v22  ;;  %v2804_v49 = vadd.f32 %v2803_v18, %v2802_v58  ;;  %v2720_v35 = vsel %vm1061_vm5, %v7374_v30, 0.0  ;;  %v2779_v40 = vmul.f32 %v7376_v34, %v7376_v34 }
 0x342   : > { %v2819_v18 = vsel %vm1061_vm5, %v2777_v15, 0.0  ;;  %v2780_v48 = vmul.f32 %v7378_v9, %v7378_v9  ;;  %v2781_v8 = vmul.f32 %v7380_v31, %v7380_v31  ;;  %v2726_v63 = vsel %vm1061_vm5, %v7380_v31, 0.0 }
 0x343   : > { %v2707_v53 = vadd.f32 %v2706_v61, %v2705_v60  ;;  %v2806_v46 = vadd.f32 %v2805_v57, %v2804_v49  ;;  %v2722_v61 = vsel %vm1061_vm5, %v7376_v34, 0.0  ;;  %v2821_v57 = vsel %vm1061_vm5, %v2778_v26, 0.0 }
 0x344   : > { %v2728_v16 = vsel %vm1061_vm5, %v7382_v5, 0.0  ;;  %v2730_v23 = vsel %vm1061_vm5, %v7384_v0, 0.0  ;;  %v2785_v15 = vmul.f32 %v7388_v28, %v7388_v28  ;;  %v2786_v26 = vmul.f32 %v7390_v7, %v7390_v7 }
 0x345   : > { %v2709_v50 = vadd.f32 %v2708_v19, %v2707_v53  ;;  %v2808_v33 = vadd.f32 %v2807_v12, %v2806_v46  ;;  %v2724_v19 = vsel %vm1061_vm5, %v7378_v9, 0.0  ;;  %v2823_v12 = vsel %vm1061_vm5, %v2779_v40, 0.0 }
 0x346   : > { %v2787_v40 = vmul.f32 %v7392_v52, %v7392_v52 }
 0x347   : > { %v2711_v24 = vadd.f32 %v2710_v3, %v2709_v50  ;;  %v2810_v32 = vadd.f32 %v2809_v37, %v2808_v33  ;;  %v2782_v3 = vmul.f32 %v7382_v5, %v7382_v5  ;;  %v2825_v37 = vsel %vm1061_vm5, %v2780_v48, 0.0 }
 0x348   : > { %v2788_v48 = vmul.f32 %v7395_v54, %v7395_v54 }
 0x349   : > { %v2713_v59 = vadd.f32 %v2712_v51, %v2711_v24  ;;  %v2812_v13 = vadd.f32 %v2811_v36, %v2810_v32  ;;  %v2783_v51 = vmul.f32 %v7384_v0, %v7384_v0  ;;  %v2827_v36 = vsel %vm1061_vm5, %v2781_v8, 0.0 }
 0x34a   : > { %v2789_v8 = vmul.f32 %v7398_v41, %v7398_v41 }
 0x34b   : > { %v2715_v62 = vadd.f32 %v2714_v44, %v2713_v59  ;;  %v2814_v43 = vadd.f32 %v2813_v38, %v2812_v13  ;;  %v2784_v44 = vmul.f32 %v7386_v29, %v7386_v29  ;;  %v2829_v38 = vsel %vm1061_vm5, %v2782_v3, 0.0  ;;  %v9356_v3 = vld [vmem:[#allocation108_spill] sm:$0xff] }
 0x34d   : > { %v2717_v17 = vadd.f32 %v2716_v10, %v2715_v62  ;;  %v2816_v45 = vadd.f32 %v2815_v2, %v2814_v43  ;;  %v2732_v10 = vsel %vm1061_vm5, %v7386_v29, 0.0  ;;  %v2831_v2 = vsel %vm1061_vm5, %v2783_v51, 0.0 }
 0x34e   : > { %v2744_v51 = vsel %vm1061_vm5, %v9356_v3, 0.0 }
 0x34f   : > { %v2719_v22 = vadd.f32 %v2718_v39, %v2717_v17  ;;  %v2818_v58 = vadd.f32 %v2817_v56, %v2816_v45  ;;  %v2734_v39 = vsel %vm1061_vm5, %v7388_v28, 0.0  ;;  %v2833_v56 = vsel %vm1061_vm5, %v2784_v44, 0.0 }
 0x351   : > { %v2721_v60 = vadd.f32 %v2720_v35, %v2719_v22  ;;  %v2820_v49 = vadd.f32 %v2819_v18, %v2818_v58  ;;  %v2736_v35 = vsel %vm1061_vm5, %v7390_v7, 0.0  ;;  %v2835_v18 = vsel %vm1061_vm5, %v2785_v15, 0.0 }
 0x353   : > { %v2723_v53 = vadd.f32 %v2722_v61, %v2721_v60  ;;  %v2822_v46 = vadd.f32 %v2821_v57, %v2820_v49  ;;  %v2738_v61 = vsel %vm1061_vm5, %v7392_v52, 0.0  ;;  %v2837_v57 = vsel %vm1061_vm5, %v2786_v26, 0.0 }
 0x355   : > { %v2725_v50 = vadd.f32 %v2724_v19, %v2723_v53  ;;  %v2824_v33 = vadd.f32 %v2823_v12, %v2822_v46  ;;  %v2740_v19 = vsel %vm1061_vm5, %v7395_v54, 0.0  ;;  %v2839_v12 = vsel %vm1061_vm5, %v2787_v40, 0.0 }
 0x357   : > { %v2727_v24 = vadd.f32 %v2726_v63, %v2725_v50  ;;  %v2826_v32 = vadd.f32 %v2825_v37, %v2824_v33  ;;  %v2742_v63 = vsel %vm1061_vm5, %v7398_v41, 0.0  ;;  %v2790_v37 = vmul.f32 %v9356_v3, %v9356_v3 }
 0x359   : > { %v2729_v59 = vadd.f32 %v2728_v16, %v2727_v24  ;;  %v2828_v13 = vadd.f32 %v2827_v36, %v2826_v32  ;;  %v2841_v24 = vsel %vm1061_vm5, %v2788_v48, 0.0  ;;  %v9357_v36 = vld [vmem:[#allocation76_spill] sm:$0xff]  ;;  %v9361_v48 = vld [vmem:[#allocation58_spill] sm:$0xff] }
 0x35b   : > { %v2731_v62 = vadd.f32 %v2730_v23, %v2729_v59  ;;  %v2830_v43 = vadd.f32 %v2829_v38, %v2828_v13  ;;  %v2791_v59 = vmul.f32 %v9357_v36, %v9357_v36  ;;  %v2843_v13 = vsel %vm1061_vm5, %v2789_v8, 0.0  ;;  %v9358_v38 = vld [vmem:[#allocation47_spill] sm:$0xff] }
 0x35c   : > { %v2754_v8 = vsel %vm1061_vm5, %v9361_v48, 0.0 }
 0x35d   : > { %v2733_v17 = vadd.f32 %v2732_v10, %v2731_v62  ;;  %v2832_v45 = vadd.f32 %v2831_v2, %v2830_v43  ;;  %v2792_v62 = vmul.f32 %v9358_v38, %v9358_v38  ;;  %v2746_v43 = vsel %vm1061_vm5, %v9357_v36, 0.0 }
 0x35e   : > { %v2845_v10 = vsel %vm1061_vm5, %v2790_v37, 0.0  ;;  %v2847_v26 = vsel %vm1061_vm5, %v2791_v59, 0.0 }
 0x35f   : > { %v2735_v22 = vadd.f32 %v2734_v39, %v2733_v17  ;;  %v2834_v58 = vadd.f32 %v2833_v56, %v2832_v45  ;;  %v2748_v17 = vsel %vm1061_vm5, %v9358_v38, 0.0  ;;  %v9359_v45 = vld [vmem:[#allocation83_spill] sm:$0xff] }
 0x360   : > { %v2793_v39 = vmul.f32 %v9359_v45, %v9359_v45 }
 0x361   : > { %v2737_v60 = vadd.f32 %v2736_v35, %v2735_v22  ;;  %v2836_v49 = vadd.f32 %v2835_v18, %v2834_v58  ;;  %v2750_v58 = vsel %vm1061_vm5, %v9359_v45, 0.0  ;;  %v9360_v35 = vld [vmem:[#allocation49_spill] sm:$0xff]  ;;  %v2849_v18 = vsel %vm1061_vm5, %v2792_v62, 0.0 }
 0x362   : > { %v2794_v40 = vmul.f32 %v9360_v35, %v9360_v35 }
 0x363   : > { %v2739_v53 = vadd.f32 %v2738_v61, %v2737_v60  ;;  %v2838_v46 = vadd.f32 %v2837_v57, %v2836_v49  ;;  %v2752_v61 = vsel %vm1061_vm5, %v9360_v35, 0.0  ;;  %v2795_v57 = vmul.f32 %v9361_v48, %v9361_v48 }
 0x365   : > { %v2741_v50 = vadd.f32 %v2740_v19, %v2739_v53  ;;  %v2840_v33 = vadd.f32 %v2839_v12, %v2838_v46  ;;  %v2851_v53 = vsel %vm1061_vm5, %v2793_v39, 0.0  ;;  %v9362_v12 = vld [vmem:[#allocation48_spill] sm:$0xff] }
 0x367   : > { %v2743_v32 = vadd.f32 %v2742_v63, %v2741_v50  ;;  %v2842_v16 = vadd.f32 %v2841_v24, %v2840_v33  ;;  %v2796_v50 = vmul.f32 %v9362_v12, %v9362_v12  ;;  %v2853_v33 = vsel %vm1061_vm5, %v2794_v40, 0.0 }
 0x368   : > { %v2756_v24 = vsel %vm1061_vm5, %v9362_v12, 0.0 }
 0x369   : > { %v2745_v23 = vadd.f32 %v2744_v51, %v2743_v32  ;;  %v2844_v44 = vadd.f32 %v2843_v13, %v2842_v16  ;;  %v9363_v32 = vld [vmem:[#allocation84_spill] sm:$0xff]  ;;  %v2855_v51 = vsel %vm1061_vm5, %v2795_v57, 0.0 }
 0x36a   : > { %v2797_v16 = vmul.f32 %v9363_v32, %v9363_v32 }
 0x36b   : > { %v2747_v15 = vadd.f32 %v2746_v43, %v2745_v23  ;;  %v2846_v2 = vadd.f32 %v2845_v10, %v2844_v44  ;;  %v2758_v23 = vsel %vm1061_vm5, %v9363_v32, 0.0  ;;  %v2857_v44 = vsel %vm1061_vm5, %v2796_v50, 0.0 }
 0x36c   : > { %v2859_v10 = vsel %vm1061_vm5, %v2797_v16, 0.0 }
 0x36d   : > { %v2749_v56 = vadd.f32 %v2748_v17, %v2747_v15  ;;  %v2848_v22 = vadd.f32 %v2847_v26, %v2846_v2 }
 0x36f   : > { %v2751_v60 = vadd.f32 %v2750_v58, %v2749_v56  ;;  %v2850_v49 = vadd.f32 %v2849_v18, %v2848_v22 }
 0x371   : > { %v2753_v46 = vadd.f32 %v2752_v61, %v2751_v60  ;;  %v2852_v19 = vadd.f32 %v2851_v53, %v2850_v49 }
 0x373   : > { %v2755_v63 = vadd.f32 %v2754_v8, %v2753_v46  ;;  %v2854_v37 = vadd.f32 %v2853_v33, %v2852_v19 }
 0x375   : > { %v2757_v59 = vadd.f32 %v2756_v24, %v2755_v63  ;;  %v2856_v13 = vadd.f32 %v2855_v51, %v2854_v37 }
 0x377   : > { %v2759_v62 = vadd.f32 %v2758_v23, %v2757_v59  ;;  %v2858_v43 = vadd.f32 %v2857_v44, %v2856_v13 }
 0x379   : > { %v2760_v15 = vrot.slane %v2759_v62, 4  ;;  %v2860_v2 = vadd.f32 %v2859_v10, %v2858_v43 }
 0x37b   : > { %v2761_v17 = vadd.f32 %v2760_v15, %v2759_v62  ;;  %v2861_v39 = vrot.slane %v2860_v2, 4 }
 0x37d   : > { %v2762_v26 = vrot.slane %v2761_v17, 2  ;;  %v2862_v56 = vadd.f32 %v2861_v39, %v2860_v2 }
 0x37f   : > { %v2763_v22 = vadd.f32 %v2762_v26, %v2761_v17  ;;  %v2863_v58 = vrot.slane %v2862_v56, 2 }
 0x381   : > { %v2764_v40 = vrot.slane %v2763_v22, 1  ;;  %v2864_v18 = vadd.f32 %v2863_v58, %v2862_v56 }
 0x383   : > { %v2765_v60 = vadd.f32 %v2764_v40, %v2763_v22  ;;  %v2865_v49 = vrot.slane %v2864_v18, 1 }
 0x385   : > { %v2866_v61 = vadd.f32 %v2865_v49, %v2864_v18  ;;  %v7668_v57 = vmul.f32 0.00390625, %v2765_v60 }
 0x387   : > { %v2868_v53 = vmul.f32 0.00390625, %v2866_v61  ;;  %v2869_v46 = vmul.f32 %v7668_v57, %v7668_v57  ;;  %v2872_v33 = vsub.f32 %v7504_v14, %v7668_v57  ;;  %v2873_v63 = vsub.f32 %v7490_v21, %v7668_v57 }
 0x388   : > { %v2874_v51 = vsub.f32 %v7506_v6, %v7668_v57  ;;  %v2875_v14 = vsub.f32 %v7494_v4, %v7668_v57  ;;  %v2876_v21 = vsub.f32 %v7508_v42, %v7668_v57  ;;  %v2900_v13 = vsub.f32 %v9360_v35, %v7668_v57 }
 0x389   : > { %v2870_v19 = vsub.f32 %v2868_v53, %v2869_v46  ;;  %v2901_v6 = vsub.f32 %v9361_v48, %v7668_v57  ;;  %v2902_v44 = vsub.f32 %v9362_v12, %v7668_v57  ;;  %v2903_v62 = vsub.f32 %v9363_v32, %v7668_v57 }
 0x38a   : > { %v2877_v43 = vsub.f32 %v7492_v25, %v7668_v57  ;;  %v2878_v32 = vsub.f32 %v7362_v27, %v7668_v57  ;;  %v2879_v15 = vsub.f32 %v7364_v20, %v7668_v57  ;;  %v2880_v2 = vsub.f32 %v7366_v1, %v7668_v57 }
 0x38b   : > { %v2871_v8 = vmax.f32 %v2870_v19, 0.0  ;;  %v2881_v27 = vsub.f32 %v7368_v11, %v7668_v57  ;;  %v2882_v26 = vsub.f32 %v7370_v47, %v7668_v57  ;;  %v2883_v1 = vsub.f32 %v7372_v55, %v7668_v57 }
 0x38c   : > { %v2884_v22 = vsub.f32 %v7374_v30, %v7668_v57  ;;  %v2885_v47 = vsub.f32 %v7376_v34, %v7668_v57  ;;  %v2886_v40 = vsub.f32 %v7378_v9, %v7668_v57  ;;  %v2887_v30 = vsub.f32 %v7380_v31, %v7668_v57 }
 0x38d   : > { %v2904_v50 = vadd.f32 1e-05, %v2871_v8  ;;  %v2888_v60 = vsub.f32 %v7382_v5, %v7668_v57  ;;  %v2889_v9 = vsub.f32 %v7384_v0, %v7668_v57  ;;  %v2890_v61 = vsub.f32 %v7386_v29, %v7668_v57 }
 0x38e   : > { %v2891_v5 = vsub.f32 %v7388_v28, %v7668_v57  ;;  %v2892_v46 = vsub.f32 %v7390_v7, %v7668_v57  ;;  %v2893_v29 = vsub.f32 %v7392_v52, %v7668_v57  ;;  %v2894_v8 = vsub.f32 %v7395_v54, %v7668_v57 }
 0x38f   : > { %3914 = vrsqrt.f32 %v2904_v50  ;;  %v2895_v7 = vsub.f32 %v7398_v41, %v7668_v57  ;;  %v2897_v54 = vsub.f32 %v9357_v36, %v7668_v57 }
 0x399   : > { %v7676_v37 = vpop.eup %3914 }
 0x39a   : > { %v2906_v24 = vmul.f32 %v7676_v37, %v2872_v33  ;;  %v2907_v16 = vmul.f32 %v7676_v37, %v2873_v63  ;;  %v2908_v59 = vmul.f32 %v7676_v37, %v2874_v51  ;;  %v2909_v23 = vmul.f32 %v7676_v37, %v2875_v14 }
 0x39b   : > { %v2910_v4 = vmul.f32 %v7676_v37, %v2876_v21  ;;  %v7704_v42 = vmul.f32 %v7676_v37, %v2900_v13  ;;  %v7707_v35 = vmul.f32 %v7676_v37, %v2901_v6  ;;  %v7710_v48 = vmul.f32 %v7676_v37, %v2902_v44 }
 0x39c   : > { %3854 = vmatprep.mubr.msk.f32.mxu1 %vm1061_vm5, %v2906_v24  ;;  %v7713_v12 = vmul.f32 %v7676_v37, %v2903_v62  ;;  %v2911_v25 = vmul.f32 %v7676_v37, %v2877_v43  ;;  %v2912_v10 = vmul.f32 %v7676_v37, %v2878_v32  ;;  %v2913_v17 = vmul.f32 %v7676_v37, %v2879_v15 }
 0x39d   : > { %3855 = vmatmul.mubr.msk.f32.vlgmr.msra.gmra.mrb[0].mxu1 %vm1061_vm5, %v2907_v16  ;;  %v2914_v39 = vmul.f32 %v7676_v37, %v2880_v2  ;;  %v2915_v20 = vmul.f32 %v7676_v37, %v2881_v27  ;;  %v2916_v56 = vmul.f32 %v7676_v37, %v2882_v26  ;;  %v2917_v11 = vmul.f32 %v7676_v37, %v2883_v1 }
 0x39e   : > { %3857 = vmatprep.mubr.msk.f32.mxu1 %vm1061_vm5, %v2908_v59  ;;  %v2918_v58 = vmul.f32 %v7676_v37, %v2884_v22  ;;  %v2919_v55 = vmul.f32 %v7676_v37, %v2885_v47  ;;  %v2920_v18 = vmul.f32 %v7676_v37, %v2886_v40  ;;  %v2921_v34 = vmul.f32 %v7676_v37, %v2887_v30 }
 0x39f   : > { %v2922_v49 = vmul.f32 %v7676_v37, %v2888_v60  ;;  %v2923_v31 = vmul.f32 %v7676_v37, %v2889_v9  ;;  %v2924_v53 = vmul.f32 %v7676_v37, %v2890_v61  ;;  %v2925_v0 = vmul.f32 %v7676_v37, %v2891_v5 }
 0x3a0   : > { %v2926_v19 = vmul.f32 %v7676_v37, %v2892_v46  ;;  %v2927_v28 = vmul.f32 %v7676_v37, %v2893_v29  ;;  %v2928_v50 = vmul.f32 %v7676_v37, %v2894_v8  ;;  %v2896_v33 = vsub.f32 %v9356_v3, %v7668_v57 }
 0x3a1   : > { %3858 = vmatmul.mubr.msk.f32.gmra.mrb[2].mxu1 %vm1061_vm5, %v2909_v23  ;;  %v2929_v52 = vmul.f32 %v7676_v37, %v2895_v7  ;;  %v2898_v24 = vsub.f32 %v9358_v38, %v7668_v57  ;;  %v2931_v41 = vmul.f32 %v7676_v37, %v2897_v54  ;;  %v2899_v3 = vsub.f32 %v9359_v45, %v7668_v57 }
 0x3a2   : > { %3860 = vmatprep.mubr.msk.f32.mxu1 %vm1061_vm5, %v2910_v4  ;;  %v2930_v63 = vmul.f32 %v7676_v37, %v2896_v33 }
 0x3a3   : > { %v2932_v16 = vmul.f32 %v7676_v37, %v2898_v24  ;;  %v2933_v51 = vmul.f32 %v7676_v37, %v2899_v3 }
 0x3a5   : > { %3861 = vmatmul.mubr.msk.f32.gmra.mrb[4].mxu1 %vm1061_vm5, %v2911_v25 }
 0x3a6   : > { %3863 = vmatprep.mubr.msk.f32.mxu1 %vm1061_vm5, %v2912_v10 }
 0x3a9   : > { %3864 = vmatmul.mubr.msk.f32.gmra.mrb[6].mxu1 %vm1061_vm5, %v2913_v17 }
 0x3aa   : > { %3866 = vmatprep.mubr.msk.f32.mxu1 %vm1061_vm5, %v2914_v39 }
 0x3ad   : > { %3867 = vmatmul.mubr.msk.f32.gmra.mrb[8].mxu1 %vm1061_vm5, %v2915_v20 }
 0x3ae   : > { %3869 = vmatprep.mubr.msk.f32.mxu1 %vm1061_vm5, %v2916_v56 }
 0x3b1   : > { %3870 = vmatmul.mubr.msk.f32.gmra.mrb[10].mxu1 %vm1061_vm5, %v2917_v11 }
 0x3b2   : > { %3872 = vmatprep.mubr.msk.f32.mxu1 %vm1061_vm5, %v2918_v58 }
 0x3b5   : > { %3873 = vmatmul.mubr.msk.f32.gmra.mrb[12].mxu1 %vm1061_vm5, %v2919_v55 }
 0x3b6   : > { %3875 = vmatprep.mubr.msk.f32.mxu1 %vm1061_vm5, %v2920_v18 }
 0x3b9   : > { %3876 = vmatmul.mubr.msk.f32.gmra.mrb[14].mxu1 %vm1061_vm5, %v2921_v34 }
 0x3ba   : > { %3878 = vmatprep.mubr.msk.f32.mxu1 %vm1061_vm5, %v2922_v49 }
 0x3bd   : > { %3879 = vmatmul.mubr.msk.f32.gmra.mrb[16].mxu1 %vm1061_vm5, %v2923_v31 }
 0x3be   : > { %3881 = vmatprep.mubr.msk.f32.mxu1 %vm1061_vm5, %v2924_v53 }
 0x3c1   : > { %3882 = vmatmul.mubr.msk.f32.gmra.mrb[18].mxu1 %vm1061_vm5, %v2925_v0 }
 0x3c2   : > { %3884 = vmatprep.mubr.msk.f32.mxu1 %vm1061_vm5, %v2926_v19 }
 0x3c5   : > { %3885 = vmatmul.mubr.msk.f32.gmra.mrb[20].mxu1 %vm1061_vm5, %v2927_v28 }
 0x3c6   : > { %3887 = vmatprep.mubr.msk.f32.mxu1 %vm1061_vm5, %v2928_v50 }
 0x3c9   : > { %3888 = vmatmul.mubr.msk.f32.gmra.mrb[22].mxu1 %vm1061_vm5, %v2929_v52 }
 0x3ca   : > { %3890 = vmatprep.mubr.msk.f32.mxu1 %vm1061_vm5, %v2930_v63 }
 0x3cd   : > { %3891 = vmatmul.mubr.msk.f32.gmra.mrb[24].mxu1 %vm1061_vm5, %v2931_v41 }
 0x3ce   : > { %3893 = vmatprep.mubr.msk.f32.mxu1 %vm1061_vm5, %v2932_v16 }
 0x3d1   : > { %3894 = vmatmul.mubr.msk.f32.gmra.mrb[26].mxu1 %vm1061_vm5, %v2933_v51 }
 0x3d2   : > { %3896 = vmatprep.mubr.msk.f32.mxu1 %vm1061_vm5, %v7704_v42 }
 0x3d5   : > { %3897 = vmatmul.mubr.msk.f32.gmra.mrb[28].mxu1 %vm1061_vm5, %v7707_v35 }
 0x3d6   : > { %3899 = vmatprep.mubr.msk.f32.mxu1 %vm1061_vm5, %v7710_v48 }
 0x3d9   : > { %3900 = vmatmul.mubr.msk.f32.gmra.mrb[30].mxu1 %vm1061_vm5, %v7713_v12 }
 0x470   : > { %v7814_v36 = vpop.f32.mrb[0].mxu1 }
 0x471   : > { %v3264_v38 = vsel %vm1061_vm5, %v7814_v36, 0.0  ;;  %v3333_v45 = vmul.f32 %v7814_v36, %v7814_v36  ;;  %v7820_v57 = vpop.f32.mrb[1].mxu1 }
 0x472   : > { %v3263_v37 = vsel %vm1061_vm5, %v7820_v57, 0.0  ;;  %v3332_v59 = vmul.f32 %v7820_v57, %v7820_v57 }
 0x473   : > { %v3365_v14 = vsel %vm1061_vm5, %v3333_v45, 0.0  ;;  %v3265_v21 = vadd.f32 %v3264_v38, %v3263_v37 }
 0x474   : > { %v3364_v13 = vsel %vm1061_vm5, %v3332_v59, 0.0  ;;  %v7828_v23 = vpop.f32.mrb[2].mxu1 }
 0x475   : > { %v3366_v6 = vadd.f32 %v3365_v14, %v3364_v13  ;;  %v7830_v44 = vpop.f32.mrb[3].mxu1  ;;  %v3335_v62 = vmul.f32 %v7828_v23, %v7828_v23  ;;  %v3268_v35 = vsel %vm1061_vm5, %v7828_v23, 0.0 }
 0x476   : > { %v3266_v4 = vsel %vm1061_vm5, %v7830_v44, 0.0  ;;  %v3334_v43 = vmul.f32 %v7830_v44, %v7830_v44 }
 0x477   : > { %v3267_v42 = vadd.f32 %v3266_v4, %v3265_v21  ;;  %v3369_v15 = vsel %vm1061_vm5, %v3335_v62, 0.0 }
 0x478   : > { %v3367_v48 = vsel %vm1061_vm5, %v3334_v43, 0.0  ;;  %v7841_v12 = vpop.f32.mrb[4].mxu1 }
 0x479   : > { %v3368_v32 = vadd.f32 %v3367_v48, %v3366_v6  ;;  %v7843_v25 = vpop.f32.mrb[5].mxu1  ;;  %v3269_v10 = vadd.f32 %v3268_v35, %v3267_v42  ;;  %v3337_v2 = vmul.f32 %v7841_v12, %v7841_v12  ;;  %v3272_v20 = vsel %vm1061_vm5, %v7841_v12, 0.0 }
 0x47a   : > { %v3270_v17 = vsel %vm1061_vm5, %v7843_v25, 0.0  ;;  %v3336_v39 = vmul.f32 %v7843_v25, %v7843_v25 }
 0x47b   : > { %v3271_v27 = vadd.f32 %v3270_v17, %v3269_v10  ;;  %v3370_v26 = vadd.f32 %v3369_v15, %v3368_v32  ;;  %v3373_v47 = vsel %vm1061_vm5, %v3337_v2, 0.0 }
 0x47c   : > { %v3371_v56 = vsel %vm1061_vm5, %v3336_v39, 0.0  ;;  %v7855_v1 = vpop.f32.mrb[6].mxu1 }
 0x47d   : > { %v3372_v22 = vadd.f32 %v3371_v56, %v3370_v26  ;;  %v7857_v11 = vpop.f32.mrb[7].mxu1  ;;  %v3273_v58 = vadd.f32 %v3272_v20, %v3271_v27  ;;  %v3339_v40 = vmul.f32 %v7855_v1, %v7855_v1  ;;  %v3276_v34 = vsel %vm1061_vm5, %v7855_v1, 0.0 }
 0x47e   : > { %v3274_v55 = vsel %vm1061_vm5, %v7857_v11, 0.0  ;;  %v3338_v18 = vmul.f32 %v7857_v11, %v7857_v11 }
 0x47f   : > { %v3275_v30 = vadd.f32 %v3274_v55, %v3273_v58  ;;  %v3374_v60 = vadd.f32 %v3373_v47, %v3372_v22  ;;  %v3377_v5 = vsel %vm1061_vm5, %v3339_v40, 0.0 }
 0x480   : > { %v3375_v49 = vsel %vm1061_vm5, %v3338_v18, 0.0  ;;  %v7869_v9 = vpop.f32.mrb[8].mxu1 }
 0x481   : > { %v3376_v61 = vadd.f32 %v3375_v49, %v3374_v60  ;;  %v7871_v31 = vpop.f32.mrb[9].mxu1  ;;  %v3277_v53 = vadd.f32 %v3276_v34, %v3275_v30  ;;  %v3341_v46 = vmul.f32 %v7869_v9, %v7869_v9  ;;  %v3280_v28 = vsel %vm1061_vm5, %v7869_v9, 0.0 }
 0x482   : > { %v3278_v0 = vsel %vm1061_vm5, %v7871_v31, 0.0  ;;  %v3340_v19 = vmul.f32 %v7871_v31, %v7871_v31 }
 0x483   : > { %v3279_v29 = vadd.f32 %v3278_v0, %v3277_v53  ;;  %v3378_v8 = vadd.f32 %v3377_v5, %v3376_v61  ;;  %v3381_v54 = vsel %vm1061_vm5, %v3341_v46, 0.0 }
 0x484   : > { %v3379_v50 = vsel %vm1061_vm5, %v3340_v19, 0.0  ;;  %v7883_v7 = vpop.f32.mrb[10].mxu1 }
 0x485   : > { %v3380_v33 = vadd.f32 %v3379_v50, %v3378_v8  ;;  %v7885_v52 = vpop.f32.mrb[11].mxu1  ;;  %v3281_v63 = vadd.f32 %v3280_v28, %v3279_v29  ;;  %v3343_v24 = vmul.f32 %v7883_v7, %v7883_v7  ;;  %v3284_v38 = vsel %vm1061_vm5, %v7883_v7, 0.0 }
 0x486   : > { %v3282_v41 = vsel %vm1061_vm5, %v7885_v52, 0.0  ;;  %v3342_v16 = vmul.f32 %v7885_v52, %v7885_v52 }
 0x487   : > { %v3283_v3 = vadd.f32 %v3282_v41, %v3281_v63  ;;  %v3382_v51 = vadd.f32 %v3381_v54, %v3380_v33  ;;  %v3385_v13 = vsel %vm1061_vm5, %v3343_v24, 0.0 }
 0x488   : > { %v3383_v45 = vsel %vm1061_vm5, %v3342_v16, 0.0  ;;  %v7897_v37 = vpop.f32.mrb[12].mxu1 }
 0x489   : > { %v3384_v59 = vadd.f32 %v3383_v45, %v3382_v51  ;;  %v7899_v14 = vpop.f32.mrb[13].mxu1  ;;  %v3285_v21 = vadd.f32 %v3284_v38, %v3283_v3  ;;  %v3345_v6 = vmul.f32 %v7897_v37, %v7897_v37  ;;  %v3288_v35 = vsel %vm1061_vm5, %v7897_v37, 0.0 }
 0x48a   : > { %v3286_v62 = vsel %vm1061_vm5, %v7899_v14, 0.0  ;;  %v3344_v4 = vmul.f32 %v7899_v14, %v7899_v14 }
 0x48b   : > { %v3287_v43 = vadd.f32 %v3286_v62, %v3285_v21  ;;  %v3386_v42 = vadd.f32 %v3385_v13, %v3384_v59  ;;  %v3389_v17 = vsel %vm1061_vm5, %v3345_v6, 0.0 }
 0x48c   : > { %v3387_v48 = vsel %vm1061_vm5, %v3344_v4, 0.0  ;;  %v7911_v32 = vpop.f32.mrb[14].mxu1 }
 0x48d   : > { %v3388_v10 = vadd.f32 %v3387_v48, %v3386_v42  ;;  %v7913_v15 = vpop.f32.mrb[15].mxu1  ;;  %v3289_v2 = vadd.f32 %v3288_v35, %v3287_v43  ;;  %v3347_v39 = vmul.f32 %v7911_v32, %v7911_v32  ;;  %v3292_v22 = vsel %vm1061_vm5, %v7911_v32, 0.0 }
 0x48e   : > { %v3290_v27 = vsel %vm1061_vm5, %v7913_v15, 0.0  ;;  %v3346_v26 = vmul.f32 %v7913_v15, %v7913_v15 }
 0x48f   : > { %v3291_v20 = vadd.f32 %v3290_v27, %v3289_v2  ;;  %v3390_v56 = vadd.f32 %v3389_v17, %v3388_v10  ;;  %v3393_v30 = vsel %vm1061_vm5, %v3347_v39, 0.0 }
 0x490   : > { %v3391_v58 = vsel %vm1061_vm5, %v3346_v26, 0.0  ;;  %v7925_v47 = vpop.f32.mrb[16].mxu1 }
 0x491   : > { %v3392_v40 = vadd.f32 %v3391_v58, %v3390_v56  ;;  %v7927_v55 = vpop.f32.mrb[17].mxu1  ;;  %v3293_v18 = vadd.f32 %v3292_v22, %v3291_v20  ;;  %v3349_v60 = vmul.f32 %v7925_v47, %v7925_v47  ;;  %v3296_v5 = vsel %vm1061_vm5, %v7925_v47, 0.0 }
 0x492   : > { %v3294_v34 = vsel %vm1061_vm5, %v7927_v55, 0.0  ;;  %v3348_v49 = vmul.f32 %v7927_v55, %v7927_v55 }
 0x493   : > { %v3295_v61 = vadd.f32 %v3294_v34, %v3293_v18  ;;  %v3394_v53 = vadd.f32 %v3393_v30, %v3392_v40  ;;  %v3397_v28 = vsel %vm1061_vm5, %v3349_v60, 0.0 }
 0x494   : > { %v3395_v46 = vsel %vm1061_vm5, %v3348_v49, 0.0  ;;  %v7939_v0 = vpop.f32.mrb[18].mxu1 }
 0x495   : > { %v3396_v19 = vadd.f32 %v3395_v46, %v3394_v53  ;;  %v7941_v29 = vpop.f32.mrb[19].mxu1  ;;  %v3297_v8 = vadd.f32 %v3296_v5, %v3295_v61  ;;  %v3351_v50 = vmul.f32 %v7939_v0, %v7939_v0  ;;  %v3300_v41 = vsel %vm1061_vm5, %v7939_v0, 0.0 }
 0x496   : > { %v3298_v33 = vsel %vm1061_vm5, %v7941_v29, 0.0  ;;  %v3350_v63 = vmul.f32 %v7941_v29, %v7941_v29 }
 0x497   : > { %v3299_v54 = vadd.f32 %v3298_v33, %v3297_v8  ;;  %v3398_v24 = vadd.f32 %v3397_v28, %v3396_v19  ;;  %v3401_v59 = vsel %vm1061_vm5, %v3351_v50, 0.0 }
 0x498   : > { %v3399_v16 = vsel %vm1061_vm5, %v3350_v63, 0.0  ;;  %v7953_v3 = vpop.f32.mrb[20].mxu1 }
 0x499   : > { %v3400_v51 = vadd.f32 %v3399_v16, %v3398_v24  ;;  %v7955_v38 = vpop.f32.mrb[21].mxu1  ;;  %v3301_v45 = vadd.f32 %v3300_v41, %v3299_v54  ;;  %v3353_v21 = vmul.f32 %v7953_v3, %v7953_v3  ;;  %v3304_v43 = vsel %vm1061_vm5, %v7953_v3, 0.0 }
 0x49a   : > { %v3302_v13 = vsel %vm1061_vm5, %v7955_v38, 0.0  ;;  %v3352_v6 = vmul.f32 %v7955_v38, %v7955_v38 }
 0x49b   : > { %v3303_v62 = vadd.f32 %v3302_v13, %v3301_v45  ;;  %v3402_v4 = vadd.f32 %v3401_v59, %v3400_v51  ;;  %v3405_v17 = vsel %vm1061_vm5, %v3353_v21, 0.0 }
 0x49c   : > { %v3403_v42 = vsel %vm1061_vm5, %v3352_v6, 0.0  ;;  %v7967_v35 = vpop.f32.mrb[22].mxu1 }
 0x49d   : > { %v3404_v48 = vadd.f32 %v3403_v42, %v3402_v4  ;;  %v7969_v10 = vpop.f32.mrb[23].mxu1  ;;  %v3305_v2 = vadd.f32 %v3304_v43, %v3303_v62  ;;  %v3355_v39 = vmul.f32 %v7967_v35, %v7967_v35  ;;  %v3308_v22 = vsel %vm1061_vm5, %v7967_v35, 0.0 }
 0x49e   : > { %v3306_v27 = vsel %vm1061_vm5, %v7969_v10, 0.0  ;;  %v3354_v26 = vmul.f32 %v7969_v10, %v7969_v10 }
 0x49f   : > { %v3307_v20 = vadd.f32 %v3306_v27, %v3305_v2  ;;  %v3406_v56 = vadd.f32 %v3405_v17, %v3404_v48  ;;  %v3409_v34 = vsel %vm1061_vm5, %v3355_v39, 0.0 }
 0x4a0   : > { %v3407_v58 = vsel %vm1061_vm5, %v3354_v26, 0.0  ;;  %v7981_v40 = vpop.f32.mrb[24].mxu1 }
 0x4a1   : > { %v3408_v18 = vadd.f32 %v3407_v58, %v3406_v56  ;;  %v7983_v30 = vpop.f32.mrb[25].mxu1  ;;  %v3309_v60 = vadd.f32 %v3308_v22, %v3307_v20  ;;  %v3357_v49 = vmul.f32 %v7981_v40, %v7981_v40  ;;  %v3312_v19 = vsel %vm1061_vm5, %v7981_v40, 0.0 }
 0x4a2   : > { %v3310_v61 = vsel %vm1061_vm5, %v7983_v30, 0.0  ;;  %v3356_v53 = vmul.f32 %v7983_v30, %v7983_v30 }
 0x4a3   : > { %v3311_v5 = vadd.f32 %v3310_v61, %v3309_v60  ;;  %v3410_v46 = vadd.f32 %v3409_v34, %v3408_v18  ;;  %v3413_v54 = vsel %vm1061_vm5, %v3357_v49, 0.0 }
 0x4a4   : > { %v3411_v8 = vsel %vm1061_vm5, %v3356_v53, 0.0  ;;  %v7995_v28 = vpop.f32.mrb[26].mxu1 }
 0x4a5   : > { %v3412_v50 = vadd.f32 %v3411_v8, %v3410_v46  ;;  %v7997_v33 = vpop.f32.mrb[27].mxu1  ;;  %v3313_v63 = vadd.f32 %v3312_v19, %v3311_v5  ;;  %v3359_v24 = vmul.f32 %v7995_v28, %v7995_v28  ;;  %v3316_v59 = vsel %vm1061_vm5, %v7995_v28, 0.0 }
 0x4a6   : > { %v3314_v41 = vsel %vm1061_vm5, %v7997_v33, 0.0  ;;  %v3358_v16 = vmul.f32 %v7997_v33, %v7997_v33 }
 0x4a7   : > { %v3315_v51 = vadd.f32 %v3314_v41, %v3313_v63  ;;  %v3414_v45 = vadd.f32 %v3413_v54, %v3412_v50  ;;  %v3417_v43 = vsel %vm1061_vm5, %v3359_v24, 0.0 }
 0x4a8   : > { %v3415_v21 = vsel %vm1061_vm5, %v3358_v16, 0.0  ;;  %v8009_v13 = vpop.f32.mrb[28].mxu1 }
 0x4a9   : > { %v3416_v6 = vadd.f32 %v3415_v21, %v3414_v45  ;;  %v8011_v62 = vpop.f32.mrb[29].mxu1  ;;  %v3317_v4 = vadd.f32 %v3316_v59, %v3315_v51  ;;  %v3361_v42 = vmul.f32 %v8009_v13, %v8009_v13  ;;  %v3320_v27 = vsel %vm1061_vm5, %v8009_v13, 0.0 }
 0x4aa   : > { %v3318_v48 = vsel %vm1061_vm5, %v8011_v62, 0.0  ;;  %v3360_v2 = vmul.f32 %v8011_v62, %v8011_v62 }
 0x4ab   : > { %v3319_v17 = vadd.f32 %v3318_v48, %v3317_v4  ;;  %v3418_v39 = vadd.f32 %v3417_v43, %v3416_v6  ;;  %v3421_v18 = vsel %vm1061_vm5, %v3361_v42, 0.0 }
 0x4ac   : > { %v3419_v26 = vsel %vm1061_vm5, %v3360_v2, 0.0  ;;  %v8023_v20 = vpop.f32.mrb[30].mxu1 }
 0x4ad   : > { %v3420_v56 = vadd.f32 %v3419_v26, %v3418_v39  ;;  %v8025_v22 = vpop.f32.mrb[31].mxu1  ;;  %v3321_v58 = vadd.f32 %v3320_v27, %v3319_v17  ;;  %v3363_v60 = vmul.f32 %v8023_v20, %v8023_v20  ;;  %v3324_v5 = vsel %vm1061_vm5, %v8023_v20, 0.0 }
 0x4ae   : > { %v3322_v34 = vsel %vm1061_vm5, %v8025_v22, 0.0  ;;  %v3362_v49 = vmul.f32 %v8025_v22, %v8025_v22 }
 0x4af   : > { %v3323_v61 = vadd.f32 %v3322_v34, %v3321_v58  ;;  %v3422_v53 = vadd.f32 %v3421_v18, %v3420_v56  ;;  %v3425_v50 = vsel %vm1061_vm5, %v3363_v60, 0.0 }
 0x4b0   : > { %v3423_v46 = vsel %vm1061_vm5, %v3362_v49, 0.0 }
 0x4b1   : > { %v3325_v19 = vadd.f32 %v3324_v5, %v3323_v61  ;;  %v3424_v8 = vadd.f32 %v3423_v46, %v3422_v53 }
 0x4b3   : > { %v3326_v63 = vrot.slane %v3325_v19, 4  ;;  %v3426_v54 = vadd.f32 %v3425_v50, %v3424_v8 }
 0x4b5   : > { %v3327_v24 = vadd.f32 %v3326_v63, %v3325_v19  ;;  %v3427_v41 = vrot.slane %v3426_v54, 4 }
 0x4b7   : > { %v3328_v16 = vrot.slane %v3327_v24, 2  ;;  %v3428_v51 = vadd.f32 %v3427_v41, %v3426_v54 }
 0x4b9   : > { %v3329_v45 = vadd.f32 %v3328_v16, %v3327_v24  ;;  %v3429_v59 = vrot.slane %v3428_v51, 2 }
 0x4bb   : > { %v3330_v21 = vrot.slane %v3329_v45, 1  ;;  %v3430_v6 = vadd.f32 %v3429_v59, %v3428_v51 }
 0x4bd   : > { %v3331_v4 = vadd.f32 %v3330_v21, %v3329_v45  ;;  %v3431_v43 = vrot.slane %v3430_v6, 1 }
 0x4bf   : > { %v3432_v42 = vadd.f32 %v3431_v43, %v3430_v6  ;;  %v8038_v48 = vmul.f32 0.00390625, %v3331_v4 }
 0x4c1   : > { %v3434_v2 = vmul.f32 0.00390625, %v3432_v42  ;;  %v3435_v17 = vmul.f32 %v8038_v48, %v8038_v48  ;;  %v3438_v39 = vsub.f32 %v7820_v57, %v8038_v48  ;;  %v3439_v27 = vsub.f32 %v7814_v36, %v8038_v48 }
 0x4c2   : > { %v3440_v26 = vsub.f32 %v7830_v44, %v8038_v48  ;;  %v3441_v56 = vsub.f32 %v7828_v23, %v8038_v48  ;;  %v3442_v58 = vsub.f32 %v7843_v25, %v8038_v48  ;;  %v3443_v18 = vsub.f32 %v7841_v12, %v8038_v48 }
 0x4c3   : > { %v3436_v60 = vsub.f32 %v3434_v2, %v3435_v17  ;;  %v3444_v34 = vsub.f32 %v7857_v11, %v8038_v48  ;;  %v3445_v57 = vsub.f32 %v7855_v1, %v8038_v48  ;;  %v3446_v36 = vsub.f32 %v7871_v31, %v8038_v48 }
 0x4c4   : > { %v3447_v44 = vsub.f32 %v7869_v9, %v8038_v48  ;;  %v3448_v23 = vsub.f32 %v7885_v52, %v8038_v48  ;;  %v3449_v25 = vsub.f32 %v7883_v7, %v8038_v48  ;;  %v3450_v12 = vsub.f32 %v7899_v14, %v8038_v48 }
 0x4c5   : > { %v3437_v49 = vmax.f32 %v3436_v60, 0.0  ;;  %v3451_v11 = vsub.f32 %v7897_v37, %v8038_v48  ;;  %v3452_v1 = vsub.f32 %v7913_v15, %v8038_v48  ;;  %v3453_v31 = vsub.f32 %v7911_v32, %v8038_v48  ;;  %v3928_v60 = vld [vmem:[%s3998_s25 + $0x8] sm:$0xff] }
 0x4c6   : > { %v3454_v9 = vsub.f32 %v7927_v55, %v8038_v48  ;;  %v3455_v52 = vsub.f32 %v7925_v47, %v8038_v48  ;;  %v3456_v7 = vsub.f32 %v7941_v29, %v8038_v48  ;;  %v3457_v14 = vsub.f32 %v7939_v0, %v8038_v48 }
 0x4c7   : > { %v3458_v37 = vsub.f32 %v7955_v38, %v8038_v48  ;;  %v3459_v15 = vsub.f32 %v7953_v3, %v8038_v48  ;;  %v3460_v32 = vsub.f32 %v7969_v10, %v8038_v48  ;;  %v3461_v55 = vsub.f32 %v7967_v35, %v8038_v48 }
 0x4c8   : > { %v3462_v47 = vsub.f32 %v7983_v30, %v8038_v48  ;;  %v3463_v29 = vsub.f32 %v7981_v40, %v8038_v48  ;;  %v3464_v0 = vsub.f32 %v7997_v33, %v8038_v48  ;;  %v3465_v38 = vsub.f32 %v7995_v28, %v8038_v48 }
 0x4c9   : > { %v3466_v3 = vsub.f32 %v8011_v62, %v8038_v48  ;;  %v3467_v10 = vsub.f32 %v8009_v13, %v8038_v48  ;;  %v3468_v35 = vsub.f32 %v8025_v22, %v8038_v48  ;;  %v3469_v30 = vsub.f32 %v8023_v20, %v8038_v48 }
 0x4ca   : > { %v3470_v61 = vadd.f32 1e-05, %v3437_v49  ;;  %v3932_v49 = vld [vmem:[%s3998_s25 + $0x28] sm:$0xff] }
 0x4cc   : > { %3916 = vrsqrt.f32 %v3470_v61  ;;  %v9367_v61 = vld [vmem:[#allocation21_spill] sm:$0xff] }
 0x4d6   : > { %v3917_v40 = vpop.eup %3916 }
 0x4d7   : > { %v3472_v53 = vmul.f32 %v3917_v40, %v3438_v39  ;;  %v3473_v33 = vmul.f32 %v3917_v40, %v3439_v27  ;;  %v3474_v5 = vmul.f32 %v3917_v40, %v3440_v26  ;;  %v3475_v46 = vmul.f32 %v3917_v40, %v3441_v56 }
 0x4d8   : > { %v3476_v28 = vmul.f32 %v3917_v40, %v3442_v58  ;;  %v3477_v19 = vmul.f32 %v3917_v40, %v3443_v18  ;;  %v3478_v8 = vmul.f32 %v3917_v40, %v3444_v34  ;;  %v3479_v62 = vmul.f32 %v3917_v40, %v3445_v57  ;;  %v3927_v58 = vld [vmem:[%s3998_s25] sm:$0xff]  ;;  %v3929_v57 = vld [vmem:[%s3998_s25 + $0x10] sm:$0xff] }
 0x4d9   : > { %v3480_v50 = vmul.f32 %v3917_v40, %v3446_v36  ;;  %v3481_v63 = vmul.f32 %v3917_v40, %v3447_v44  ;;  %v3482_v13 = vmul.f32 %v3917_v40, %v3448_v23  ;;  %v3483_v54 = vmul.f32 %v3917_v40, %v3449_v25  ;;  %v3930_v44 = vld [vmem:[%s3998_s25 + $0x18] sm:$0xff]  ;;  %v3931_v25 = vld [vmem:[%s3998_s25 + $0x20] sm:$0xff] }
 0x4da   : > { %v3484_v24 = vmul.f32 %v3917_v40, %v3450_v12  ;;  %v3485_v22 = vmul.f32 %v3917_v40, %v3451_v11  ;;  %v3486_v41 = vmul.f32 %v3917_v40, %v3452_v1  ;;  %v3487_v20 = vmul.f32 %v3917_v40, %v3453_v31  ;;  %v3933_v1 = vld [vmem:[%s3998_s25 + $0x30] sm:$0xff] }
 0x4db   : > { %v3488_v16 = vmul.f32 %v3917_v40, %v3454_v9  ;;  %v3489_v51 = vmul.f32 %v3917_v40, %v3455_v52  ;;  %v3490_v45 = vmul.f32 %v3917_v40, %v3456_v7  ;;  %v3491_v59 = vmul.f32 %v3917_v40, %v3457_v14  ;;  %v3934_v9 = vld [vmem:[%s3998_s25 + $0x38] sm:$0xff]  ;;  %v3935_v7 = vld [vmem:[%s3998_s25 + $0x40] sm:$0xff] }
 0x4dc   : > { %v3492_v21 = vmul.f32 %v3917_v40, %v3458_v37  ;;  %v3493_v6 = vmul.f32 %v3917_v40, %v3459_v15  ;;  %v3494_v4 = vmul.f32 %v3917_v40, %v3460_v32  ;;  %v3495_v43 = vmul.f32 %v3917_v40, %v3461_v55  ;;  %v3936_v37 = vld [vmem:[%s3998_s25 + $0x48] sm:$0xff]  ;;  %v3937_v32 = vld [vmem:[%s3998_s25 + $0x50] sm:$0xff] }
 0x4dd   : > { %v3496_v42 = vmul.f32 %v3917_v40, %v3462_v47  ;;  %v3497_v48 = vmul.f32 %v3917_v40, %v3463_v29  ;;  %v3498_v2 = vmul.f32 %v3917_v40, %v3464_v0  ;;  %v3499_v17 = vmul.f32 %v3917_v40, %v3465_v38  ;;  %v3938_v47 = vld [vmem:[%s3998_s25 + $0x58] sm:$0xff]  ;;  %v9364_v0 = vld [vmem:[#allocation16_spill] sm:$0xff] }
 0x4de   : > { %v8113_v39 = vmul.f32 %v3917_v40, %v3466_v3  ;;  %v8115_v27 = vmul.f32 %v3917_v40, %v3467_v10  ;;  %v8117_v26 = vmul.f32 %v3917_v40, %v3468_v35  ;;  %v8119_v56 = vmul.f32 %v3917_v40, %v3469_v30  ;;  %v9365_v3 = vld [vmem:[#allocation17_spill] sm:$0xff]  ;;  %v9366_v35 = vld [vmem:[#allocation18_spill] sm:$0xff] }
 0x4df   : > { %v3504_v18 = vadd.f32 %v3927_v58, %v3472_v53  ;;  %v3505_v34 = vadd.f32 %v3928_v60, %v3473_v33  ;;  %v3506_v36 = vadd.f32 %v3929_v57, %v3474_v5  ;;  %v3507_v23 = vadd.f32 %v3930_v44, %v3475_v46  ;;  %v9368_v53 = vld [vmem:[#allocation22_spill] sm:$0xff]  ;;  %v9369_v5 = vld [vmem:[#allocation23_spill] sm:$0xff] }
 0x4e0   : > { %v3508_v12 = vadd.f32 %v3931_v25, %v3476_v28  ;;  %v3509_v11 = vadd.f32 %v3932_v49, %v3477_v19  ;;  %v3510_v31 = vadd.f32 %v3933_v1, %v3478_v8  ;;  %v3511_v52 = vadd.f32 %v3934_v9, %v3479_v62  ;;  %v9370_v28 = vld [vmem:[#allocation25_spill] sm:$0xff]  ;;  %v9371_v8 = vld [vmem:[#allocation26_spill] sm:$0xff] }
 0x4e1   : > { %v3512_v14 = vadd.f32 %v3935_v7, %v3480_v50  ;;  %v3513_v15 = vadd.f32 %v3936_v37, %v3481_v63  ;;  %v3514_v55 = vadd.f32 %v3937_v32, %v3482_v13  ;;  %v3515_v29 = vadd.f32 %v3938_v47, %v3483_v54  ;;  %3536 = vst.msk [vmem:[%s8111_s17] sm:$0xff] %vm1061_vm5, %v3504_v18  ;;  %v9372_v50 = vld [vmem:[#allocation27_spill] sm:$0xff]  ;;  %v9373_v13 = vld [vmem:[#allocation29_spill] sm:$0xff]  ;;  %v9383_v60 = vld [vmem:[#allocation42_spill] sm:$0xff] }
 0x4e2   : > { %3537 = vst.msk [vmem:[%s8111_s17 + $0x8] sm:$0xff] %vm1061_vm5, %v3505_v34  ;;  %3538 = vst.msk [vmem:[%s8111_s17 + $0x10] sm:$0xff] %vm1061_vm5, %v3506_v36  ;;  %v3516_v38 = vadd.f32 %v3484_v24, %v9364_v0  ;;  %v3517_v10 = vadd.f32 %v3485_v22, %v9365_v3  ;;  %v3518_v30 = vadd.f32 %v3486_v41, %v9366_v35  ;;  %v9374_v24 = vld [vmem:[#allocation30_spill] sm:$0xff]  ;;  %v9375_v41 = vld [vmem:[#allocation31_spill] sm:$0xff] }
 0x4e3   : > { %3539 = vst.msk [vmem:[%s8111_s17 + $0x18] sm:$0xff] %vm1061_vm5, %v3507_v23  ;;  %v3519_v40 = vadd.f32 %v3487_v20, %v9367_v61  ;;  %3540 = vst.msk [vmem:[%s8111_s17 + $0x20] sm:$0xff] %vm1061_vm5, %v3508_v12  ;;  %v3520_v33 = vadd.f32 %v3488_v16, %v9368_v53  ;;  %v3521_v46 = vadd.f32 %v3489_v51, %v9369_v5  ;;  %v9376_v16 = vld [vmem:[#allocation33_spill] sm:$0xff] }
 0x4e4   : > { %3541 = vst.msk [vmem:[%s8111_s17 + $0x28] sm:$0xff] %vm1061_vm5, %v3509_v11  ;;  %3542 = vst.msk [vmem:[%s8111_s17 + $0x30] sm:$0xff] %vm1061_vm5, %v3510_v31  ;;  %v3522_v19 = vadd.f32 %v3490_v45, %v9370_v28  ;;  %v3523_v62 = vadd.f32 %v3491_v59, %v9371_v8  ;;  %v3524_v63 = vadd.f32 %v3492_v21, %v9372_v50  ;;  %v9377_v45 = vld [vmem:[#allocation34_spill] sm:$0xff]  ;;  %v9378_v21 = vld [vmem:[#allocation35_spill] sm:$0xff] }
 0x4e5   : > { %3543 = vst.msk [vmem:[%s8111_s17 + $0x38] sm:$0xff] %vm1061_vm5, %v3511_v52  ;;  %3544 = vst.msk [vmem:[%s8111_s17 + $0x40] sm:$0xff] %vm1061_vm5, %v3512_v14  ;;  %v3525_v54 = vadd.f32 %v3493_v6, %v9373_v13  ;;  %v3526_v22 = vadd.f32 %v3494_v4, %v9374_v24  ;;  %v3527_v20 = vadd.f32 %v3495_v43, %v9375_v41  ;;  %v9379_v4 = vld [vmem:[#allocation37_spill] sm:$0xff] }
 0x4e6   : > { %3545 = vst.msk [vmem:[%s8111_s17 + $0x48] sm:$0xff] %vm1061_vm5, %v3513_v15  ;;  %3546 = vst.msk [vmem:[%s8111_s17 + $0x50] sm:$0xff] %vm1061_vm5, %v3514_v55  ;;  %v3528_v51 = vadd.f32 %v3496_v42, %v9376_v16  ;;  %v3529_v59 = vadd.f32 %v3497_v48, %v9377_v45  ;;  %v3530_v6 = vadd.f32 %v3498_v2, %v9378_v21  ;;  %v9380_v42 = vld [vmem:[#allocation38_spill] sm:$0xff]  ;;  %v9381_v2 = vld [vmem:[#allocation39_spill] sm:$0xff] }
 0x4e7   : > { %3547 = vst.msk [vmem:[%s8111_s17 + $0x58] sm:$0xff] %vm1061_vm5, %v3515_v29  ;;  %3548 = vst.msk [vmem:[%s8111_s17 + $0x60] sm:$0xff] %vm1061_vm5, %v3516_v38  ;;  %v3531_v43 = vadd.f32 %v3499_v17, %v9379_v4  ;;  %v3532_v48 = vadd.f32 %v8113_v39, %v9380_v42  ;;  %v3533_v58 = vadd.f32 %v8115_v27, %v9381_v2  ;;  %v9382_v17 = vld [vmem:[#allocation41_spill] sm:$0xff] }
 0x4e8   : > { %3549 = vst.msk [vmem:[%s8111_s17 + $0x68] sm:$0xff] %vm1061_vm5, %v3517_v10  ;;  %3550 = vst.msk [vmem:[%s8111_s17 + $0x70] sm:$0xff] %vm1061_vm5, %v3518_v30  ;;  %v3534_v18 = vadd.f32 %v8117_v26, %v9382_v17  ;;  %v3535_v34 = vadd.f32 %v8119_v56, %v9383_v60 }
 0x4e9   : > { %3551 = vst.msk [vmem:[%s8111_s17 + $0x78] sm:$0xff] %vm1061_vm5, %v3519_v40  ;;  %3552 = vst.msk [vmem:[%s8111_s17 + $0x80] sm:$0xff] %vm1061_vm5, %v3520_v33 }
 0x4ea   : > { %3553 = vst.msk [vmem:[%s8111_s17 + $0x88] sm:$0xff] %vm1061_vm5, %v3521_v46  ;;  %3554 = vst.msk [vmem:[%s8111_s17 + $0x90] sm:$0xff] %vm1061_vm5, %v3522_v19 }
 0x4eb   : > { %3555 = vst.msk [vmem:[%s8111_s17 + $0x98] sm:$0xff] %vm1061_vm5, %v3523_v62  ;;  %3556 = vst.msk [vmem:[%s8111_s17 + $0xa0] sm:$0xff] %vm1061_vm5, %v3524_v63 }
 0x4ec   : > { %3557 = vst.msk [vmem:[%s8111_s17 + $0xa8] sm:$0xff] %vm1061_vm5, %v3525_v54  ;;  %3558 = vst.msk [vmem:[%s8111_s17 + $0xb0] sm:$0xff] %vm1061_vm5, %v3526_v22 }
 0x4ed   : > { %3559 = vst.msk [vmem:[%s8111_s17 + $0xb8] sm:$0xff] %vm1061_vm5, %v3527_v20  ;;  %3560 = vst.msk [vmem:[%s8111_s17 + $0xc0] sm:$0xff] %vm1061_vm5, %v3528_v51 }
 0x4ee   : > { %3561 = vst.msk [vmem:[%s8111_s17 + $0xc8] sm:$0xff] %vm1061_vm5, %v3529_v59  ;;  %3562 = vst.msk [vmem:[%s8111_s17 + $0xd0] sm:$0xff] %vm1061_vm5, %v3530_v6 }
 0x4ef   : > { %3563 = vst.msk [vmem:[%s8111_s17 + $0xd8] sm:$0xff] %vm1061_vm5, %v3531_v43  ;;  %3564 = vst.msk [vmem:[%s8111_s17 + $0xe0] sm:$0xff] %vm1061_vm5, %v3532_v48 }
 0x4f0   : > { %3565 = vst.msk [vmem:[%s8111_s17 + $0xe8] sm:$0xff] %vm1061_vm5, %v3533_v58  ;;  %3566 = vst.msk [vmem:[%s8111_s17 + $0xf0] sm:$0xff] %vm1061_vm5, %v3534_v18 }
 0x4f1   : > { %3567 = vst.msk [vmem:[%s8111_s17 + $0xf8] sm:$0xff] %vm1061_vm5, %v3535_v34 }
 0x4f2 PF: > { %s15_s18 = sadd.s32 1, %s3945_s18  }
 0x4f3   : > { %p12_p4 = scmp.ge.s32.totalorder %s15_s18, 4  }
 0x4f5   :  { %14 = sbr.rel (!%p12_p4) target bundleno = 1 (0x1), region = 86 }

</bundles_post_ra>
